<compile_context>
chip_gen: v7x
topology: tpu7x:2x2x1
jax: 0.10.0
libtpu: 0.0.40
codegen_flags: <defaults>
</compile_context>

<pallas_src>
import functools

import jax
import jax.numpy as jnp
import numpy as np
from jax import lax
from jax.experimental import pallas as pl
from jax.experimental.pallas import tpu as pltpu


def _lstm_layer_kernel(x_ref, wih_ref, whh_ref, b_ref, h0_ref, c0_ref,
                       out_ref, hN_ref, cN_ref,
                       xg_sc, h_sc, c_sc,
                       *, t_real, mask_time, proj_chunks, unroll):
    t = pl.program_id(1)

    # Initialize the recurrent state at the start of each batch tile's sweep.
    @pl.when(t == 0)
    def _():
        h_sc[...] = h0_ref[...].astype(jnp.float32)
        c_sc[...] = c0_ref[...].astype(jnp.float32)

    TT, TB, I = x_ref.shape
    Hp = h_sc.shape[-1]

    # ---- Hoisted input projection (no recurrent dependency), chunked so the
    #      first recurrence step only waits for its chunk of the MXU FIFO. ----
    wih = wih_ref[...]
    bias = b_ref[...]                                   # pre-summed b_ih+b_hh
    n_chunks = max(1, min(proj_chunks, TT))
    csize = -(-TT // n_chunks)
    for cs in range(0, TT, csize):
        clen = min(csize, TT - cs)
        # (clen, TB, I) -> (clen*TB, I) is a free view (TB is a multiple of 8).
        xc = x_ref[pl.ds(cs, clen)].reshape(clen * TB, I).astype(wih.dtype)
        g = jnp.dot(xc, wih, preferred_element_type=jnp.float32) + bias
        xg_sc[pl.ds(cs, clen)] = g.reshape(clen, TB, 4 * Hp)

    whh = whh_ref[...]

    # ---- Serial recurrence over the TT steps of this time block. ----
    def step(s, carry):
        h, c = carry
        gates = xg_sc[s] + jnp.dot(h.astype(whh.dtype), whh,
                                   preferred_element_type=jnp.float32)
        ingate = jax.nn.sigmoid(gates[:, 0 * Hp:1 * Hp])
        forgetgate = jax.nn.sigmoid(gates[:, 1 * Hp:2 * Hp])
        cellgate = jnp.tanh(gates[:, 2 * Hp:3 * Hp])
        outgate = jax.nn.sigmoid(gates[:, 3 * Hp:4 * Hp])
        cy = forgetgate * c + ingate * cellgate
        hy = outgate * jnp.tanh(cy)
        if mask_time:
            # Padded tail steps (global index >= real T): freeze the carries.
            valid = (t * TT + s) < t_real
            hy = jnp.where(valid, hy, h)
            cy = jnp.where(valid, cy, c)
        out_ref[s] = hy.astype(out_ref.dtype)           # lane-dense (TB, Hp)
        return hy, cy

    h_fin, c_fin = lax.fori_loop(0, TT, step, (h_sc[...], c_sc[...]),
                                 unroll=unroll)
    h_sc[...] = h_fin
    c_sc[...] = c_fin

    # Final state is materialized only once, on the last time block.
    @pl.when(t == pl.num_programs(1) - 1)
    def _():
        hN_ref[...] = h_fin.astype(hN_ref.dtype)
        cN_ref[...] = c_fin.astype(cN_ref.dtype)


def _round_up(n, m):
    return ((n + m - 1) // m) * m


def _largest_divisor_leq(n, cap):
    for d in range(min(cap, n), 0, -1):
        if n % d == 0:
            return d
    return 1


def _choose_time_block(T, block_t):
    """Per-grid-step time block TT and padded sequence length Tp."""
    block_t = max(1, min(block_t, T))
    d = _largest_divisor_leq(T, block_t)
    if d >= max(2, block_t // 2) or d == T:
        return d, T                         # exact divisor, no padding
    # Awkward T (e.g. prime): pad up and mask the tail instead of TT=1,
    # which would re-expose the per-grid-step pipeline overhead every step.
    return block_t, _round_up(T, block_t)


def _auto_block_b(B):
    """Batch tile: as deep as the MXU (<=256), but keep >=2 tiles when the
    batch allows so both v7x TensorCores get work on the 'parallel' axis."""
    Bp8 = _round_up(B, 8)
    if Bp8 >= 512:
        return 256
    if Bp8 >= 256:
        return _round_up((Bp8 + 1) // 2, 8)   # two tiles, each >=128
    return Bp8


def _vmem_limit_bytes(TT, TB, I, Hp, *, x_itemsize, out_itemsize, w_itemsize,
                      weight_bufs):
    """Estimate the kernel's VMEM footprint; return an explicit limit only
    when the scoped default (16 MiB on v5e) would be too small."""
    need = 0
    need += 2 * TT * TB * I * x_itemsize            # x block (double-buffered)
    need += 2 * TT * TB * Hp * out_itemsize         # out block (double-buffered)
    need += 2 * 2 * TB * Hp * out_itemsize          # final h / c blocks
    need += weight_bufs * (I * 4 * Hp + Hp * 4 * Hp) * w_itemsize  # weights
    need += weight_bufs * 4 * Hp * 4                # bias (f32)
    need += weight_bufs * 2 * TB * Hp * 4           # h0 / c0 (f32)
    need += TT * TB * 4 * Hp * 4                    # xg scratch (f32)
    need += 2 * TB * Hp * 4                         # h / c carries (f32)
    if need * 1.25 <= (16 << 20):                   # fits the smallest default
        return None
    try:
        phys = pltpu.get_tpu_info().vmem_capacity_bytes
    except Exception:
        phys = 64 << 20                             # v7x per-TC (most strict)
    cap = int(phys * 0.9)
    return min(int(need * 1.25) + (4 << 20), cap)


def lstm_layer(x, h0, c0, w_ih, b_ih, w_hh, b_hh, *,
               block_t=8, block_b=None, mxu_dtype=jnp.bfloat16,
               out_dtype=None, proj_chunks=2, unroll=None,
               single_buffer_weights=True):
    """x: (T, B, I) time-major; h0/c0: (B, H); w_ih: (4H, I); w_hh: (4H, H);
    biases: (4H,).  Returns (outputs (T, B, H), (hN, cN)).

    mxu_dtype: dtype of the matmul *operands* only (accumulation, gate math
      and h/c carries stay f32).  Default bfloat16 for MXU throughput on
      v6e/v7x; pass jnp.float32 (or None) for exact f32 PyTorch numerics.
    """
    T, B, I = x.shape
    H = h0.shape[-1]
    out_dtype = x.dtype if out_dtype is None else jnp.dtype(out_dtype)
    w_dtype = jnp.float32 if mxu_dtype is None else jnp.dtype(mxu_dtype)

    # --- Lane-align the hidden dim (zero padding is numerically exact). ---
    Hp = _round_up(H, 128)
    wih_p = jnp.zeros((4, Hp, I), jnp.float32).at[:, :H, :].set(
        jnp.asarray(w_ih, jnp.float32).reshape(4, H, I))
    whh_p = jnp.zeros((4, Hp, Hp), jnp.float32).at[:, :H, :H].set(
        jnp.asarray(w_hh, jnp.float32).reshape(4, H, H))
    b_p = jnp.zeros((4, Hp), jnp.float32).at[:, :H].set(
        (jnp.asarray(b_ih, jnp.float32)
         + jnp.asarray(b_hh, jnp.float32)).reshape(4, H))

    wih_t = wih_p.reshape(4 * Hp, I).T.astype(w_dtype)       # (I, 4Hp)
    whh_t = whh_p.reshape(4 * Hp, Hp).T.astype(w_dtype)      # (Hp, 4Hp)
    bias = b_p.reshape(1, 4 * Hp)                            # (1, 4Hp), f32

    # --- Batch tiling (sublane-aligned; 'parallel' axis for megacore). ---
    TB = _auto_block_b(B) if block_b is None else _round_up(block_b, 8)
    Bp = _round_up(B, TB)
    NB = Bp // TB

    # --- Time blocking (amortize per-grid-step overhead; pad+mask tail). ---
    TT, Tp = _choose_time_block(T, block_t)
    NT = Tp // TT

    h0_p = jnp.zeros((Bp, Hp), jnp.float32).at[:B, :H].set(h0.astype(jnp.float32))
    c0_p = jnp.zeros((Bp, Hp), jnp.float32).at[:B, :H].set(c0.astype(jnp.float32))
    if Bp == B and Tp == T:
        x_p = x
    else:
        x_p = jnp.zeros((Tp, Bp, I), x.dtype).at[:T, :B, :].set(x)

    # --- fori_loop unroll: full unroll only for small per-step tiles. ---
    if unroll is None:
        step_vregs = max(1, TB // 8) * max(1, (4 * Hp) // 128)
        unroll_val = bool(step_vregs <= 16)
    else:
        unroll_val = unroll

    kernel = functools.partial(
        _lstm_layer_kernel, t_real=T, mask_time=(Tp != T),
        proj_chunks=proj_chunks, unroll=unroll_val)

    vmem_limit = _vmem_limit_bytes(
        TT, TB, I, Hp,
        x_itemsize=jnp.dtype(x.dtype).itemsize,
        out_itemsize=jnp.dtype(out_dtype).itemsize,
        w_itemsize=jnp.dtype(w_dtype).itemsize,
        weight_bufs=1 if single_buffer_weights else 2)

    out_shapes = (
        jax.ShapeDtypeStruct((Tp, Bp, Hp), out_dtype),
        jax.ShapeDtypeStruct((Bp, Hp), out_dtype),
        jax.ShapeDtypeStruct((Bp, Hp), out_dtype),
    )
    scratch_shapes = [
        pltpu.VMEM((TT, TB, 4 * Hp), jnp.float32),   # block input projection
        pltpu.VMEM((TB, Hp), jnp.float32),           # h carry
        pltpu.VMEM((TB, Hp), jnp.float32),           # c carry
    ]
    compiler_params = pltpu.CompilerParams(
        # batch tiles are independent; time blocks are a true recurrence
        dimension_semantics=("parallel", "arbitrary"),
        vmem_limit_bytes=vmem_limit)

    def run(weight_pipeline_mode):
        kw = ({} if weight_pipeline_mode is None
              else {"pipeline_mode": weight_pipeline_mode})
        grid_spec = pltpu.PrefetchScalarGridSpec(
            num_scalar_prefetch=0,
            grid=(NB, NT),
            in_specs=[
                pl.BlockSpec((TT, TB, I), lambda b, t: (t, b, 0)),      # x
                pl.BlockSpec((I, 4 * Hp), lambda b, t: (0, 0), **kw),   # W_ih^T
                pl.BlockSpec((Hp, 4 * Hp), lambda b, t: (0, 0), **kw),  # W_hh^T
                pl.BlockSpec((1, 4 * Hp), lambda b, t: (0, 0), **kw),   # bias
                pl.BlockSpec((TB, Hp), lambda b, t: (b, 0), **kw),      # h0
                pl.BlockSpec((TB, Hp), lambda b, t: (b, 0), **kw),      # c0
            ],
            out_specs=[
                pl.BlockSpec((TT, TB, Hp), lambda b, t: (t, b, 0)),     # outs
                pl.BlockSpec((TB, Hp), lambda b, t: (b, 0)),            # h_N
                pl.BlockSpec((TB, Hp), lambda b, t: (b, 0)),            # c_N
            ],
            scratch_shapes=scratch_shapes,
        )
        return pl.pallas_call(
            kernel, grid_spec=grid_spec, out_shape=out_shapes,
            compiler_params=compiler_params,
        )(x_p, wih_t, whh_t, bias, h0_p, c0_p)

    if single_buffer_weights and hasattr(pl, "Buffered"):
        try:
            # Loop-invariant operands: single-buffer (constant block index, so
            # double-buffering only wastes VMEM; ~halves weight residency).
            outputs, hN, cN = run(pl.Buffered(1))
        except Exception:
            outputs, hN, cN = run(None)      # conservative, always-works path
    else:
        outputs, hN, cN = run(None)

    return outputs[:T, :B, :H], (hN[:B, :H], cN[:B, :H])


def lstm_layer_ref(x, h0, c0, w_ih, b_ih, w_hh, b_hh):
    """Pure-JAX reference matching the PyTorch forward semantics."""
    def step(state, x_t):
        h, c = state
        gates = x_t @ w_ih.T + b_ih + h @ w_hh.T + b_hh
        H = h.shape[-1]
        i = jax.nn.sigmoid(gates[:, 0 * H:1 * H])
        f = jax.nn.sigmoid(gates[:, 1 * H:2 * H])
        g = jnp.tanh(gates[:, 2 * H:3 * H])
        o = jax.nn.sigmoid(gates[:, 3 * H:4 * H])
        cy = f * c + i * g
        hy = o * jnp.tanh(cy)
        return (hy, cy), hy

    (hN, cN), ys = jax.lax.scan(step, (h0, c0), x)
    return ys, (hN, cN)


if __name__ == "__main__":
    T, B, I, H = 16, 16, 16, 32
    key = jax.random.PRNGKey(0)
    ks = jax.random.split(key, 7)

    # Deterministic parameter init (PyTorch nn.Linear-style uniform bounds).
    bound_ih = 1.0 / np.sqrt(I)
    bound_hh = 1.0 / np.sqrt(H)
    w_ih = jax.random.uniform(ks[0], (4 * H, I), jnp.float32, -bound_ih, bound_ih)
    b_ih = jax.random.uniform(ks[1], (4 * H,), jnp.float32, -bound_ih, bound_ih)
    w_hh = jax.random.uniform(ks[2], (4 * H, H), jnp.float32, -bound_hh, bound_hh)
    b_hh = jax.random.uniform(ks[3], (4 * H,), jnp.float32, -bound_hh, bound_hh)

    x = jax.random.normal(ks[4], (T, B, I), jnp.float32)
    h0 = jax.random.normal(ks[5], (B, H), jnp.float32)
    c0 = jax.random.normal(ks[6], (B, H), jnp.float32)

    ref_out, (ref_h, ref_c) = lstm_layer_ref(x, h0, c0, w_ih, b_ih, w_hh, b_hh)

    # 1) Exact-numerics path (f32 matmul operands) — matches PyTorch f32.
    out_f32, (h_f32, c_f32) = lstm_layer(
        x, h0, c0, w_ih, b_ih, w_hh, b_hh, mxu_dtype=jnp.float32)
    jax.block_until_ready((out_f32, h_f32, c_f32))
    np.testing.assert_allclose(np.asarray(out_f32), np.asarray(ref_out),
                               rtol=1e-5, atol=1e-5)
    np.testing.assert_allclose(np.asarray(h_f32), np.asarray(ref_h),
                               rtol=1e-5, atol=1e-5)
    np.testing.assert_allclose(np.asarray(c_f32), np.asarray(ref_c),
                               rtol=1e-5, atol=1e-5)

    # 2) Default fast path (bf16 matmul operands, f32 accumulation/carries).
    out_bf, (h_bf, c_bf) = lstm_layer(x, h0, c0, w_ih, b_ih, w_hh, b_hh)
    jax.block_until_ready((out_bf, h_bf, c_bf))
    np.testing.assert_allclose(np.asarray(out_bf), np.asarray(ref_out),
                               rtol=1e-1, atol=1e-1)

    # 3) Awkward (prime) sequence length exercises the pad+mask time blocking;
    #    block_b=8 exercises the multi-batch-tile "parallel" axis.
    T2 = 13
    x2 = jax.random.normal(jax.random.PRNGKey(1), (T2, B, I), jnp.float32)
    ref2_out, (ref2_h, ref2_c) = lstm_layer_ref(x2, h0, c0, w_ih, b_ih,
                                                w_hh, b_hh)
    out2, (h2, c2) = lstm_layer(x2, h0, c0, w_ih, b_ih, w_hh, b_hh,
                                mxu_dtype=jnp.float32, block_b=8)
    jax.block_until_ready((out2, h2, c2))
    np.testing.assert_allclose(np.asarray(out2), np.asarray(ref2_out),
                               rtol=1e-5, atol=1e-5)
    np.testing.assert_allclose(np.asarray(h2), np.asarray(ref2_h),
                               rtol=1e-5, atol=1e-5)
    np.testing.assert_allclose(np.asarray(c2), np.asarray(ref2_c),
                               rtol=1e-5, atol=1e-5)

    print("KERNEL_OK")
</pallas_src>

<mosaic_0001>
module attributes {stable_mosaic.version = 11 : i64} {
  func.func @_lstm_layer_kernel(%arg0: i32, %arg1: i32, %arg2: memref<8x16x16xf32, #tpu.memory_space<vmem>>, %arg3: memref<16x512xf32, #tpu.memory_space<vmem>>, %arg4: memref<128x512xf32, #tpu.memory_space<vmem>>, %arg5: memref<1x512xf32, #tpu.memory_space<vmem>>, %arg6: memref<16x128xf32, #tpu.memory_space<vmem>>, %arg7: memref<16x128xf32, #tpu.memory_space<vmem>>, %arg8: memref<8x16x128xf32, #tpu.memory_space<vmem>>, %arg9: memref<16x128xf32, #tpu.memory_space<vmem>>, %arg10: memref<16x128xf32, #tpu.memory_space<vmem>>, %arg11: memref<8x16x512xf32, #tpu.memory_space<vmem>>, %arg12: memref<16x128xf32, #tpu.memory_space<vmem>>, %arg13: memref<16x128xf32, #tpu.memory_space<vmem>>) attributes {dimension_semantics = [#tpu.dimension_semantics<parallel>, #tpu.dimension_semantics<arbitrary>], iteration_bounds = array<i64: 1, 2>, scalar_prefetch = 0 : i64, scratch_operands = 3 : i64, tpu.core_type = #tpu.core_type<tc>, window_params = [{transform_indices = @transform_0, window_bounds = array<i64: 8, 16, 16>}, {pipeline_mode = #tpu.pipeline_mode<synchronous>, transform_indices = @transform_1, window_bounds = array<i64: 16, 512>}, {pipeline_mode = #tpu.pipeline_mode<synchronous>, transform_indices = @transform_2, window_bounds = array<i64: 128, 512>}, {pipeline_mode = #tpu.pipeline_mode<synchronous>, transform_indices = @transform_3, window_bounds = array<i64: 1, 512>}, {pipeline_mode = #tpu.pipeline_mode<synchronous>, transform_indices = @transform_4, window_bounds = array<i64: 16, 128>}, {pipeline_mode = #tpu.pipeline_mode<synchronous>, transform_indices = @transform_5, window_bounds = array<i64: 16, 128>}, {transform_indices = @transform_6, window_bounds = array<i64: 8, 16, 128>}, {transform_indices = @transform_7, window_bounds = array<i64: 16, 128>}, {transform_indices = @transform_8, window_bounds = array<i64: 16, 128>}]} {
    %c0_i32 = arith.constant 0 : i32
    %0 = arith.cmpi eq, %arg1, %c0_i32 : i32
    %1 = arith.extui %0 : i1 to i32
    %c0_i32_0 = arith.constant 0 : i32
    %2 = arith.cmpi ne, %1, %c0_i32_0 : i32
    scf.if %2 {
      %c0_93 = arith.constant 0 : index
      %c0_94 = arith.constant 0 : index
      %299 = vector.load %arg6[%c0_93, %c0_94] : memref<16x128xf32, #tpu.memory_space<vmem>>, vector<16x128xf32>
      %c0_95 = arith.constant 0 : index
      %c0_96 = arith.constant 0 : index
      %300 = vector.load %arg12[%c0_95, %c0_96] : memref<16x128xf32, #tpu.memory_space<vmem>>, vector<16x128xf32>
      tpu.vector_store %arg12[%c0_95, %c0_96], %299 {strides = array<i32>} : memref<16x128xf32, #tpu.memory_space<vmem>>, vector<16x128xf32>,
      %c0_97 = arith.constant 0 : index
      %c0_98 = arith.constant 0 : index
      %301 = vector.load %arg7[%c0_97, %c0_98] : memref<16x128xf32, #tpu.memory_space<vmem>>, vector<16x128xf32>
      %c0_99 = arith.constant 0 : index
      %c0_100 = arith.constant 0 : index
      %302 = vector.load %arg13[%c0_99, %c0_100] : memref<16x128xf32, #tpu.memory_space<vmem>>, vector<16x128xf32>
      tpu.vector_store %arg13[%c0_99, %c0_100], %301 {strides = array<i32>} : memref<16x128xf32, #tpu.memory_space<vmem>>, vector<16x128xf32>,
    } else {
    }
    %c0 = arith.constant 0 : index
    %c0_1 = arith.constant 0 : index
    %3 = vector.load %arg3[%c0, %c0_1] : memref<16x512xf32, #tpu.memory_space<vmem>>, vector<16x512xf32>
    %c0_2 = arith.constant 0 : index
    %c0_3 = arith.constant 0 : index
    %4 = vector.load %arg5[%c0_2, %c0_3] : memref<1x512xf32, #tpu.memory_space<vmem>>, vector<1x512xf32>
    %c0_4 = arith.constant 0 : index
    %c0_5 = arith.constant 0 : index
    %c0_6 = arith.constant 0 : index
    %5 = vector.load %arg2[%c0_4, %c0_5, %c0_6] : memref<8x16x16xf32, #tpu.memory_space<vmem>>, vector<4x16x16xf32>
    %6 = vector.shape_cast %5 : vector<4x16x16xf32> to vector<64x16xf32>
    %cst = arith.constant dense<0.000000e+00> : vector<64x512xf32>
    %7 = tpu.matmul %6, %3, %cst {dimension_numbers = #tpu.dot_dimension_numbers<[1], [0], [0], [1], [0, 0, 1, 1], [], []>} : vector<64x16xf32>, vector<16x512xf32>, vector<64x512xf32> -> vector<64x512xf32>
    %8 = vector.broadcast %4 : vector<1x512xf32> to vector<64x512xf32>
    %9 = arith.addf %7, %8 : vector<64x512xf32>
    %10 = vector.shape_cast %9 : vector<64x512xf32> to vector<4x16x512xf32>
    %c0_7 = arith.constant 0 : index
    %c0_8 = arith.constant 0 : index
    %c0_9 = arith.constant 0 : index
    %11 = vector.load %arg11[%c0_7, %c0_8, %c0_9] : memref<8x16x512xf32, #tpu.memory_space<vmem>>, vector<4x16x512xf32>
    tpu.vector_store %arg11[%c0_7, %c0_8, %c0_9], %10 {strides = array<i32>} : memref<8x16x512xf32, #tpu.memory_space<vmem>>, vector<4x16x512xf32>,
    %c4 = arith.constant 4 : index
    %c0_10 = arith.constant 0 : index
    %c0_11 = arith.constant 0 : index
    %12 = vector.load %arg2[%c4, %c0_10, %c0_11] : memref<8x16x16xf32, #tpu.memory_space<vmem>>, vector<4x16x16xf32>
    %13 = vector.shape_cast %12 : vector<4x16x16xf32> to vector<64x16xf32>
    %cst_12 = arith.constant dense<0.000000e+00> : vector<64x512xf32>
    %14 = tpu.matmul %13, %3, %cst_12 {dimension_numbers = #tpu.dot_dimension_numbers<[1], [0], [0], [1], [0, 0, 1, 1], [], []>} : vector<64x16xf32>, vector<16x512xf32>, vector<64x512xf32> -> vector<64x512xf32>
    %15 = vector.broadcast %4 : vector<1x512xf32> to vector<64x512xf32>
    %16 = arith.addf %14, %15 : vector<64x512xf32>
    %17 = vector.shape_cast %16 : vector<64x512xf32> to vector<4x16x512xf32>
    %c4_13 = arith.constant 4 : index
    %c0_14 = arith.constant 0 : index
    %c0_15 = arith.constant 0 : index
    %18 = vector.load %arg11[%c4_13, %c0_14, %c0_15] : memref<8x16x512xf32, #tpu.memory_space<vmem>>, vector<4x16x512xf32>
    tpu.vector_store %arg11[%c4_13, %c0_14, %c0_15], %17 {strides = array<i32>} : memref<8x16x512xf32, #tpu.memory_space<vmem>>, vector<4x16x512xf32>,
    %c0_16 = arith.constant 0 : index
    %c0_17 = arith.constant 0 : index
    %19 = vector.load %arg4[%c0_16, %c0_17] : memref<128x512xf32, #tpu.memory_space<vmem>>, vector<128x512xf32>
    %c0_18 = arith.constant 0 : index
    %c0_19 = arith.constant 0 : index
    %20 = vector.load %arg12[%c0_18, %c0_19] : memref<16x128xf32, #tpu.memory_space<vmem>>, vector<16x128xf32>
    %c0_20 = arith.constant 0 : index
    %c0_21 = arith.constant 0 : index
    %21 = vector.load %arg13[%c0_20, %c0_21] : memref<16x128xf32, #tpu.memory_space<vmem>>, vector<16x128xf32>
    %c0_i32_22 = arith.constant 0 : i32
    %22 = arith.index_cast %c0_i32_22 : i32 to index
    %c0_23 = arith.constant 0 : index
    %c0_24 = arith.constant 0 : index
    %23 = vector.load %arg11[%22, %c0_23, %c0_24] : memref<8x16x512xf32, #tpu.memory_space<vmem>>, vector<1x16x512xf32>
    %24 = vector.shape_cast %23 : vector<1x16x512xf32> to vector<16x512xf32>
    %cst_25 = arith.constant dense<0.000000e+00> : vector<16x512xf32>
    %25 = tpu.matmul %20, %19, %cst_25 {dimension_numbers = #tpu.dot_dimension_numbers<[1], [0], [0], [1], [0, 0, 1, 1], [], []>} : vector<16x128xf32>, vector<128x512xf32>, vector<16x512xf32> -> vector<16x512xf32>
    %26 = arith.addf %24, %25 : vector<16x512xf32>
    %27 = vector.extract_strided_slice %26 {offsets = [0, 0], sizes = [16, 128], strides = [1, 1]} : vector<16x512xf32> to vector<16x128xf32>
    %28 = arith.negf %27 : vector<16x128xf32>
    %29 = math.exp %28 : vector<16x128xf32>
    %cst_26 = arith.constant 1.000000e+00 : f32
    %30 = vector.broadcast %cst_26 : f32 to vector<16x128xf32>
    %31 = arith.addf %30, %29 : vector<16x128xf32>
    %32 = arith.divf %30, %31 : vector<16x128xf32>
    %33 = vector.extract_strided_slice %26 {offsets = [0, 128], sizes = [16, 128], strides = [1, 1]} : vector<16x512xf32> to vector<16x128xf32>
    %34 = arith.negf %33 : vector<16x128xf32>
    %35 = math.exp %34 : vector<16x128xf32>
    %cst_27 = arith.constant 1.000000e+00 : f32
    %36 = vector.broadcast %cst_27 : f32 to vector<16x128xf32>
    %37 = arith.addf %36, %35 : vector<16x128xf32>
    %38 = arith.divf %36, %37 : vector<16x128xf32>
    %39 = vector.extract_strided_slice %26 {offsets = [0, 256], sizes = [16, 128], strides = [1, 1]} : vector<16x512xf32> to vector<16x128xf32>
    %40 = math.tanh %39 : vector<16x128xf32>
    %41 = vector.extract_strided_slice %26 {offsets = [0, 384], sizes = [16, 128], strides = [1, 1]} : vector<16x512xf32> to vector<16x128xf32>
    %42 = arith.negf %41 : vector<16x128xf32>
    %43 = math.exp %42 : vector<16x128xf32>
    %cst_28 = arith.constant 1.000000e+00 : f32
    %44 = vector.broadcast %cst_28 : f32 to vector<16x128xf32>
    %45 = arith.addf %44, %43 : vector<16x128xf32>
    %46 = arith.divf %44, %45 : vector<16x128xf32>
    %47 = arith.mulf %38, %21 : vector<16x128xf32>
    %48 = arith.mulf %32, %40 : vector<16x128xf32>
    %49 = arith.addf %47, %48 : vector<16x128xf32>
    %50 = math.tanh %49 : vector<16x128xf32>
    %51 = arith.mulf %46, %50 : vector<16x128xf32>
    %52 = arith.index_cast %c0_i32_22 : i32 to index
    %c0_29 = arith.constant 0 : index
    %c0_30 = arith.constant 0 : index
    %53 = vector.load %arg8[%52, %c0_29, %c0_30] : memref<8x16x128xf32, #tpu.memory_space<vmem>>, vector<1x16x128xf32>
    %54 = vector.shape_cast %53 : vector<1x16x128xf32> to vector<16x128xf32>
    %55 = vector.shape_cast %51 : vector<16x128xf32> to vector<1x16x128xf32>
    tpu.vector_store %arg8[%52, %c0_29, %c0_30], %55 {strides = array<i32>} : memref<8x16x128xf32, #tpu.memory_space<vmem>>, vector<1x16x128xf32>,
    %c1_i32 = arith.constant 1 : i32
    %56 = arith.index_cast %c1_i32 : i32 to index
    %c0_31 = arith.constant 0 : index
    %c0_32 = arith.constant 0 : index
    %57 = vector.load %arg11[%56, %c0_31, %c0_32] : memref<8x16x512xf32, #tpu.memory_space<vmem>>, vector<1x16x512xf32>
    %58 = vector.shape_cast %57 : vector<1x16x512xf32> to vector<16x512xf32>
    %cst_33 = arith.constant dense<0.000000e+00> : vector<16x512xf32>
    %59 = tpu.matmul %51, %19, %cst_33 {dimension_numbers = #tpu.dot_dimension_numbers<[1], [0], [0], [1], [0, 0, 1, 1], [], []>} : vector<16x128xf32>, vector<128x512xf32>, vector<16x512xf32> -> vector<16x512xf32>
    %60 = arith.addf %58, %59 : vector<16x512xf32>
    %61 = vector.extract_strided_slice %60 {offsets = [0, 0], sizes = [16, 128], strides = [1, 1]} : vector<16x512xf32> to vector<16x128xf32>
    %62 = arith.negf %61 : vector<16x128xf32>
    %63 = math.exp %62 : vector<16x128xf32>
    %cst_34 = arith.constant 1.000000e+00 : f32
    %64 = vector.broadcast %cst_34 : f32 to vector<16x128xf32>
    %65 = arith.addf %64, %63 : vector<16x128xf32>
    %66 = arith.divf %64, %65 : vector<16x128xf32>
    %67 = vector.extract_strided_slice %60 {offsets = [0, 128], sizes = [16, 128], strides = [1, 1]} : vector<16x512xf32> to vector<16x128xf32>
    %68 = arith.negf %67 : vector<16x128xf32>
    %69 = math.exp %68 : vector<16x128xf32>
    %cst_35 = arith.constant 1.000000e+00 : f32
    %70 = vector.broadcast %cst_35 : f32 to vector<16x128xf32>
    %71 = arith.addf %70, %69 : vector<16x128xf32>
    %72 = arith.divf %70, %71 : vector<16x128xf32>
    %73 = vector.extract_strided_slice %60 {offsets = [0, 256], sizes = [16, 128], strides = [1, 1]} : vector<16x512xf32> to vector<16x128xf32>
    %74 = math.tanh %73 : vector<16x128xf32>
    %75 = vector.extract_strided_slice %60 {offsets = [0, 384], sizes = [16, 128], strides = [1, 1]} : vector<16x512xf32> to vector<16x128xf32>
    %76 = arith.negf %75 : vector<16x128xf32>
    %77 = math.exp %76 : vector<16x128xf32>
    %cst_36 = arith.constant 1.000000e+00 : f32
    %78 = vector.broadcast %cst_36 : f32 to vector<16x128xf32>
    %79 = arith.addf %78, %77 : vector<16x128xf32>
    %80 = arith.divf %78, %79 : vector<16x128xf32>
    %81 = arith.mulf %72, %49 : vector<16x128xf32>
    %82 = arith.mulf %66, %74 : vector<16x128xf32>
    %83 = arith.addf %81, %82 : vector<16x128xf32>
    %84 = math.tanh %83 : vector<16x128xf32>
    %85 = arith.mulf %80, %84 : vector<16x128xf32>
    %86 = arith.index_cast %c1_i32 : i32 to index
    %c0_37 = arith.constant 0 : index
    %c0_38 = arith.constant 0 : index
    %87 = vector.load %arg8[%86, %c0_37, %c0_38] : memref<8x16x128xf32, #tpu.memory_space<vmem>>, vector<1x16x128xf32>
    %88 = vector.shape_cast %87 : vector<1x16x128xf32> to vector<16x128xf32>
    %89 = vector.shape_cast %85 : vector<16x128xf32> to vector<1x16x128xf32>
    tpu.vector_store %arg8[%86, %c0_37, %c0_38], %89 {strides = array<i32>} : memref<8x16x128xf32, #tpu.memory_space<vmem>>, vector<1x16x128xf32>,
    %c2_i32 = arith.constant 2 : i32
    %90 = arith.index_cast %c2_i32 : i32 to index
    %c0_39 = arith.constant 0 : index
    %c0_40 = arith.constant 0 : index
    %91 = vector.load %arg11[%90, %c0_39, %c0_40] : memref<8x16x512xf32, #tpu.memory_space<vmem>>, vector<1x16x512xf32>
    %92 = vector.shape_cast %91 : vector<1x16x512xf32> to vector<16x512xf32>
    %cst_41 = arith.constant dense<0.000000e+00> : vector<16x512xf32>
    %93 = tpu.matmul %85, %19, %cst_41 {dimension_numbers = #tpu.dot_dimension_numbers<[1], [0], [0], [1], [0, 0, 1, 1], [], []>} : vector<16x128xf32>, vector<128x512xf32>, vector<16x512xf32> -> vector<16x512xf32>
    %94 = arith.addf %92, %93 : vector<16x512xf32>
    %95 = vector.extract_strided_slice %94 {offsets = [0, 0], sizes = [16, 128], strides = [1, 1]} : vector<16x512xf32> to vector<16x128xf32>
    %96 = arith.negf %95 : vector<16x128xf32>
    %97 = math.exp %96 : vector<16x128xf32>
    %cst_42 = arith.constant 1.000000e+00 : f32
    %98 = vector.broadcast %cst_42 : f32 to vector<16x128xf32>
    %99 = arith.addf %98, %97 : vector<16x128xf32>
    %100 = arith.divf %98, %99 : vector<16x128xf32>
    %101 = vector.extract_strided_slice %94 {offsets = [0, 128], sizes = [16, 128], strides = [1, 1]} : vector<16x512xf32> to vector<16x128xf32>
    %102 = arith.negf %101 : vector<16x128xf32>
    %103 = math.exp %102 : vector<16x128xf32>
    %cst_43 = arith.constant 1.000000e+00 : f32
    %104 = vector.broadcast %cst_43 : f32 to vector<16x128xf32>
    %105 = arith.addf %104, %103 : vector<16x128xf32>
    %106 = arith.divf %104, %105 : vector<16x128xf32>
    %107 = vector.extract_strided_slice %94 {offsets = [0, 256], sizes = [16, 128], strides = [1, 1]} : vector<16x512xf32> to vector<16x128xf32>
    %108 = math.tanh %107 : vector<16x128xf32>
    %109 = vector.extract_strided_slice %94 {offsets = [0, 384], sizes = [16, 128], strides = [1, 1]} : vector<16x512xf32> to vector<16x128xf32>
    %110 = arith.negf %109 : vector<16x128xf32>
    %111 = math.exp %110 : vector<16x128xf32>
    %cst_44 = arith.constant 1.000000e+00 : f32
    %112 = vector.broadcast %cst_44 : f32 to vector<16x128xf32>
    %113 = arith.addf %112, %111 : vector<16x128xf32>
    %114 = arith.divf %112, %113 : vector<16x128xf32>
    %115 = arith.mulf %106, %83 : vector<16x128xf32>
    %116 = arith.mulf %100, %108 : vector<16x128xf32>
    %117 = arith.addf %115, %116 : vector<16x128xf32>
    %118 = math.tanh %117 : vector<16x128xf32>
    %119 = arith.mulf %114, %118 : vector<16x128xf32>
    %120 = arith.index_cast %c2_i32 : i32 to index
    %c0_45 = arith.constant 0 : index
    %c0_46 = arith.constant 0 : index
    %121 = vector.load %arg8[%120, %c0_45, %c0_46] : memref<8x16x128xf32, #tpu.memory_space<vmem>>, vector<1x16x128xf32>
    %122 = vector.shape_cast %121 : vector<1x16x128xf32> to vector<16x128xf32>
    %123 = vector.shape_cast %119 : vector<16x128xf32> to vector<1x16x128xf32>
    tpu.vector_store %arg8[%120, %c0_45, %c0_46], %123 {strides = array<i32>} : memref<8x16x128xf32, #tpu.memory_space<vmem>>, vector<1x16x128xf32>,
    %c3_i32 = arith.constant 3 : i32
    %124 = arith.index_cast %c3_i32 : i32 to index
    %c0_47 = arith.constant 0 : index
    %c0_48 = arith.constant 0 : index
    %125 = vector.load %arg11[%124, %c0_47, %c0_48] : memref<8x16x512xf32, #tpu.memory_space<vmem>>, vector<1x16x512xf32>
    %126 = vector.shape_cast %125 : vector<1x16x512xf32> to vector<16x512xf32>
    %cst_49 = arith.constant dense<0.000000e+00> : vector<16x512xf32>
    %127 = tpu.matmul %119, %19, %cst_49 {dimension_numbers = #tpu.dot_dimension_numbers<[1], [0], [0], [1], [0, 0, 1, 1], [], []>} : vector<16x128xf32>, vector<128x512xf32>, vector<16x512xf32> -> vector<16x512xf32>
    %128 = arith.addf %126, %127 : vector<16x512xf32>
    %129 = vector.extract_strided_slice %128 {offsets = [0, 0], sizes = [16, 128], strides = [1, 1]} : vector<16x512xf32> to vector<16x128xf32>
    %130 = arith.negf %129 : vector<16x128xf32>
    %131 = math.exp %130 : vector<16x128xf32>
    %cst_50 = arith.constant 1.000000e+00 : f32
    %132 = vector.broadcast %cst_50 : f32 to vector<16x128xf32>
    %133 = arith.addf %132, %131 : vector<16x128xf32>
    %134 = arith.divf %132, %133 : vector<16x128xf32>
    %135 = vector.extract_strided_slice %128 {offsets = [0, 128], sizes = [16, 128], strides = [1, 1]} : vector<16x512xf32> to vector<16x128xf32>
    %136 = arith.negf %135 : vector<16x128xf32>
    %137 = math.exp %136 : vector<16x128xf32>
    %cst_51 = arith.constant 1.000000e+00 : f32
    %138 = vector.broadcast %cst_51 : f32 to vector<16x128xf32>
    %139 = arith.addf %138, %137 : vector<16x128xf32>
    %140 = arith.divf %138, %139 : vector<16x128xf32>
    %141 = vector.extract_strided_slice %128 {offsets = [0, 256], sizes = [16, 128], strides = [1, 1]} : vector<16x512xf32> to vector<16x128xf32>
    %142 = math.tanh %141 : vector<16x128xf32>
    %143 = vector.extract_strided_slice %128 {offsets = [0, 384], sizes = [16, 128], strides = [1, 1]} : vector<16x512xf32> to vector<16x128xf32>
    %144 = arith.negf %143 : vector<16x128xf32>
    %145 = math.exp %144 : vector<16x128xf32>
    %cst_52 = arith.constant 1.000000e+00 : f32
    %146 = vector.broadcast %cst_52 : f32 to vector<16x128xf32>
    %147 = arith.addf %146, %145 : vector<16x128xf32>
    %148 = arith.divf %146, %147 : vector<16x128xf32>
    %149 = arith.mulf %140, %117 : vector<16x128xf32>
    %150 = arith.mulf %134, %142 : vector<16x128xf32>
    %151 = arith.addf %149, %150 : vector<16x128xf32>
    %152 = math.tanh %151 : vector<16x128xf32>
    %153 = arith.mulf %148, %152 : vector<16x128xf32>
    %154 = arith.index_cast %c3_i32 : i32 to index
    %c0_53 = arith.constant 0 : index
    %c0_54 = arith.constant 0 : index
    %155 = vector.load %arg8[%154, %c0_53, %c0_54] : memref<8x16x128xf32, #tpu.memory_space<vmem>>, vector<1x16x128xf32>
    %156 = vector.shape_cast %155 : vector<1x16x128xf32> to vector<16x128xf32>
    %157 = vector.shape_cast %153 : vector<16x128xf32> to vector<1x16x128xf32>
    tpu.vector_store %arg8[%154, %c0_53, %c0_54], %157 {strides = array<i32>} : memref<8x16x128xf32, #tpu.memory_space<vmem>>, vector<1x16x128xf32>,
    %c4_i32 = arith.constant 4 : i32
    %158 = arith.index_cast %c4_i32 : i32 to index
    %c0_55 = arith.constant 0 : index
    %c0_56 = arith.constant 0 : index
    %159 = vector.load %arg11[%158, %c0_55, %c0_56] : memref<8x16x512xf32, #tpu.memory_space<vmem>>, vector<1x16x512xf32>
    %160 = vector.shape_cast %159 : vector<1x16x512xf32> to vector<16x512xf32>
    %cst_57 = arith.constant dense<0.000000e+00> : vector<16x512xf32>
    %161 = tpu.matmul %153, %19, %cst_57 {dimension_numbers = #tpu.dot_dimension_numbers<[1], [0], [0], [1], [0, 0, 1, 1], [], []>} : vector<16x128xf32>, vector<128x512xf32>, vector<16x512xf32> -> vector<16x512xf32>
    %162 = arith.addf %160, %161 : vector<16x512xf32>
    %163 = vector.extract_strided_slice %162 {offsets = [0, 0], sizes = [16, 128], strides = [1, 1]} : vector<16x512xf32> to vector<16x128xf32>
    %164 = arith.negf %163 : vector<16x128xf32>
    %165 = math.exp %164 : vector<16x128xf32>
    %cst_58 = arith.constant 1.000000e+00 : f32
    %166 = vector.broadcast %cst_58 : f32 to vector<16x128xf32>
    %167 = arith.addf %166, %165 : vector<16x128xf32>
    %168 = arith.divf %166, %167 : vector<16x128xf32>
    %169 = vector.extract_strided_slice %162 {offsets = [0, 128], sizes = [16, 128], strides = [1, 1]} : vector<16x512xf32> to vector<16x128xf32>
    %170 = arith.negf %169 : vector<16x128xf32>
    %171 = math.exp %170 : vector<16x128xf32>
    %cst_59 = arith.constant 1.000000e+00 : f32
    %172 = vector.broadcast %cst_59 : f32 to vector<16x128xf32>
    %173 = arith.addf %172, %171 : vector<16x128xf32>
    %174 = arith.divf %172, %173 : vector<16x128xf32>
    %175 = vector.extract_strided_slice %162 {offsets = [0, 256], sizes = [16, 128], strides = [1, 1]} : vector<16x512xf32> to vector<16x128xf32>
    %176 = math.tanh %175 : vector<16x128xf32>
    %177 = vector.extract_strided_slice %162 {offsets = [0, 384], sizes = [16, 128], strides = [1, 1]} : vector<16x512xf32> to vector<16x128xf32>
    %178 = arith.negf %177 : vector<16x128xf32>
    %179 = math.exp %178 : vector<16x128xf32>
    %cst_60 = arith.constant 1.000000e+00 : f32
    %180 = vector.broadcast %cst_60 : f32 to vector<16x128xf32>
    %181 = arith.addf %180, %179 : vector<16x128xf32>
    %182 = arith.divf %180, %181 : vector<16x128xf32>
    %183 = arith.mulf %174, %151 : vector<16x128xf32>
    %184 = arith.mulf %168, %176 : vector<16x128xf32>
    %185 = arith.addf %183, %184 : vector<16x128xf32>
    %186 = math.tanh %185 : vector<16x128xf32>
    %187 = arith.mulf %182, %186 : vector<16x128xf32>
    %188 = arith.index_cast %c4_i32 : i32 to index
    %c0_61 = arith.constant 0 : index
    %c0_62 = arith.constant 0 : index
    %189 = vector.load %arg8[%188, %c0_61, %c0_62] : memref<8x16x128xf32, #tpu.memory_space<vmem>>, vector<1x16x128xf32>
    %190 = vector.shape_cast %189 : vector<1x16x128xf32> to vector<16x128xf32>
    %191 = vector.shape_cast %187 : vector<16x128xf32> to vector<1x16x128xf32>
    tpu.vector_store %arg8[%188, %c0_61, %c0_62], %191 {strides = array<i32>} : memref<8x16x128xf32, #tpu.memory_space<vmem>>, vector<1x16x128xf32>,
    %c5_i32 = arith.constant 5 : i32
    %192 = arith.index_cast %c5_i32 : i32 to index
    %c0_63 = arith.constant 0 : index
    %c0_64 = arith.constant 0 : index
    %193 = vector.load %arg11[%192, %c0_63, %c0_64] : memref<8x16x512xf32, #tpu.memory_space<vmem>>, vector<1x16x512xf32>
    %194 = vector.shape_cast %193 : vector<1x16x512xf32> to vector<16x512xf32>
    %cst_65 = arith.constant dense<0.000000e+00> : vector<16x512xf32>
    %195 = tpu.matmul %187, %19, %cst_65 {dimension_numbers = #tpu.dot_dimension_numbers<[1], [0], [0], [1], [0, 0, 1, 1], [], []>} : vector<16x128xf32>, vector<128x512xf32>, vector<16x512xf32> -> vector<16x512xf32>
    %196 = arith.addf %194, %195 : vector<16x512xf32>
    %197 = vector.extract_strided_slice %196 {offsets = [0, 0], sizes = [16, 128], strides = [1, 1]} : vector<16x512xf32> to vector<16x128xf32>
    %198 = arith.negf %197 : vector<16x128xf32>
    %199 = math.exp %198 : vector<16x128xf32>
    %cst_66 = arith.constant 1.000000e+00 : f32
    %200 = vector.broadcast %cst_66 : f32 to vector<16x128xf32>
    %201 = arith.addf %200, %199 : vector<16x128xf32>
    %202 = arith.divf %200, %201 : vector<16x128xf32>
    %203 = vector.extract_strided_slice %196 {offsets = [0, 128], sizes = [16, 128], strides = [1, 1]} : vector<16x512xf32> to vector<16x128xf32>
    %204 = arith.negf %203 : vector<16x128xf32>
    %205 = math.exp %204 : vector<16x128xf32>
    %cst_67 = arith.constant 1.000000e+00 : f32
    %206 = vector.broadcast %cst_67 : f32 to vector<16x128xf32>
    %207 = arith.addf %206, %205 : vector<16x128xf32>
    %208 = arith.divf %206, %207 : vector<16x128xf32>
    %209 = vector.extract_strided_slice %196 {offsets = [0, 256], sizes = [16, 128], strides = [1, 1]} : vector<16x512xf32> to vector<16x128xf32>
    %210 = math.tanh %209 : vector<16x128xf32>
    %211 = vector.extract_strided_slice %196 {offsets = [0, 384], sizes = [16, 128], strides = [1, 1]} : vector<16x512xf32> to vector<16x128xf32>
    %212 = arith.negf %211 : vector<16x128xf32>
    %213 = math.exp %212 : vector<16x128xf32>
    %cst_68 = arith.constant 1.000000e+00 : f32
    %214 = vector.broadcast %cst_68 : f32 to vector<16x128xf32>
    %215 = arith.addf %214, %213 : vector<16x128xf32>
    %216 = arith.divf %214, %215 : vector<16x128xf32>
    %217 = arith.mulf %208, %185 : vector<16x128xf32>
    %218 = arith.mulf %202, %210 : vector<16x128xf32>
    %219 = arith.addf %217, %218 : vector<16x128xf32>
    %220 = math.tanh %219 : vector<16x128xf32>
    %221 = arith.mulf %216, %220 : vector<16x128xf32>
    %222 = arith.index_cast %c5_i32 : i32 to index
    %c0_69 = arith.constant 0 : index
    %c0_70 = arith.constant 0 : index
    %223 = vector.load %arg8[%222, %c0_69, %c0_70] : memref<8x16x128xf32, #tpu.memory_space<vmem>>, vector<1x16x128xf32>
    %224 = vector.shape_cast %223 : vector<1x16x128xf32> to vector<16x128xf32>
    %225 = vector.shape_cast %221 : vector<16x128xf32> to vector<1x16x128xf32>
    tpu.vector_store %arg8[%222, %c0_69, %c0_70], %225 {strides = array<i32>} : memref<8x16x128xf32, #tpu.memory_space<vmem>>, vector<1x16x128xf32>,
    %c6_i32 = arith.constant 6 : i32
    %226 = arith.index_cast %c6_i32 : i32 to index
    %c0_71 = arith.constant 0 : index
    %c0_72 = arith.constant 0 : index
    %227 = vector.load %arg11[%226, %c0_71, %c0_72] : memref<8x16x512xf32, #tpu.memory_space<vmem>>, vector<1x16x512xf32>
    %228 = vector.shape_cast %227 : vector<1x16x512xf32> to vector<16x512xf32>
    %cst_73 = arith.constant dense<0.000000e+00> : vector<16x512xf32>
    %229 = tpu.matmul %221, %19, %cst_73 {dimension_numbers = #tpu.dot_dimension_numbers<[1], [0], [0], [1], [0, 0, 1, 1], [], []>} : vector<16x128xf32>, vector<128x512xf32>, vector<16x512xf32> -> vector<16x512xf32>
    %230 = arith.addf %228, %229 : vector<16x512xf32>
    %231 = vector.extract_strided_slice %230 {offsets = [0, 0], sizes = [16, 128], strides = [1, 1]} : vector<16x512xf32> to vector<16x128xf32>
    %232 = arith.negf %231 : vector<16x128xf32>
    %233 = math.exp %232 : vector<16x128xf32>
    %cst_74 = arith.constant 1.000000e+00 : f32
    %234 = vector.broadcast %cst_74 : f32 to vector<16x128xf32>
    %235 = arith.addf %234, %233 : vector<16x128xf32>
    %236 = arith.divf %234, %235 : vector<16x128xf32>
    %237 = vector.extract_strided_slice %230 {offsets = [0, 128], sizes = [16, 128], strides = [1, 1]} : vector<16x512xf32> to vector<16x128xf32>
    %238 = arith.negf %237 : vector<16x128xf32>
    %239 = math.exp %238 : vector<16x128xf32>
    %cst_75 = arith.constant 1.000000e+00 : f32
    %240 = vector.broadcast %cst_75 : f32 to vector<16x128xf32>
    %241 = arith.addf %240, %239 : vector<16x128xf32>
    %242 = arith.divf %240, %241 : vector<16x128xf32>
    %243 = vector.extract_strided_slice %230 {offsets = [0, 256], sizes = [16, 128], strides = [1, 1]} : vector<16x512xf32> to vector<16x128xf32>
    %244 = math.tanh %243 : vector<16x128xf32>
    %245 = vector.extract_strided_slice %230 {offsets = [0, 384], sizes = [16, 128], strides = [1, 1]} : vector<16x512xf32> to vector<16x128xf32>
    %246 = arith.negf %245 : vector<16x128xf32>
    %247 = math.exp %246 : vector<16x128xf32>
    %cst_76 = arith.constant 1.000000e+00 : f32
    %248 = vector.broadcast %cst_76 : f32 to vector<16x128xf32>
    %249 = arith.addf %248, %247 : vector<16x128xf32>
    %250 = arith.divf %248, %249 : vector<16x128xf32>
    %251 = arith.mulf %242, %219 : vector<16x128xf32>
    %252 = arith.mulf %236, %244 : vector<16x128xf32>
    %253 = arith.addf %251, %252 : vector<16x128xf32>
    %254 = math.tanh %253 : vector<16x128xf32>
    %255 = arith.mulf %250, %254 : vector<16x128xf32>
    %256 = arith.index_cast %c6_i32 : i32 to index
    %c0_77 = arith.constant 0 : index
    %c0_78 = arith.constant 0 : index
    %257 = vector.load %arg8[%256, %c0_77, %c0_78] : memref<8x16x128xf32, #tpu.memory_space<vmem>>, vector<1x16x128xf32>
    %258 = vector.shape_cast %257 : vector<1x16x128xf32> to vector<16x128xf32>
    %259 = vector.shape_cast %255 : vector<16x128xf32> to vector<1x16x128xf32>
    tpu.vector_store %arg8[%256, %c0_77, %c0_78], %259 {strides = array<i32>} : memref<8x16x128xf32, #tpu.memory_space<vmem>>, vector<1x16x128xf32>,
    %c7_i32 = arith.constant 7 : i32
    %260 = arith.index_cast %c7_i32 : i32 to index
    %c0_79 = arith.constant 0 : index
    %c0_80 = arith.constant 0 : index
    %261 = vector.load %arg11[%260, %c0_79, %c0_80] : memref<8x16x512xf32, #tpu.memory_space<vmem>>, vector<1x16x512xf32>
    %262 = vector.shape_cast %261 : vector<1x16x512xf32> to vector<16x512xf32>
    %cst_81 = arith.constant dense<0.000000e+00> : vector<16x512xf32>
    %263 = tpu.matmul %255, %19, %cst_81 {dimension_numbers = #tpu.dot_dimension_numbers<[1], [0], [0], [1], [0, 0, 1, 1], [], []>} : vector<16x128xf32>, vector<128x512xf32>, vector<16x512xf32> -> vector<16x512xf32>
    %264 = arith.addf %262, %263 : vector<16x512xf32>
    %265 = vector.extract_strided_slice %264 {offsets = [0, 0], sizes = [16, 128], strides = [1, 1]} : vector<16x512xf32> to vector<16x128xf32>
    %266 = arith.negf %265 : vector<16x128xf32>
    %267 = math.exp %266 : vector<16x128xf32>
    %cst_82 = arith.constant 1.000000e+00 : f32
    %268 = vector.broadcast %cst_82 : f32 to vector<16x128xf32>
    %269 = arith.addf %268, %267 : vector<16x128xf32>
    %270 = arith.divf %268, %269 : vector<16x128xf32>
    %271 = vector.extract_strided_slice %264 {offsets = [0, 128], sizes = [16, 128], strides = [1, 1]} : vector<16x512xf32> to vector<16x128xf32>
    %272 = arith.negf %271 : vector<16x128xf32>
    %273 = math.exp %272 : vector<16x128xf32>
    %cst_83 = arith.constant 1.000000e+00 : f32
    %274 = vector.broadcast %cst_83 : f32 to vector<16x128xf32>
    %275 = arith.addf %274, %273 : vector<16x128xf32>
    %276 = arith.divf %274, %275 : vector<16x128xf32>
    %277 = vector.extract_strided_slice %264 {offsets = [0, 256], sizes = [16, 128], strides = [1, 1]} : vector<16x512xf32> to vector<16x128xf32>
    %278 = math.tanh %277 : vector<16x128xf32>
    %279 = vector.extract_strided_slice %264 {offsets = [0, 384], sizes = [16, 128], strides = [1, 1]} : vector<16x512xf32> to vector<16x128xf32>
    %280 = arith.negf %279 : vector<16x128xf32>
    %281 = math.exp %280 : vector<16x128xf32>
    %cst_84 = arith.constant 1.000000e+00 : f32
    %282 = vector.broadcast %cst_84 : f32 to vector<16x128xf32>
    %283 = arith.addf %282, %281 : vector<16x128xf32>
    %284 = arith.divf %282, %283 : vector<16x128xf32>
    %285 = arith.mulf %276, %253 : vector<16x128xf32>
    %286 = arith.mulf %270, %278 : vector<16x128xf32>
    %287 = arith.addf %285, %286 : vector<16x128xf32>
    %288 = math.tanh %287 : vector<16x128xf32>
    %289 = arith.mulf %284, %288 : vector<16x128xf32>
    %290 = arith.index_cast %c7_i32 : i32 to index
    %c0_85 = arith.constant 0 : index
    %c0_86 = arith.constant 0 : index
    %291 = vector.load %arg8[%290, %c0_85, %c0_86] : memref<8x16x128xf32, #tpu.memory_space<vmem>>, vector<1x16x128xf32>
    %292 = vector.shape_cast %291 : vector<1x16x128xf32> to vector<16x128xf32>
    %293 = vector.shape_cast %289 : vector<16x128xf32> to vector<1x16x128xf32>
    tpu.vector_store %arg8[%290, %c0_85, %c0_86], %293 {strides = array<i32>} : memref<8x16x128xf32, #tpu.memory_space<vmem>>, vector<1x16x128xf32>,
    %c8_i32 = arith.constant 8 : i32
    %c0_87 = arith.constant 0 : index
    %c0_88 = arith.constant 0 : index
    %294 = vector.load %arg12[%c0_87, %c0_88] : memref<16x128xf32, #tpu.memory_space<vmem>>, vector<16x128xf32>
    tpu.vector_store %arg12[%c0_87, %c0_88], %289 {strides = array<i32>} : memref<16x128xf32, #tpu.memory_space<vmem>>, vector<16x128xf32>,
    %c0_89 = arith.constant 0 : index
    %c0_90 = arith.constant 0 : index
    %295 = vector.load %arg13[%c0_89, %c0_90] : memref<16x128xf32, #tpu.memory_space<vmem>>, vector<16x128xf32>
    tpu.vector_store %arg13[%c0_89, %c0_90], %287 {strides = array<i32>} : memref<16x128xf32, #tpu.memory_space<vmem>>, vector<16x128xf32>,
    %c1_i32_91 = arith.constant 1 : i32
    %296 = arith.cmpi eq, %arg1, %c1_i32_91 : i32
    %297 = arith.extui %296 : i1 to i32
    %c0_i32_92 = arith.constant 0 : i32
    %298 = arith.cmpi ne, %297, %c0_i32_92 : i32
    scf.if %298 {
      %c0_93 = arith.constant 0 : index
      %c0_94 = arith.constant 0 : index
      %299 = vector.load %arg9[%c0_93, %c0_94] : memref<16x128xf32, #tpu.memory_space<vmem>>, vector<16x128xf32>
      tpu.vector_store %arg9[%c0_93, %c0_94], %289 {strides = array<i32>} : memref<16x128xf32, #tpu.memory_space<vmem>>, vector<16x128xf32>,
      %c0_95 = arith.constant 0 : index
      %c0_96 = arith.constant 0 : index
      %300 = vector.load %arg10[%c0_95, %c0_96] : memref<16x128xf32, #tpu.memory_space<vmem>>, vector<16x128xf32>
      tpu.vector_store %arg10[%c0_95, %c0_96], %287 {strides = array<i32>} : memref<16x128xf32, #tpu.memory_space<vmem>>, vector<16x128xf32>,
    } else {
    }
    return
  }
  func.func @transform_0(%arg0: i32, %arg1: i32) -> (i32, i32, i32) {
    %c0_i32 = arith.constant 0 : i32
    %c0_i32_0 = arith.constant 0 : i32
    return %arg1, %arg0, %c0_i32 : i32, i32, i32
  }
  func.func @transform_1(%arg0: i32, %arg1: i32) -> (i32, i32) {
    %c0_i32 = arith.constant 0 : i32
    %c0_i32_0 = arith.constant 0 : i32
    %c0_i32_1 = arith.constant 0 : i32
    return %c0_i32, %c0_i32_0 : i32, i32
  }
  func.func @transform_2(%arg0: i32, %arg1: i32) -> (i32, i32) {
    %c0_i32 = arith.constant 0 : i32
    %c0_i32_0 = arith.constant 0 : i32
    %c0_i32_1 = arith.constant 0 : i32
    return %c0_i32, %c0_i32_0 : i32, i32
  }
  func.func @transform_3(%arg0: i32, %arg1: i32) -> (i32, i32) {
    %c0_i32 = arith.constant 0 : i32
    %c0_i32_0 = arith.constant 0 : i32
    %c0_i32_1 = arith.constant 0 : i32
    return %c0_i32, %c0_i32_0 : i32, i32
  }
  func.func @transform_4(%arg0: i32, %arg1: i32) -> (i32, i32) {
    %c0_i32 = arith.constant 0 : i32
    %c0_i32_0 = arith.constant 0 : i32
    return %arg0, %c0_i32 : i32, i32
  }
  func.func @transform_5(%arg0: i32, %arg1: i32) -> (i32, i32) {
    %c0_i32 = arith.constant 0 : i32
    %c0_i32_0 = arith.constant 0 : i32
    return %arg0, %c0_i32 : i32, i32
  }
  func.func @transform_6(%arg0: i32, %arg1: i32) -> (i32, i32, i32) {
    %c0_i32 = arith.constant 0 : i32
    %c0_i32_0 = arith.constant 0 : i32
    return %arg1, %arg0, %c0_i32 : i32, i32, i32
  }
  func.func @transform_7(%arg0: i32, %arg1: i32) -> (i32, i32) {
    %c0_i32 = arith.constant 0 : i32
    %c0_i32_0 = arith.constant 0 : i32
    return %arg0, %c0_i32 : i32, i32
  }
  func.func @transform_8(%arg0: i32, %arg1: i32) -> (i32, i32) {
    %c0_i32 = arith.constant 0 : i32
    %c0_i32_0 = arith.constant 0 : i32
    return %arg0, %c0_i32 : i32, i32
  }
}

module attributes {stable_mosaic.version = 11 : i64} {
  func.func @_lstm_layer_kernel(%arg0: i32, %arg1: i32, %arg2: memref<8x16x16xf32, #tpu.memory_space<vmem>>, %arg3: memref<16x512xf32, #tpu.memory_space<vmem>>, %arg4: memref<128x512xf32, #tpu.memory_space<vmem>>, %arg5: memref<1x512xf32, #tpu.memory_space<vmem>>, %arg6: memref<16x128xf32, #tpu.memory_space<vmem>>, %arg7: memref<16x128xf32, #tpu.memory_space<vmem>>, %arg8: memref<8x16x128xf32, #tpu.memory_space<vmem>>, %arg9: memref<16x128xf32, #tpu.memory_space<vmem>>, %arg10: memref<16x128xf32, #tpu.memory_space<vmem>>, %arg11: memref<8x16x512xf32, #tpu.memory_space<vmem>>, %arg12: memref<16x128xf32, #tpu.memory_space<vmem>>, %arg13: memref<16x128xf32, #tpu.memory_space<vmem>>) attributes {dimension_semantics = [#tpu.dimension_semantics<parallel>, #tpu.dimension_semantics<arbitrary>], iteration_bounds = array<i64: 1, 2>, scalar_prefetch = 0 : i64, scratch_operands = 3 : i64, tpu.core_type = #tpu.core_type<tc>, window_params = [{transform_indices = @transform_0, window_bounds = array<i64: 8, 16, 16>}, {pipeline_mode = #tpu.pipeline_mode<synchronous>, transform_indices = @transform_1, window_bounds = array<i64: 16, 512>}, {pipeline_mode = #tpu.pipeline_mode<synchronous>, transform_indices = @transform_2, window_bounds = array<i64: 128, 512>}, {pipeline_mode = #tpu.pipeline_mode<synchronous>, transform_indices = @transform_3, window_bounds = array<i64: 1, 512>}, {transform_indices = @transform_4, window_bounds = array<i64: 16, 128>}, {transform_indices = @transform_5, window_bounds = array<i64: 16, 128>}, {transform_indices = @transform_6, window_bounds = array<i64: 8, 16, 128>}, {transform_indices = @transform_7, window_bounds = array<i64: 16, 128>}, {transform_indices = @transform_8, window_bounds = array<i64: 16, 128>}]} {
    %c0_i32 = arith.constant 0 : i32
    %0 = arith.cmpi eq, %arg1, %c0_i32 : i32
    %1 = arith.extui %0 : i1 to i32
    %c0_i32_0 = arith.constant 0 : i32
    %2 = arith.cmpi ne, %1, %c0_i32_0 : i32
    scf.if %2 {
      %c0_93 = arith.constant 0 : index
      %c0_94 = arith.constant 0 : index
      %299 = vector.load %arg6[%c0_93, %c0_94] : memref<16x128xf32, #tpu.memory_space<vmem>>, vector<16x128xf32>
      %c0_95 = arith.constant 0 : index
      %c0_96 = arith.constant 0 : index
      %300 = vector.load %arg12[%c0_95, %c0_96] : memref<16x128xf32, #tpu.memory_space<vmem>>, vector<16x128xf32>
      tpu.vector_store %arg12[%c0_95, %c0_96], %299 {strides = array<i32>} : memref<16x128xf32, #tpu.memory_space<vmem>>, vector<16x128xf32>,
      %c0_97 = arith.constant 0 : index
      %c0_98 = arith.constant 0 : index
      %301 = vector.load %arg7[%c0_97, %c0_98] : memref<16x128xf32, #tpu.memory_space<vmem>>, vector<16x128xf32>
      %c0_99 = arith.constant 0 : index
      %c0_100 = arith.constant 0 : index
      %302 = vector.load %arg13[%c0_99, %c0_100] : memref<16x128xf32, #tpu.memory_space<vmem>>, vector<16x128xf32>
      tpu.vector_store %arg13[%c0_99, %c0_100], %301 {strides = array<i32>} : memref<16x128xf32, #tpu.memory_space<vmem>>, vector<16x128xf32>,
    } else {
    }
    %c0 = arith.constant 0 : index
    %c0_1 = arith.constant 0 : index
    %3 = vector.load %arg3[%c0, %c0_1] : memref<16x512xf32, #tpu.memory_space<vmem>>, vector<16x512xf32>
    %c0_2 = arith.constant 0 : index
    %c0_3 = arith.constant 0 : index
    %4 = vector.load %arg5[%c0_2, %c0_3] : memref<1x512xf32, #tpu.memory_space<vmem>>, vector<1x512xf32>
    %c0_4 = arith.constant 0 : index
    %c0_5 = arith.constant 0 : index
    %c0_6 = arith.constant 0 : index
    %5 = vector.load %arg2[%c0_4, %c0_5, %c0_6] : memref<8x16x16xf32, #tpu.memory_space<vmem>>, vector<4x16x16xf32>
    %6 = vector.shape_cast %5 : vector<4x16x16xf32> to vector<64x16xf32>
    %cst = arith.constant dense<0.000000e+00> : vector<64x512xf32>
    %7 = tpu.matmul %6, %3, %cst {dimension_numbers = #tpu.dot_dimension_numbers<[1], [0], [0], [1], [0, 0, 1, 1], [], []>} : vector<64x16xf32>, vector<16x512xf32>, vector<64x512xf32> -> vector<64x512xf32>
    %8 = vector.broadcast %4 : vector<1x512xf32> to vector<64x512xf32>
    %9 = arith.addf %7, %8 : vector<64x512xf32>
    %10 = vector.shape_cast %9 : vector<64x512xf32> to vector<4x16x512xf32>
    %c0_7 = arith.constant 0 : index
    %c0_8 = arith.constant 0 : index
    %c0_9 = arith.constant 0 : index
    %11 = vector.load %arg11[%c0_7, %c0_8, %c0_9] : memref<8x16x512xf32, #tpu.memory_space<vmem>>, vector<4x16x512xf32>
    tpu.vector_store %arg11[%c0_7, %c0_8, %c0_9], %10 {strides = array<i32>} : memref<8x16x512xf32, #tpu.memory_space<vmem>>, vector<4x16x512xf32>,
    %c4 = arith.constant 4 : index
    %c0_10 = arith.constant 0 : index
    %c0_11 = arith.constant 0 : index
    %12 = vector.load %arg2[%c4, %c0_10, %c0_11] : memref<8x16x16xf32, #tpu.memory_space<vmem>>, vector<4x16x16xf32>
    %13 = vector.shape_cast %12 : vector<4x16x16xf32> to vector<64x16xf32>
    %cst_12 = arith.constant dense<0.000000e+00> : vector<64x512xf32>
    %14 = tpu.matmul %13, %3, %cst_12 {dimension_numbers = #tpu.dot_dimension_numbers<[1], [0], [0], [1], [0, 0, 1, 1], [], []>} : vector<64x16xf32>, vector<16x512xf32>, vector<64x512xf32> -> vector<64x512xf32>
    %15 = vector.broadcast %4 : vector<1x512xf32> to vector<64x512xf32>
    %16 = arith.addf %14, %15 : vector<64x512xf32>
    %17 = vector.shape_cast %16 : vector<64x512xf32> to vector<4x16x512xf32>
    %c4_13 = arith.constant 4 : index
    %c0_14 = arith.constant 0 : index
    %c0_15 = arith.constant 0 : index
    %18 = vector.load %arg11[%c4_13, %c0_14, %c0_15] : memref<8x16x512xf32, #tpu.memory_space<vmem>>, vector<4x16x512xf32>
    tpu.vector_store %arg11[%c4_13, %c0_14, %c0_15], %17 {strides = array<i32>} : memref<8x16x512xf32, #tpu.memory_space<vmem>>, vector<4x16x512xf32>,
    %c0_16 = arith.constant 0 : index
    %c0_17 = arith.constant 0 : index
    %19 = vector.load %arg4[%c0_16, %c0_17] : memref<128x512xf32, #tpu.memory_space<vmem>>, vector<128x512xf32>
    %c0_18 = arith.constant 0 : index
    %c0_19 = arith.constant 0 : index
    %20 = vector.load %arg12[%c0_18, %c0_19] : memref<16x128xf32, #tpu.memory_space<vmem>>, vector<16x128xf32>
    %c0_20 = arith.constant 0 : index
    %c0_21 = arith.constant 0 : index
    %21 = vector.load %arg13[%c0_20, %c0_21] : memref<16x128xf32, #tpu.memory_space<vmem>>, vector<16x128xf32>
    %c0_i32_22 = arith.constant 0 : i32
    %22 = arith.index_cast %c0_i32_22 : i32 to index
    %c0_23 = arith.constant 0 : index
    %c0_24 = arith.constant 0 : index
    %23 = vector.load %arg11[%22, %c0_23, %c0_24] : memref<8x16x512xf32, #tpu.memory_space<vmem>>, vector<1x16x512xf32>
    %24 = vector.shape_cast %23 : vector<1x16x512xf32> to vector<16x512xf32>
    %cst_25 = arith.constant dense<0.000000e+00> : vector<16x512xf32>
    %25 = tpu.matmul %20, %19, %cst_25 {dimension_numbers = #tpu.dot_dimension_numbers<[1], [0], [0], [1], [0, 0, 1, 1], [], []>} : vector<16x128xf32>, vector<128x512xf32>, vector<16x512xf32> -> vector<16x512xf32>
    %26 = arith.addf %24, %25 : vector<16x512xf32>
    %27 = vector.extract_strided_slice %26 {offsets = [0, 0], sizes = [16, 128], strides = [1, 1]} : vector<16x512xf32> to vector<16x128xf32>
    %28 = arith.negf %27 : vector<16x128xf32>
    %29 = math.exp %28 : vector<16x128xf32>
    %cst_26 = arith.constant 1.000000e+00 : f32
    %30 = vector.broadcast %cst_26 : f32 to vector<16x128xf32>
    %31 = arith.addf %30, %29 : vector<16x128xf32>
    %32 = arith.divf %30, %31 : vector<16x128xf32>
    %33 = vector.extract_strided_slice %26 {offsets = [0, 128], sizes = [16, 128], strides = [1, 1]} : vector<16x512xf32> to vector<16x128xf32>
    %34 = arith.negf %33 : vector<16x128xf32>
    %35 = math.exp %34 : vector<16x128xf32>
    %cst_27 = arith.constant 1.000000e+00 : f32
    %36 = vector.broadcast %cst_27 : f32 to vector<16x128xf32>
    %37 = arith.addf %36, %35 : vector<16x128xf32>
    %38 = arith.divf %36, %37 : vector<16x128xf32>
    %39 = vector.extract_strided_slice %26 {offsets = [0, 256], sizes = [16, 128], strides = [1, 1]} : vector<16x512xf32> to vector<16x128xf32>
    %40 = math.tanh %39 : vector<16x128xf32>
    %41 = vector.extract_strided_slice %26 {offsets = [0, 384], sizes = [16, 128], strides = [1, 1]} : vector<16x512xf32> to vector<16x128xf32>
    %42 = arith.negf %41 : vector<16x128xf32>
    %43 = math.exp %42 : vector<16x128xf32>
    %cst_28 = arith.constant 1.000000e+00 : f32
    %44 = vector.broadcast %cst_28 : f32 to vector<16x128xf32>
    %45 = arith.addf %44, %43 : vector<16x128xf32>
    %46 = arith.divf %44, %45 : vector<16x128xf32>
    %47 = arith.mulf %38, %21 : vector<16x128xf32>
    %48 = arith.mulf %32, %40 : vector<16x128xf32>
    %49 = arith.addf %47, %48 : vector<16x128xf32>
    %50 = math.tanh %49 : vector<16x128xf32>
    %51 = arith.mulf %46, %50 : vector<16x128xf32>
    %52 = arith.index_cast %c0_i32_22 : i32 to index
    %c0_29 = arith.constant 0 : index
    %c0_30 = arith.constant 0 : index
    %53 = vector.load %arg8[%52, %c0_29, %c0_30] : memref<8x16x128xf32, #tpu.memory_space<vmem>>, vector<1x16x128xf32>
    %54 = vector.shape_cast %53 : vector<1x16x128xf32> to vector<16x128xf32>
    %55 = vector.shape_cast %51 : vector<16x128xf32> to vector<1x16x128xf32>
    tpu.vector_store %arg8[%52, %c0_29, %c0_30], %55 {strides = array<i32>} : memref<8x16x128xf32, #tpu.memory_space<vmem>>, vector<1x16x128xf32>,
    %c1_i32 = arith.constant 1 : i32
    %56 = arith.index_cast %c1_i32 : i32 to index
    %c0_31 = arith.constant 0 : index
    %c0_32 = arith.constant 0 : index
    %57 = vector.load %arg11[%56, %c0_31, %c0_32] : memref<8x16x512xf32, #tpu.memory_space<vmem>>, vector<1x16x512xf32>
    %58 = vector.shape_cast %57 : vector<1x16x512xf32> to vector<16x512xf32>
    %cst_33 = arith.constant dense<0.000000e+00> : vector<16x512xf32>
    %59 = tpu.matmul %51, %19, %cst_33 {dimension_numbers = #tpu.dot_dimension_numbers<[1], [0], [0], [1], [0, 0, 1, 1], [], []>} : vector<16x128xf32>, vector<128x512xf32>, vector<16x512xf32> -> vector<16x512xf32>
    %60 = arith.addf %58, %59 : vector<16x512xf32>
    %61 = vector.extract_strided_slice %60 {offsets = [0, 0], sizes = [16, 128], strides = [1, 1]} : vector<16x512xf32> to vector<16x128xf32>
    %62 = arith.negf %61 : vector<16x128xf32>
    %63 = math.exp %62 : vector<16x128xf32>
    %cst_34 = arith.constant 1.000000e+00 : f32
    %64 = vector.broadcast %cst_34 : f32 to vector<16x128xf32>
    %65 = arith.addf %64, %63 : vector<16x128xf32>
    %66 = arith.divf %64, %65 : vector<16x128xf32>
    %67 = vector.extract_strided_slice %60 {offsets = [0, 128], sizes = [16, 128], strides = [1, 1]} : vector<16x512xf32> to vector<16x128xf32>
    %68 = arith.negf %67 : vector<16x128xf32>
    %69 = math.exp %68 : vector<16x128xf32>
    %cst_35 = arith.constant 1.000000e+00 : f32
    %70 = vector.broadcast %cst_35 : f32 to vector<16x128xf32>
    %71 = arith.addf %70, %69 : vector<16x128xf32>
    %72 = arith.divf %70, %71 : vector<16x128xf32>
    %73 = vector.extract_strided_slice %60 {offsets = [0, 256], sizes = [16, 128], strides = [1, 1]} : vector<16x512xf32> to vector<16x128xf32>
    %74 = math.tanh %73 : vector<16x128xf32>
    %75 = vector.extract_strided_slice %60 {offsets = [0, 384], sizes = [16, 128], strides = [1, 1]} : vector<16x512xf32> to vector<16x128xf32>
    %76 = arith.negf %75 : vector<16x128xf32>
    %77 = math.exp %76 : vector<16x128xf32>
    %cst_36 = arith.constant 1.000000e+00 : f32
    %78 = vector.broadcast %cst_36 : f32 to vector<16x128xf32>
    %79 = arith.addf %78, %77 : vector<16x128xf32>
    %80 = arith.divf %78, %79 : vector<16x128xf32>
    %81 = arith.mulf %72, %49 : vector<16x128xf32>
    %82 = arith.mulf %66, %74 : vector<16x128xf32>
    %83 = arith.addf %81, %82 : vector<16x128xf32>
    %84 = math.tanh %83 : vector<16x128xf32>
    %85 = arith.mulf %80, %84 : vector<16x128xf32>
    %86 = arith.index_cast %c1_i32 : i32 to index
    %c0_37 = arith.constant 0 : index
    %c0_38 = arith.constant 0 : index
    %87 = vector.load %arg8[%86, %c0_37, %c0_38] : memref<8x16x128xf32, #tpu.memory_space<vmem>>, vector<1x16x128xf32>
    %88 = vector.shape_cast %87 : vector<1x16x128xf32> to vector<16x128xf32>
    %89 = vector.shape_cast %85 : vector<16x128xf32> to vector<1x16x128xf32>
    tpu.vector_store %arg8[%86, %c0_37, %c0_38], %89 {strides = array<i32>} : memref<8x16x128xf32, #tpu.memory_space<vmem>>, vector<1x16x128xf32>,
    %c2_i32 = arith.constant 2 : i32
    %90 = arith.index_cast %c2_i32 : i32 to index
    %c0_39 = arith.constant 0 : index
    %c0_40 = arith.constant 0 : index
    %91 = vector.load %arg11[%90, %c0_39, %c0_40] : memref<8x16x512xf32, #tpu.memory_space<vmem>>, vector<1x16x512xf32>
    %92 = vector.shape_cast %91 : vector<1x16x512xf32> to vector<16x512xf32>
    %cst_41 = arith.constant dense<0.000000e+00> : vector<16x512xf32>
    %93 = tpu.matmul %85, %19, %cst_41 {dimension_numbers = #tpu.dot_dimension_numbers<[1], [0], [0], [1], [0, 0, 1, 1], [], []>} : vector<16x128xf32>, vector<128x512xf32>, vector<16x512xf32> -> vector<16x512xf32>
    %94 = arith.addf %92, %93 : vector<16x512xf32>
    %95 = vector.extract_strided_slice %94 {offsets = [0, 0], sizes = [16, 128], strides = [1, 1]} : vector<16x512xf32> to vector<16x128xf32>
    %96 = arith.negf %95 : vector<16x128xf32>
    %97 = math.exp %96 : vector<16x128xf32>
    %cst_42 = arith.constant 1.000000e+00 : f32
    %98 = vector.broadcast %cst_42 : f32 to vector<16x128xf32>
    %99 = arith.addf %98, %97 : vector<16x128xf32>
    %100 = arith.divf %98, %99 : vector<16x128xf32>
    %101 = vector.extract_strided_slice %94 {offsets = [0, 128], sizes = [16, 128], strides = [1, 1]} : vector<16x512xf32> to vector<16x128xf32>
    %102 = arith.negf %101 : vector<16x128xf32>
    %103 = math.exp %102 : vector<16x128xf32>
    %cst_43 = arith.constant 1.000000e+00 : f32
    %104 = vector.broadcast %cst_43 : f32 to vector<16x128xf32>
    %105 = arith.addf %104, %103 : vector<16x128xf32>
    %106 = arith.divf %104, %105 : vector<16x128xf32>
    %107 = vector.extract_strided_slice %94 {offsets = [0, 256], sizes = [16, 128], strides = [1, 1]} : vector<16x512xf32> to vector<16x128xf32>
    %108 = math.tanh %107 : vector<16x128xf32>
    %109 = vector.extract_strided_slice %94 {offsets = [0, 384], sizes = [16, 128], strides = [1, 1]} : vector<16x512xf32> to vector<16x128xf32>
    %110 = arith.negf %109 : vector<16x128xf32>
    %111 = math.exp %110 : vector<16x128xf32>
    %cst_44 = arith.constant 1.000000e+00 : f32
    %112 = vector.broadcast %cst_44 : f32 to vector<16x128xf32>
    %113 = arith.addf %112, %111 : vector<16x128xf32>
    %114 = arith.divf %112, %113 : vector<16x128xf32>
    %115 = arith.mulf %106, %83 : vector<16x128xf32>
    %116 = arith.mulf %100, %108 : vector<16x128xf32>
    %117 = arith.addf %115, %116 : vector<16x128xf32>
    %118 = math.tanh %117 : vector<16x128xf32>
    %119 = arith.mulf %114, %118 : vector<16x128xf32>
    %120 = arith.index_cast %c2_i32 : i32 to index
    %c0_45 = arith.constant 0 : index
    %c0_46 = arith.constant 0 : index
    %121 = vector.load %arg8[%120, %c0_45, %c0_46] : memref<8x16x128xf32, #tpu.memory_space<vmem>>, vector<1x16x128xf32>
    %122 = vector.shape_cast %121 : vector<1x16x128xf32> to vector<16x128xf32>
    %123 = vector.shape_cast %119 : vector<16x128xf32> to vector<1x16x128xf32>
    tpu.vector_store %arg8[%120, %c0_45, %c0_46], %123 {strides = array<i32>} : memref<8x16x128xf32, #tpu.memory_space<vmem>>, vector<1x16x128xf32>,
    %c3_i32 = arith.constant 3 : i32
    %124 = arith.index_cast %c3_i32 : i32 to index
    %c0_47 = arith.constant 0 : index
    %c0_48 = arith.constant 0 : index
    %125 = vector.load %arg11[%124, %c0_47, %c0_48] : memref<8x16x512xf32, #tpu.memory_space<vmem>>, vector<1x16x512xf32>
    %126 = vector.shape_cast %125 : vector<1x16x512xf32> to vector<16x512xf32>
    %cst_49 = arith.constant dense<0.000000e+00> : vector<16x512xf32>
    %127 = tpu.matmul %119, %19, %cst_49 {dimension_numbers = #tpu.dot_dimension_numbers<[1], [0], [0], [1], [0, 0, 1, 1], [], []>} : vector<16x128xf32>, vector<128x512xf32>, vector<16x512xf32> -> vector<16x512xf32>
    %128 = arith.addf %126, %127 : vector<16x512xf32>
    %129 = vector.extract_strided_slice %128 {offsets = [0, 0], sizes = [16, 128], strides = [1, 1]} : vector<16x512xf32> to vector<16x128xf32>
    %130 = arith.negf %129 : vector<16x128xf32>
    %131 = math.exp %130 : vector<16x128xf32>
    %cst_50 = arith.constant 1.000000e+00 : f32
    %132 = vector.broadcast %cst_50 : f32 to vector<16x128xf32>
    %133 = arith.addf %132, %131 : vector<16x128xf32>
    %134 = arith.divf %132, %133 : vector<16x128xf32>
    %135 = vector.extract_strided_slice %128 {offsets = [0, 128], sizes = [16, 128], strides = [1, 1]} : vector<16x512xf32> to vector<16x128xf32>
    %136 = arith.negf %135 : vector<16x128xf32>
    %137 = math.exp %136 : vector<16x128xf32>
    %cst_51 = arith.constant 1.000000e+00 : f32
    %138 = vector.broadcast %cst_51 : f32 to vector<16x128xf32>
    %139 = arith.addf %138, %137 : vector<16x128xf32>
    %140 = arith.divf %138, %139 : vector<16x128xf32>
    %141 = vector.extract_strided_slice %128 {offsets = [0, 256], sizes = [16, 128], strides = [1, 1]} : vector<16x512xf32> to vector<16x128xf32>
    %142 = math.tanh %141 : vector<16x128xf32>
    %143 = vector.extract_strided_slice %128 {offsets = [0, 384], sizes = [16, 128], strides = [1, 1]} : vector<16x512xf32> to vector<16x128xf32>
    %144 = arith.negf %143 : vector<16x128xf32>
    %145 = math.exp %144 : vector<16x128xf32>
    %cst_52 = arith.constant 1.000000e+00 : f32
    %146 = vector.broadcast %cst_52 : f32 to vector<16x128xf32>
    %147 = arith.addf %146, %145 : vector<16x128xf32>
    %148 = arith.divf %146, %147 : vector<16x128xf32>
    %149 = arith.mulf %140, %117 : vector<16x128xf32>
    %150 = arith.mulf %134, %142 : vector<16x128xf32>
    %151 = arith.addf %149, %150 : vector<16x128xf32>
    %152 = math.tanh %151 : vector<16x128xf32>
    %153 = arith.mulf %148, %152 : vector<16x128xf32>
    %154 = arith.index_cast %c3_i32 : i32 to index
    %c0_53 = arith.constant 0 : index
    %c0_54 = arith.constant 0 : index
    %155 = vector.load %arg8[%154, %c0_53, %c0_54] : memref<8x16x128xf32, #tpu.memory_space<vmem>>, vector<1x16x128xf32>
    %156 = vector.shape_cast %155 : vector<1x16x128xf32> to vector<16x128xf32>
    %157 = vector.shape_cast %153 : vector<16x128xf32> to vector<1x16x128xf32>
    tpu.vector_store %arg8[%154, %c0_53, %c0_54], %157 {strides = array<i32>} : memref<8x16x128xf32, #tpu.memory_space<vmem>>, vector<1x16x128xf32>,
    %c4_i32 = arith.constant 4 : i32
    %158 = arith.index_cast %c4_i32 : i32 to index
    %c0_55 = arith.constant 0 : index
    %c0_56 = arith.constant 0 : index
    %159 = vector.load %arg11[%158, %c0_55, %c0_56] : memref<8x16x512xf32, #tpu.memory_space<vmem>>, vector<1x16x512xf32>
    %160 = vector.shape_cast %159 : vector<1x16x512xf32> to vector<16x512xf32>
    %cst_57 = arith.constant dense<0.000000e+00> : vector<16x512xf32>
    %161 = tpu.matmul %153, %19, %cst_57 {dimension_numbers = #tpu.dot_dimension_numbers<[1], [0], [0], [1], [0, 0, 1, 1], [], []>} : vector<16x128xf32>, vector<128x512xf32>, vector<16x512xf32> -> vector<16x512xf32>
    %162 = arith.addf %160, %161 : vector<16x512xf32>
    %163 = vector.extract_strided_slice %162 {offsets = [0, 0], sizes = [16, 128], strides = [1, 1]} : vector<16x512xf32> to vector<16x128xf32>
    %164 = arith.negf %163 : vector<16x128xf32>
    %165 = math.exp %164 : vector<16x128xf32>
    %cst_58 = arith.constant 1.000000e+00 : f32
    %166 = vector.broadcast %cst_58 : f32 to vector<16x128xf32>
    %167 = arith.addf %166, %165 : vector<16x128xf32>
    %168 = arith.divf %166, %167 : vector<16x128xf32>
    %169 = vector.extract_strided_slice %162 {offsets = [0, 128], sizes = [16, 128], strides = [1, 1]} : vector<16x512xf32> to vector<16x128xf32>
    %170 = arith.negf %169 : vector<16x128xf32>
    %171 = math.exp %170 : vector<16x128xf32>
    %cst_59 = arith.constant 1.000000e+00 : f32
    %172 = vector.broadcast %cst_59 : f32 to vector<16x128xf32>
    %173 = arith.addf %172, %171 : vector<16x128xf32>
    %174 = arith.divf %172, %173 : vector<16x128xf32>
    %175 = vector.extract_strided_slice %162 {offsets = [0, 256], sizes = [16, 128], strides = [1, 1]} : vector<16x512xf32> to vector<16x128xf32>
    %176 = math.tanh %175 : vector<16x128xf32>
    %177 = vector.extract_strided_slice %162 {offsets = [0, 384], sizes = [16, 128], strides = [1, 1]} : vector<16x512xf32> to vector<16x128xf32>
    %178 = arith.negf %177 : vector<16x128xf32>
    %179 = math.exp %178 : vector<16x128xf32>
    %cst_60 = arith.constant 1.000000e+00 : f32
    %180 = vector.broadcast %cst_60 : f32 to vector<16x128xf32>
    %181 = arith.addf %180, %179 : vector<16x128xf32>
    %182 = arith.divf %180, %181 : vector<16x128xf32>
    %183 = arith.mulf %174, %151 : vector<16x128xf32>
    %184 = arith.mulf %168, %176 : vector<16x128xf32>
    %185 = arith.addf %183, %184 : vector<16x128xf32>
    %186 = math.tanh %185 : vector<16x128xf32>
    %187 = arith.mulf %182, %186 : vector<16x128xf32>
    %188 = arith.index_cast %c4_i32 : i32 to index
    %c0_61 = arith.constant 0 : index
    %c0_62 = arith.constant 0 : index
    %189 = vector.load %arg8[%188, %c0_61, %c0_62] : memref<8x16x128xf32, #tpu.memory_space<vmem>>, vector<1x16x128xf32>
    %190 = vector.shape_cast %189 : vector<1x16x128xf32> to vector<16x128xf32>
    %191 = vector.shape_cast %187 : vector<16x128xf32> to vector<1x16x128xf32>
    tpu.vector_store %arg8[%188, %c0_61, %c0_62], %191 {strides = array<i32>} : memref<8x16x128xf32, #tpu.memory_space<vmem>>, vector<1x16x128xf32>,
    %c5_i32 = arith.constant 5 : i32
    %192 = arith.index_cast %c5_i32 : i32 to index
    %c0_63 = arith.constant 0 : index
    %c0_64 = arith.constant 0 : index
    %193 = vector.load %arg11[%192, %c0_63, %c0_64] : memref<8x16x512xf32, #tpu.memory_space<vmem>>, vector<1x16x512xf32>
    %194 = vector.shape_cast %193 : vector<1x16x512xf32> to vector<16x512xf32>
    %cst_65 = arith.constant dense<0.000000e+00> : vector<16x512xf32>
    %195 = tpu.matmul %187, %19, %cst_65 {dimension_numbers = #tpu.dot_dimension_numbers<[1], [0], [0], [1], [0, 0, 1, 1], [], []>} : vector<16x128xf32>, vector<128x512xf32>, vector<16x512xf32> -> vector<16x512xf32>
    %196 = arith.addf %194, %195 : vector<16x512xf32>
    %197 = vector.extract_strided_slice %196 {offsets = [0, 0], sizes = [16, 128], strides = [1, 1]} : vector<16x512xf32> to vector<16x128xf32>
    %198 = arith.negf %197 : vector<16x128xf32>
    %199 = math.exp %198 : vector<16x128xf32>
    %cst_66 = arith.constant 1.000000e+00 : f32
    %200 = vector.broadcast %cst_66 : f32 to vector<16x128xf32>
    %201 = arith.addf %200, %199 : vector<16x128xf32>
    %202 = arith.divf %200, %201 : vector<16x128xf32>
    %203 = vector.extract_strided_slice %196 {offsets = [0, 128], sizes = [16, 128], strides = [1, 1]} : vector<16x512xf32> to vector<16x128xf32>
    %204 = arith.negf %203 : vector<16x128xf32>
    %205 = math.exp %204 : vector<16x128xf32>
    %cst_67 = arith.constant 1.000000e+00 : f32
    %206 = vector.broadcast %cst_67 : f32 to vector<16x128xf32>
    %207 = arith.addf %206, %205 : vector<16x128xf32>
    %208 = arith.divf %206, %207 : vector<16x128xf32>
    %209 = vector.extract_strided_slice %196 {offsets = [0, 256], sizes = [16, 128], strides = [1, 1]} : vector<16x512xf32> to vector<16x128xf32>
    %210 = math.tanh %209 : vector<16x128xf32>
    %211 = vector.extract_strided_slice %196 {offsets = [0, 384], sizes = [16, 128], strides = [1, 1]} : vector<16x512xf32> to vector<16x128xf32>
    %212 = arith.negf %211 : vector<16x128xf32>
    %213 = math.exp %212 : vector<16x128xf32>
    %cst_68 = arith.constant 1.000000e+00 : f32
    %214 = vector.broadcast %cst_68 : f32 to vector<16x128xf32>
    %215 = arith.addf %214, %213 : vector<16x128xf32>
    %216 = arith.divf %214, %215 : vector<16x128xf32>
    %217 = arith.mulf %208, %185 : vector<16x128xf32>
    %218 = arith.mulf %202, %210 : vector<16x128xf32>
    %219 = arith.addf %217, %218 : vector<16x128xf32>
    %220 = math.tanh %219 : vector<16x128xf32>
    %221 = arith.mulf %216, %220 : vector<16x128xf32>
    %222 = arith.index_cast %c5_i32 : i32 to index
    %c0_69 = arith.constant 0 : index
    %c0_70 = arith.constant 0 : index
    %223 = vector.load %arg8[%222, %c0_69, %c0_70] : memref<8x16x128xf32, #tpu.memory_space<vmem>>, vector<1x16x128xf32>
    %224 = vector.shape_cast %223 : vector<1x16x128xf32> to vector<16x128xf32>
    %225 = vector.shape_cast %221 : vector<16x128xf32> to vector<1x16x128xf32>
    tpu.vector_store %arg8[%222, %c0_69, %c0_70], %225 {strides = array<i32>} : memref<8x16x128xf32, #tpu.memory_space<vmem>>, vector<1x16x128xf32>,
    %c6_i32 = arith.constant 6 : i32
    %226 = arith.index_cast %c6_i32 : i32 to index
    %c0_71 = arith.constant 0 : index
    %c0_72 = arith.constant 0 : index
    %227 = vector.load %arg11[%226, %c0_71, %c0_72] : memref<8x16x512xf32, #tpu.memory_space<vmem>>, vector<1x16x512xf32>
    %228 = vector.shape_cast %227 : vector<1x16x512xf32> to vector<16x512xf32>
    %cst_73 = arith.constant dense<0.000000e+00> : vector<16x512xf32>
    %229 = tpu.matmul %221, %19, %cst_73 {dimension_numbers = #tpu.dot_dimension_numbers<[1], [0], [0], [1], [0, 0, 1, 1], [], []>} : vector<16x128xf32>, vector<128x512xf32>, vector<16x512xf32> -> vector<16x512xf32>
    %230 = arith.addf %228, %229 : vector<16x512xf32>
    %231 = vector.extract_strided_slice %230 {offsets = [0, 0], sizes = [16, 128], strides = [1, 1]} : vector<16x512xf32> to vector<16x128xf32>
    %232 = arith.negf %231 : vector<16x128xf32>
    %233 = math.exp %232 : vector<16x128xf32>
    %cst_74 = arith.constant 1.000000e+00 : f32
    %234 = vector.broadcast %cst_74 : f32 to vector<16x128xf32>
    %235 = arith.addf %234, %233 : vector<16x128xf32>
    %236 = arith.divf %234, %235 : vector<16x128xf32>
    %237 = vector.extract_strided_slice %230 {offsets = [0, 128], sizes = [16, 128], strides = [1, 1]} : vector<16x512xf32> to vector<16x128xf32>
    %238 = arith.negf %237 : vector<16x128xf32>
    %239 = math.exp %238 : vector<16x128xf32>
    %cst_75 = arith.constant 1.000000e+00 : f32
    %240 = vector.broadcast %cst_75 : f32 to vector<16x128xf32>
    %241 = arith.addf %240, %239 : vector<16x128xf32>
    %242 = arith.divf %240, %241 : vector<16x128xf32>
    %243 = vector.extract_strided_slice %230 {offsets = [0, 256], sizes = [16, 128], strides = [1, 1]} : vector<16x512xf32> to vector<16x128xf32>
    %244 = math.tanh %243 : vector<16x128xf32>
    %245 = vector.extract_strided_slice %230 {offsets = [0, 384], sizes = [16, 128], strides = [1, 1]} : vector<16x512xf32> to vector<16x128xf32>
    %246 = arith.negf %245 : vector<16x128xf32>
    %247 = math.exp %246 : vector<16x128xf32>
    %cst_76 = arith.constant 1.000000e+00 : f32
    %248 = vector.broadcast %cst_76 : f32 to vector<16x128xf32>
    %249 = arith.addf %248, %247 : vector<16x128xf32>
    %250 = arith.divf %248, %249 : vector<16x128xf32>
    %251 = arith.mulf %242, %219 : vector<16x128xf32>
    %252 = arith.mulf %236, %244 : vector<16x128xf32>
    %253 = arith.addf %251, %252 : vector<16x128xf32>
    %254 = math.tanh %253 : vector<16x128xf32>
    %255 = arith.mulf %250, %254 : vector<16x128xf32>
    %256 = arith.index_cast %c6_i32 : i32 to index
    %c0_77 = arith.constant 0 : index
    %c0_78 = arith.constant 0 : index
    %257 = vector.load %arg8[%256, %c0_77, %c0_78] : memref<8x16x128xf32, #tpu.memory_space<vmem>>, vector<1x16x128xf32>
    %258 = vector.shape_cast %257 : vector<1x16x128xf32> to vector<16x128xf32>
    %259 = vector.shape_cast %255 : vector<16x128xf32> to vector<1x16x128xf32>
    tpu.vector_store %arg8[%256, %c0_77, %c0_78], %259 {strides = array<i32>} : memref<8x16x128xf32, #tpu.memory_space<vmem>>, vector<1x16x128xf32>,
    %c7_i32 = arith.constant 7 : i32
    %260 = arith.index_cast %c7_i32 : i32 to index
    %c0_79 = arith.constant 0 : index
    %c0_80 = arith.constant 0 : index
    %261 = vector.load %arg11[%260, %c0_79, %c0_80] : memref<8x16x512xf32, #tpu.memory_space<vmem>>, vector<1x16x512xf32>
    %262 = vector.shape_cast %261 : vector<1x16x512xf32> to vector<16x512xf32>
    %cst_81 = arith.constant dense<0.000000e+00> : vector<16x512xf32>
    %263 = tpu.matmul %255, %19, %cst_81 {dimension_numbers = #tpu.dot_dimension_numbers<[1], [0], [0], [1], [0, 0, 1, 1], [], []>} : vector<16x128xf32>, vector<128x512xf32>, vector<16x512xf32> -> vector<16x512xf32>
    %264 = arith.addf %262, %263 : vector<16x512xf32>
    %265 = vector.extract_strided_slice %264 {offsets = [0, 0], sizes = [16, 128], strides = [1, 1]} : vector<16x512xf32> to vector<16x128xf32>
    %266 = arith.negf %265 : vector<16x128xf32>
    %267 = math.exp %266 : vector<16x128xf32>
    %cst_82 = arith.constant 1.000000e+00 : f32
    %268 = vector.broadcast %cst_82 : f32 to vector<16x128xf32>
    %269 = arith.addf %268, %267 : vector<16x128xf32>
    %270 = arith.divf %268, %269 : vector<16x128xf32>
    %271 = vector.extract_strided_slice %264 {offsets = [0, 128], sizes = [16, 128], strides = [1, 1]} : vector<16x512xf32> to vector<16x128xf32>
    %272 = arith.negf %271 : vector<16x128xf32>
    %273 = math.exp %272 : vector<16x128xf32>
    %cst_83 = arith.constant 1.000000e+00 : f32
    %274 = vector.broadcast %cst_83 : f32 to vector<16x128xf32>
    %275 = arith.addf %274, %273 : vector<16x128xf32>
    %276 = arith.divf %274, %275 : vector<16x128xf32>
    %277 = vector.extract_strided_slice %264 {offsets = [0, 256], sizes = [16, 128], strides = [1, 1]} : vector<16x512xf32> to vector<16x128xf32>
    %278 = math.tanh %277 : vector<16x128xf32>
    %279 = vector.extract_strided_slice %264 {offsets = [0, 384], sizes = [16, 128], strides = [1, 1]} : vector<16x512xf32> to vector<16x128xf32>
    %280 = arith.negf %279 : vector<16x128xf32>
    %281 = math.exp %280 : vector<16x128xf32>
    %cst_84 = arith.constant 1.000000e+00 : f32
    %282 = vector.broadcast %cst_84 : f32 to vector<16x128xf32>
    %283 = arith.addf %282, %281 : vector<16x128xf32>
    %284 = arith.divf %282, %283 : vector<16x128xf32>
    %285 = arith.mulf %276, %253 : vector<16x128xf32>
    %286 = arith.mulf %270, %278 : vector<16x128xf32>
    %287 = arith.addf %285, %286 : vector<16x128xf32>
    %288 = math.tanh %287 : vector<16x128xf32>
    %289 = arith.mulf %284, %288 : vector<16x128xf32>
    %290 = arith.index_cast %c7_i32 : i32 to index
    %c0_85 = arith.constant 0 : index
    %c0_86 = arith.constant 0 : index
    %291 = vector.load %arg8[%290, %c0_85, %c0_86] : memref<8x16x128xf32, #tpu.memory_space<vmem>>, vector<1x16x128xf32>
    %292 = vector.shape_cast %291 : vector<1x16x128xf32> to vector<16x128xf32>
    %293 = vector.shape_cast %289 : vector<16x128xf32> to vector<1x16x128xf32>
    tpu.vector_store %arg8[%290, %c0_85, %c0_86], %293 {strides = array<i32>} : memref<8x16x128xf32, #tpu.memory_space<vmem>>, vector<1x16x128xf32>,
    %c8_i32 = arith.constant 8 : i32
    %c0_87 = arith.constant 0 : index
    %c0_88 = arith.constant 0 : index
    %294 = vector.load %arg12[%c0_87, %c0_88] : memref<16x128xf32, #tpu.memory_space<vmem>>, vector<16x128xf32>
    tpu.vector_store %arg12[%c0_87, %c0_88], %289 {strides = array<i32>} : memref<16x128xf32, #tpu.memory_space<vmem>>, vector<16x128xf32>,
    %c0_89 = arith.constant 0 : index
    %c0_90 = arith.constant 0 : index
    %295 = vector.load %arg13[%c0_89, %c0_90] : memref<16x128xf32, #tpu.memory_space<vmem>>, vector<16x128xf32>
    tpu.vector_store %arg13[%c0_89, %c0_90], %287 {strides = array<i32>} : memref<16x128xf32, #tpu.memory_space<vmem>>, vector<16x128xf32>,
    %c1_i32_91 = arith.constant 1 : i32
    %296 = arith.cmpi eq, %arg1, %c1_i32_91 : i32
    %297 = arith.extui %296 : i1 to i32
    %c0_i32_92 = arith.constant 0 : i32
    %298 = arith.cmpi ne, %297, %c0_i32_92 : i32
    scf.if %298 {
      %c0_93 = arith.constant 0 : index
      %c0_94 = arith.constant 0 : index
      %299 = vector.load %arg9[%c0_93, %c0_94] : memref<16x128xf32, #tpu.memory_space<vmem>>, vector<16x128xf32>
      tpu.vector_store %arg9[%c0_93, %c0_94], %289 {strides = array<i32>} : memref<16x128xf32, #tpu.memory_space<vmem>>, vector<16x128xf32>,
      %c0_95 = arith.constant 0 : index
      %c0_96 = arith.constant 0 : index
      %300 = vector.load %arg10[%c0_95, %c0_96] : memref<16x128xf32, #tpu.memory_space<vmem>>, vector<16x128xf32>
      tpu.vector_store %arg10[%c0_95, %c0_96], %287 {strides = array<i32>} : memref<16x128xf32, #tpu.memory_space<vmem>>, vector<16x128xf32>,
    } else {
    }
    return
  }
  func.func @transform_0(%arg0: i32, %arg1: i32) -> (i32, i32, i32) {
    %c0_i32 = arith.constant 0 : i32
    %c0_i32_0 = arith.constant 0 : i32
    return %arg1, %arg0, %c0_i32 : i32, i32, i32
  }
  func.func @transform_1(%arg0: i32, %arg1: i32) -> (i32, i32) {
    %c0_i32 = arith.constant 0 : i32
    %c0_i32_0 = arith.constant 0 : i32
    %c0_i32_1 = arith.constant 0 : i32
    return %c0_i32, %c0_i32_0 : i32, i32
  }
  func.func @transform_2(%arg0: i32, %arg1: i32) -> (i32, i32) {
    %c0_i32 = arith.constant 0 : i32
    %c0_i32_0 = arith.constant 0 : i32
    %c0_i32_1 = arith.constant 0 : i32
    return %c0_i32, %c0_i32_0 : i32, i32
  }
  func.func @transform_3(%arg0: i32, %arg1: i32) -> (i32, i32) {
    %c0_i32 = arith.constant 0 : i32
    %c0_i32_0 = arith.constant 0 : i32
    %c0_i32_1 = arith.constant 0 : i32
    return %c0_i32, %c0_i32_0 : i32, i32
  }
  func.func @transform_4(%arg0: i32, %arg1: i32) -> (i32, i32) {
    %c0_i32 = arith.constant 0 : i32
    %c0_i32_0 = arith.constant 0 : i32
    return %arg0, %c0_i32 : i32, i32
  }
  func.func @transform_5(%arg0: i32, %arg1: i32) -> (i32, i32) {
    %c0_i32 = arith.constant 0 : i32
    %c0_i32_0 = arith.constant 0 : i32
    return %arg0, %c0_i32 : i32, i32
  }
  func.func @transform_6(%arg0: i32, %arg1: i32) -> (i32, i32, i32) {
    %c0_i32 = arith.constant 0 : i32
    %c0_i32_0 = arith.constant 0 : i32
    return %arg1, %arg0, %c0_i32 : i32, i32, i32
  }
  func.func @transform_7(%arg0: i32, %arg1: i32) -> (i32, i32) {
    %c0_i32 = arith.constant 0 : i32
    %c0_i32_0 = arith.constant 0 : i32
    return %arg0, %c0_i32 : i32, i32
  }
  func.func @transform_8(%arg0: i32, %arg1: i32) -> (i32, i32) {
    %c0_i32 = arith.constant 0 : i32
    %c0_i32_0 = arith.constant 0 : i32
    return %arg0, %c0_i32 : i32, i32
  }
}

</mosaic_0001>

<bundles_post_ra>
// kernel: tpu_custom_call.1
= control target key start
LH: loop header
LB: loop body
LE: loop exit
PB: predicated region body
PF: predicated region fallthrough
CT: control target
= control target key end

     0   :  { %s5608_s0 = inlined_call_operand.hbm [shape: f32[16,16,16], index: 0, kind: input, shape index: {}]   ;;  %s5609_s1 = inlined_call_operand.hbm [shape: f32[16,512], index: 1, kind: input, shape index: {}]   ;;  %s5610_s2 = inlined_call_operand.hbm [shape: f32[128,512], index: 2, kind: input, shape index: {}]   ;;  %s5611_s3 = inlined_call_operand.hbm [shape: f32[1,512], index: 3, kind: input, shape index: {}]   ;;  %s5612_s4 = inlined_call_operand.hbm [shape: f32[16,128], index: 4, kind: input, shape index: {}]   ;;  %s5613_s5 = inlined_call_operand.vmem [shape: f32[16,128], index: 5, kind: input, shape index: {}]   ;;  %s5614_s6 = inlined_call_operand.hbm [shape: f32[16,16,128], index: 6, kind: output, shape index: {0}]   ;;  %s5615_s7 = inlined_call_operand.hbm [shape: f32[16,128], index: 7, kind: output, shape index: {1}]   ;;  %s5616_s8 = inlined_call_operand.hbm [shape: f32[16,128], index: 8, kind: output, shape index: {2}]  }
   0x1   :  { %5627 = sst [smem:[#allocation25_spill]] %s5614_s6 }
   0x2   :  { %5628 = sst [smem:[#allocation26_spill]] %s5615_s7 }
   0x3   :  { %5629 = sst [smem:[#allocation27_spill]] %s5616_s8 }
   0x4   :  { %14 = vsyncpa [#allocation6], 0 }
   0x5   :  { %16 = vsyncpa [#allocation6 + $0x1], 0 }
   0x6   :  { %17 = vsyncpa [#allocation9], 0 }
   0x7   :  { %18 = vsyncpa [#allocation12], 0 }
   0x8   :  { %19 = vsyncpa [#allocation7], 0 }
   0x9   :  { %21 = vsyncpa [#allocation7 + $0x1], 0 }
   0xa   :  { %22 = vsyncpa [#allocation16], 0  ;;  %s4660_s27 = smov 0   ;;  %s4662_s28 = smov 0  }
   0xb   :  { %s4664_s29 = smov 0   ;;  %s4666_s30 = smov 0  }
   0xc   :  { %s4668_s9 = smov 0   ;;  %s4670_s10 = smov 0  }
   0xd LB: > { %5630 = sst [smem:[#allocation23_spill]] %s4578_s27  ;;  %s3136_s11 = sadd.s32 4294967295, %s4598_s10   ;;  %s4598_s10 = sphi %s4670_s10, %s28_s10   ;;  %s4594_s9 = sphi %s4668_s9, %s5658_s9   ;;  %s4590_s30 = sphi %s4666_s30, %s5657_s30   ;;  %s4586_s29 = sphi %s4664_s29, %s5656_s29   ;;  %s4582_s28 = sphi %s4662_s28, %s5655_s28   ;;  %s4578_s27 = sphi %s4660_s27, %s5654_s27  }
   0xe   : > { %s3137_s12 = sadd.s32 4294967294, %s4598_s10   ;;  %p62_p0 = scmp.ne.s32.totalorder %s4582_s28, %s4578_s27 }
   0xf   : > { %p4694_p1 = scmp.eq.s32.totalorder %s3136_s11, 0  ;;  %p4698_p2 = scmp.eq.s32.totalorder %s3136_s11, 1 }
  0x10   : > { %p209_p3 = scmp.eq.s32.totalorder %s3137_s12, 1  ;;  %p3138_p5 = scmp.ge.s32.totalorder %s4598_s10, 1 }
  0x11   : > { %s5631_s13 = scalar_select %p4694_p1, 1, 0 }
  0x12   : > { %s5632_s14 = scalar_select %p4698_p2, 1, 0 }
  0x13   : > { %p4704_p4 = por %p4694_p1, %p62_p0  ;;  %p4709_p6 = por %p209_p3, %p62_p0 }
  0x14   : > { %p268_p7 = scmp.lt.s32.totalorder %s4598_s10, 3  ;;  %s4600_s18 = smov [#allocation8]  }
  0x15   : > { %s5633_s15 = scalar_select %p4704_p4, 1, 0 }
  0x16   : > { %s5634_s16 = scalar_select %p4709_p6, 1, 0 }
  0x17   : > { %p4714_p8 = pnand %p3138_p5, %p268_p7  ;;  %s280_s19 = sshll.u32 %s4600_s18, 4  ;;  %s4718_s19 = int_to_ptr.vmem [resolvable:$true] %s280_s19 }
  0x18   : > { %5635 = sst [smem:[#allocation24_spill]] %s5634_s16  ;;  %s4601_s21 = smov [#allocation11]  }
  0x19   : > { %s5636_s17 = scalar_select %p4714_p8, 1, 0 }
  0x1a   : > { %p3958_p9 = pneg %p4714_p8  ;;  %s307_s22 = sshll.u32 %s4601_s21, 4  ;;  %s4729_s22 = int_to_ptr.vmem [resolvable:$true] %s307_s22 }
  0x1b   : > { %s4602_s23 = smov [#allocation10]   ;;  %s4310_s11 = scalar_lea.hbm %s5609_s1, 1024 }
  0x1c   : > { %p4725_p11 = pnand %p3958_p9, %p4694_p1  ;;  %s4731_s24 = sshll.u32 %s4602_s23, 4  ;;  %s294_s24 = int_to_ptr.vmem [resolvable:$true] %s4731_s24 }
  0x1d   : > { %p4311_p12 = scmp.ne.s32.totalorder %s5609_s1, %s4310_s11  ;;  %p4317_p5 = scmp.lt.u32.totalorder %s4310_s11, %s5609_s1 }
  0x1e   : > { %p4741_p13 = pneg %p4725_p11 }
  0x20   : > { %p4313_p0 = pnand %p4741_p13, %p4311_p12 }
  0x22   : > { %p4314_p3 = pneg %p4313_p0 }
  0x24   : > { %p4319_p7 = pnand %p4317_p5, %p4314_p3 }
  0x26   : > { %4322 = shalt.err (!%p4319_p7)
}
  0x27   : > { %s4323_s25 = scalar_lea.vmem %s4718_s19, 1024  ;;  %p4331_p1 = scmp.lt.s32.totalorder %s4718_s19, %s4718_s19 }
  0x28   : > { %p4324_p9 = scmp.ne.s32.totalorder %s4718_s19, %s4323_s25  ;;  %p4332_p4 = scmp.lt.s32.totalorder %s4323_s25, %s4323_s25 }
  0x2a   : > { %p4326_p10 = pnand %p4324_p9, %p4741_p13  ;;  %p4333_p12 = por %p4332_p4, %p4331_p1 }
  0x2c   : > { %p4327_p6 = pneg %p4326_p10 }
  0x2e   : > { %p4334_p0 = pnand %p4333_p12, %p4327_p6 }
  0x30   : > { %4337 = shalt.err (!%p4334_p0)
}
  0x31   : > { %s4603_s26 = smov 512   ;;  %s4604_s11 = smov 32  }
  0x32   : > { %3961 = dma.hbm_to_vmem [thread:$0]  (!%p4725_p11), %s5609_s1, 1024, %s4718_s19, [#allocation9], %s4603_s26, %s4603_s26, %s4604_s11  }
  0x33   : > { %s4338_s25 = scalar_lea.hbm %s5611_s3, 64 }
  0x34   : > { %p4339_p1 = scmp.ne.s32.totalorder %s5611_s3, %s4338_s25  ;;  %p4345_p10 = scmp.lt.u32.totalorder %s4338_s25, %s5611_s3 }
  0x36   : > { %p4341_p4 = pnand %p4339_p1, %p4741_p13 }
  0x38   : > { %p4342_p6 = pneg %p4341_p4 }
  0x3a   : > { %p4347_p3 = pnand %p4345_p10, %p4342_p6 }
  0x3c   : > { %4350 = shalt.err (!%p4347_p3)
}
  0x3d   : > { %s4351_s19 = scalar_lea.vmem %s4729_s22, 64  ;;  %p4359_p12 = scmp.lt.s32.totalorder %s4729_s22, %s4729_s22 }
  0x3e   : > { %p4352_p5 = scmp.ne.s32.totalorder %s4729_s22, %s4351_s19  ;;  %p4360_p0 = scmp.lt.s32.totalorder %s4351_s19, %s4351_s19 }
  0x40   : > { %p4354_p7 = pnand %p4352_p5, %p4741_p13  ;;  %p4361_p1 = por %p4360_p0, %p4359_p12 }
  0x42   : > { %p4355_p9 = pneg %p4354_p7 }
  0x44   : > { %p4362_p4 = pnand %p4361_p1, %p4355_p9 }
  0x46   : > { %4365 = shalt.err (!%p4362_p4)
}
  0x47   : > { %3967 = dma.hbm_to_vmem [thread:$0]  (!%p4725_p11), %s5611_s3, 64, %s4729_s22, [#allocation12]  }
  0x48   : > { %s4366_s12 = scalar_lea.hbm %s5610_s2, 8192 }
  0x49   : > { %p4367_p6 = scmp.ne.s32.totalorder %s5610_s2, %s4366_s12  ;;  %p4373_p5 = scmp.lt.u32.totalorder %s4366_s12, %s5610_s2 }
  0x4b   : > { %p4369_p10 = pnand %p4367_p6, %p4741_p13 }
  0x4d   : > { %p4370_p3 = pneg %p4369_p10 }
  0x4f   : > { %p4375_p7 = pnand %p4373_p5, %p4370_p3 }
  0x51   : > { %4378 = shalt.err (!%p4375_p7)
}
  0x52   : > { %s4379_s19 = scalar_lea.vmem %s294_s24, 8192  ;;  %p4387_p1 = scmp.lt.s32.totalorder %s294_s24, %s294_s24 }
  0x53   : > { %p4380_p9 = scmp.ne.s32.totalorder %s294_s24, %s4379_s19  ;;  %p4388_p4 = scmp.lt.s32.totalorder %s4379_s19, %s4379_s19 }
  0x55   : > { %p4382_p12 = pnand %p4380_p9, %p4741_p13  ;;  %p4389_p8 = por %p4388_p4, %p4387_p1 }
  0x57   : > { %p4383_p0 = pneg %p4382_p12 }
  0x59   : > { %p4390_p2 = pnand %p4389_p8, %p4383_p0 }
  0x5b   : > { %4393 = shalt.err (!%p4390_p2)
}
  0x5c   : > { %3964 = dma.hbm_to_vmem [thread:$0]  (!%p4725_p11), %s5610_s2, 8192, %s294_s24, [#allocation9], %s4603_s26, %s4603_s26, %s4604_s11  }
  0x5d   : > { %s4605_s7 = smov [#allocation13]   ;;  %s4394_s18 = scalar_lea.hbm %s5612_s4, 256 }
  0x5e   : > { %s320_s8 = sshll.u32 %s4605_s7, 4  ;;  %p4395_p2 = scmp.ne.s32.totalorder %s5612_s4, %s4394_s18  ;;  %s321_s8 = int_to_ptr.vmem [resolvable:$true] %s320_s8 }
  0x5f   : > { %p4401_p10 = scmp.lt.u32.totalorder %s4394_s18, %s5612_s4 }
  0x60   : > { %p4397_p8 = pnand %p4395_p2, %p4741_p13 }
  0x62   : > { %p4398_p6 = pneg %p4397_p8 }
  0x64   : > { %p4403_p3 = pnand %p4401_p10, %p4398_p6 }
  0x66   : > { %4406 = shalt.err (!%p4403_p3)
}
  0x67   : > { %s4407_s24 = scalar_lea.vmem %s321_s8, 256  ;;  %p4415_p12 = scmp.lt.s32.totalorder %s321_s8, %s321_s8 }
  0x68   : > { %p4408_p5 = scmp.ne.s32.totalorder %s321_s8, %s4407_s24  ;;  %p4416_p0 = scmp.lt.s32.totalorder %s4407_s24, %s4407_s24 }
  0x6a   : > { %p4410_p7 = pnand %p4408_p5, %p4741_p13  ;;  %p4417_p1 = por %p4416_p0, %p4415_p12 }
  0x6c   : > { %p4411_p9 = pneg %p4410_p7 }
  0x6e   : > { %p4418_p4 = pnand %p4417_p1, %p4411_p9 }
  0x70   : > { %4421 = shalt.err (!%p4418_p4)
}
  0x71   : > { %s4606_s26 = smov 128   ;;  %s4607_s16 = smov 8  }
  0x72   : > { %3970 = dma.hbm_to_vmem [thread:$0]  (!%p4725_p11), %s5612_s4, 256, %s321_s8, [#allocation12], %s4606_s26, %s4606_s26, %s4607_s16  }
  0x73   : > { %s37_s6 = sadd.s32 1, %s4594_s9  ;;  %s49_s7 = sadd.s32 1, %s4586_s29 }
  0x74   : > { %p38_p13 = scmp.ge.s32.totalorder %s37_s6, 2  ;;  %p56_p2 = scmp.ne.s32.totalorder %s4586_s29, %s4582_s28 }
  0x75   : > { %p57_p8 = scmp.eq.s32.totalorder %s4598_s10, 0  ;;  %p3983_p6 = scmp.lt.s32.totalorder %s4598_s10, 2 }
  0x76   : > { %s5660_s6 = smov (%p38_p13, %s37_s6), 0  ;;  %p5639_p3 = scmp.ne.s32.totalorder %s5632_s14, 0 }
  0x77   : > { %p58_p10 = por %p57_p8, %p56_p2  ;;  %s44_s27 = ssub.s32 %s4594_s9, %s5660_s6 }
  0x78   : > { %p4841_p5 = por %p5639_p3, %p56_p2  ;;  %s343_s12 = sand.u32 1, %s4586_s29  }
  0x79   : > { %p47_p7 = scmp.eq.s32.totalorder %s44_s27, 0  ;;  %s3145_s8 = sshll.u32 %s343_s12, 7 }
  0x7a   : > { %s3271_s18 = sshll.u32 %s4594_s9, 11  ;;  %s347_s24 = scalar_lea.vmem [#allocation5], %s3145_s8 }
  0x7b   : > { %s4850_s21 = scalar_select %p47_p7, %s4586_s29, %s49_s7  }
  0x7c   : > { %s4855_s19 = scalar_lea.hbm %s5608_s0, %s3271_s18  ;;  %s357_s11 = sshll.u32 %s347_s24, 4  ;;  %s4863_s11 = int_to_ptr.vmem [resolvable:$true] %s357_s11 }
  0x7d   : > { %p4859_p11 = pnand %p3983_p6, %p58_p10  ;;  %s4865_s7 = scalar_lea.sflag [#allocation6], %s343_s12 }
  0x7e   : > { %s4422_s27 = scalar_lea.hbm %s4855_s19, 2048  ;;  %s4427_s23 = scalar_lea.hbm %s5608_s0, 4096 }
  0x7f   : > { %p4423_p9 = scmp.ne.s32.totalorder %s4855_s19, %s4422_s27  ;;  %p4424_p12 = pneg %p4859_p11 }
  0x80   : > { %p4428_p4 = scmp.lt.u32.totalorder %s4855_s19, %s5608_s0  ;;  %p4429_p13 = scmp.lt.u32.totalorder %s4427_s23, %s4422_s27 }
  0x81   : > { %p4425_p0 = pnand %p4424_p12, %p4423_p9  ;;  %p4431_p8 = scmp.lt.u32.totalorder %s4422_s27, %s4855_s19 }
  0x82   : > { %p4430_p2 = por %p4429_p13, %p4428_p4 }
  0x83   : > { %p4426_p1 = pneg %p4425_p0 }
  0x84   : > { %p4432_p6 = por %p4431_p8, %p4430_p2 }
  0x86   : > { %p4433_p10 = pnand %p4432_p6, %p4426_p1 }
  0x88   : > { %4436 = shalt.err (!%p4433_p10)
}
  0x89   : > { %s4437_s12 = scalar_lea.vmem %s4863_s11, 2048  ;;  %s4608_s8 = smov [#allocation5]  }
  0x8a   : > { %p4438_p3 = scmp.ne.s32.totalorder %s4863_s11, %s4437_s12  ;;  %s4442_s18 = sshll.u32 %s4608_s8, 4  ;;  %s4443_s18 = int_to_ptr.vmem [resolvable:$false] %s4442_s18 }
  0x8b   : > { %s4444_s25 = scalar_lea.vmem %s4443_s18, 4096  ;;  %p4445_p0 = scmp.lt.s32.totalorder %s4863_s11, %s4443_s18 }
  0x8c   : > { %p4440_p7 = pnand %p4438_p3, %p4424_p12  ;;  %p4446_p4 = scmp.lt.s32.totalorder %s4444_s25, %s4437_s12 }
  0x8e   : > { %p4441_p9 = pneg %p4440_p7  ;;  %p4447_p13 = por %p4446_p4, %p4445_p0 }
  0x90   : > { %p4448_p2 = pnand %p4447_p13, %p4441_p9 }
  0x92   : > { %4451 = shalt.err (!%p4448_p2)
}
  0x93   : > { %3974 = dma.hbm_to_vmem [thread:$0]  (!%p4859_p11), %s4855_s19, 2048, %s4863_s11, %s4865_s7, %s4606_s26, %s4606_s26, %s4607_s16  }
  0x94   : > { %p5642_p12 = scmp.ne.s32.totalorder %s5636_s17, 0 }
  0x95   : > { %s4899_s27 = sand.u32 (!%p5642_p12), 1, %s4582_s28   ;;  %p5643_p1 = scmp.ne.s32.totalorder (!%p5642_p12), %s5633_s15, 0 }
  0x96   : > { %369 = sbr.rel (%p5642_p12) target bundleno = 2399 (0x95f), region = 44  ;;  %s3150_s23 = sshll.u32 (!%p5642_p12), %s4899_s27, 7 }
  0x97   : > { %s372_s24 = scalar_lea.sflag (!%p5642_p12), [#allocation6], %s4899_s27  ;;  %s4903_s12 = scalar_lea.vmem (!%p5642_p12), [#allocation5], %s3150_s23 }
  0x9d   : > { %4557 = dma.done.wait (%p5643_p1), %s372_s24, 2048  }
  0x9e   : > { %4559 = vsyncadd (%p5643_p1), %s372_s24, 4294965248  ;;  %p5644_p11 = scmp.ne.s32.totalorder %s5631_s13, 0 }
  0xa0   : > { %4561 = dma.done.wait (%p5644_p11), [#allocation9], 9216  }
  0xa1   : > { %4563 = vsyncadd (%p5644_p11), [#allocation9], 4294958080 }
  0xa2   : > { %4565 = dma.done.wait (%p5644_p11), [#allocation12], 320  }
  0xa3   : > { %4567 = vsyncadd (%p5644_p11), [#allocation12], 4294966976  ;;  %s4917_s17 = scalar_lea.vmem [#allocation14], %s3150_s23  ;;  %p3156_p8 = scmp.ne.s32.totalorder %s4590_s30, 0 }
  0xa4   : > { %v446_v0 = vld [vmem:[#allocation13] sm:$0xff] (!%p3156_p8)  ;;  %v447_v1 = vld [vmem:[#allocation13 + $0x8] sm:$0xff] (!%p3156_p8) }
  0xa5   : > { %445 = sbr.rel (%p3156_p8) target bundleno = 172 (0xac), region = 68  ;;  %v450_v2 = vld [vmem:[%s5613_s5] sm:$0xff] (!%p3156_p8)  ;;  %448 = vst [vmem:[#allocation3] sm:$0xff] (!%p3156_p8), %v446_v0  ;;  %449 = vst [vmem:[#allocation3 + $0x8] sm:$0xff] (!%p3156_p8), %v447_v1  ;;  %v451_v3 = vld [vmem:[%s5613_s5 + $0x8] sm:$0xff] (!%p3156_p8) }
  0xa6   : > { %452 = vst [vmem:[#allocation4] sm:$0xff] (!%p3156_p8), %v450_v2  ;;  %453 = vst [vmem:[#allocation4 + $0x8] sm:$0xff] (!%p3156_p8), %v451_v3 }
  0xac PF: > { %v455_v4 = vld [vmem:[#allocation8 + $0x8] sm:$0xff]  ;;  %v457_v6 = vld [vmem:[#allocation8 + $0x18] sm:$0xff]  ;;  %v454_v9 = vld [vmem:[#allocation8] sm:$0xff]  ;;  %v4609_v11 = vmov 0.0   ;;  %vm492_vm0 = vcmask 130048   ;;  %p3259_p6 = scmp.ne.s32.totalorder %s4590_s30, 1 }
  0xad   : > { %v459_v5 = vld [vmem:[#allocation8 + $0x28] sm:$0xff]  ;;  %v461_v8 = vld [vmem:[#allocation8 + $0x38] sm:$0xff]  ;;  %v458_v10 = vld [vmem:[#allocation8 + $0x20] sm:$0xff]  ;;  %581 = vmatprep.mubr.f32.mxu0 %v4609_v11  ;;  %694 = vmatprep.mubr.f32.mxu1 %v4609_v11 }
  0xae   : > { %v3274_v7 = vpack.c.bf16 %v459_v5, %v455_v4  ;;  %v3278_v12 = vpack.c.bf16 %v461_v8, %v457_v6  ;;  %v3276_v13 = vpack.c.bf16 %v458_v10, %v454_v9  ;;  %v456_v14 = vld [vmem:[#allocation8 + $0x10] sm:$0xff]  ;;  %v463_v17 = vld [vmem:[%s4903_s12] sm:$0xff]  ;;  %v1068_v18 = vld [vmem:[#allocation10 + $0x8] sm:$0xff] }
  0xaf   : > { %v460_v15 = vld [vmem:[#allocation8 + $0x30] sm:$0xff]  ;;  %v1072_v19 = vld [vmem:[#allocation10 + $0x28] sm:$0xff]  ;;  %v1070_v20 = vld [vmem:[#allocation10 + $0x18] sm:$0xff] }
  0xb0   : > { %3275 = vmatprep.subr.bf16.mxu0 %v3274_v7  ;;  %v3280_v16 = vpack.c.bf16 %v460_v15, %v456_v14  ;;  %3279 = vmatprep.subr.bf16.mxu1 %v3278_v12  ;;  %v1074_v21 = vld [vmem:[#allocation10 + $0x38] sm:$0xff]  ;;  %v4930_v22 = vpack.c.bf16 %v1072_v19, %v1068_v18  ;;  %v464_v24 = vld [vmem:[%s4903_s12 + $0x8] sm:$0xff]  ;;  %v465_v25 = vld [vmem:[%s4903_s12 + $0x10] sm:$0xff] }
  0xb1   : > { %3277 = vmatpush1.bf16.msra.mxu0 %v3276_v13  ;;  %v4932_v23 = vpack.c.bf16 %v1074_v21, %v1070_v20  ;;  %v466_v26 = vld [vmem:[%s4903_s12 + $0x18] sm:$0xff]  ;;  %v467_v27 = vld [vmem:[%s4903_s12 + $0x20] sm:$0xff]  ;;  %v468_v28 = vld [vmem:[%s4903_s12 + $0x28] sm:$0xff] }
  0xb2   : > { %3281 = vmatpush1.bf16.msra.mxu1 %v3280_v16  ;;  %3283 = vmatprep.subr.bf16.mxu0 %v3274_v7  ;;  %v469_v29 = vld [vmem:[%s4903_s12 + $0x30] sm:$0xff]  ;;  %v470_v30 = vld [vmem:[%s4903_s12 + $0x38] sm:$0xff]  ;;  %v1067_v31 = vld [vmem:[#allocation10] sm:$0xff] }
  0xb3   : > { %3287 = vmatprep.subr.bf16.mxu1 %v3278_v12  ;;  %v1071_v32 = vld [vmem:[#allocation10 + $0x20] sm:$0xff]  ;;  %v1069_v33 = vld [vmem:[#allocation10 + $0x10] sm:$0xff]  ;;  %v1076_v35 = vld [vmem:[#allocation10 + $0x48] sm:$0xff] }
  0xb4   : > { %3157 = vmatmul.mubr.msk.f32.vlgmr.msra.gmra.mrb[0].mxu0 %vm492_vm0, %v463_v17  ;;  %v1073_v34 = vld [vmem:[#allocation10 + $0x30] sm:$0xff]  ;;  %v1080_v36 = vld [vmem:[#allocation10 + $0x68] sm:$0xff]  ;;  %v3173_v37 = vld [vmem:[%s4903_s12 + $0x40] sm:$0xff]  ;;  %v4974_v38 = vpack.c.bf16 %v1071_v32, %v1067_v31 }
  0xb5   : > { %3165 = vmatmul.mubr.msk.f32.vlgmr.msra.gmra.mrb[0].mxu1 %vm492_vm0, %v463_v17  ;;  %3285 = vmatpush1.bf16.msra.mxu0 %v3276_v13  ;;  %v1078_v39 = vld [vmem:[#allocation10 + $0x58] sm:$0xff]  ;;  %v4977_v41 = vpack.c.bf16 %v1073_v34, %v1069_v33  ;;  %v1075_v42 = vld [vmem:[#allocation10 + $0x40] sm:$0xff]  ;;  %v4979_v44 = vpack.c.bf16 %v1080_v36, %v1076_v35  ;;  %v1077_v45 = vld [vmem:[#allocation10 + $0x50] sm:$0xff] }
  0xb6   : > { %587 = vmatprep.mubr.f32.mxu0 %v4609_v11  ;;  %700 = vmatprep.mubr.f32.mxu1 %v4609_v11  ;;  %v1082_v40 = vld [vmem:[#allocation10 + $0x78] sm:$0xff]  ;;  %v1079_v43 = vld [vmem:[#allocation10 + $0x60] sm:$0xff]  ;;  %v1081_v46 = vld [vmem:[#allocation10 + $0x70] sm:$0xff] }
  0xb7   : > { %3289 = vmatpush1.bf16.msra.mxu1 %v3280_v16  ;;  %3291 = vmatprep.subr.bf16.mxu0 %v4930_v22  ;;  %v4982_v47 = vpack.c.bf16 %v1082_v40, %v1078_v39  ;;  %v1084_v48 = vld [vmem:[#allocation10 + $0x88] sm:$0xff]  ;;  %v4987_v51 = vpack.c.bf16 %v1079_v43, %v1075_v42  ;;  %v1086_v52 = vld [vmem:[#allocation10 + $0x98] sm:$0xff]  ;;  %v4991_v54 = vpack.c.bf16 %v1081_v46, %v1077_v45  ;;  %v1083_v55 = vld [vmem:[#allocation10 + $0x80] sm:$0xff] }
  0xb8   : > { %3158 = vmatmul.mubr.msk.f32.gmra.mrb[2].mxu0 %vm492_vm0, %v464_v24  ;;  %3323 = vmatprep.subr.bf16.mxu1 %v4932_v23  ;;  %v1088_v49 = vld [vmem:[#allocation10 + $0xa8] sm:$0xff]  ;;  %v1090_v53 = vld [vmem:[#allocation10 + $0xb8] sm:$0xff]  ;;  %v1087_v56 = vld [vmem:[#allocation10 + $0xa0] sm:$0xff] }
  0xb9   : > { %3166 = vmatmul.mubr.msk.f32.gmra.mrb[2].mxu1 %vm492_vm0, %v464_v24  ;;  %593 = vmatprep.mubr.f32.mxu0 %v4609_v11  ;;  %v3174_v50 = vld [vmem:[%s4903_s12 + $0x48] sm:$0xff]  ;;  %v4995_v57 = vpack.c.bf16 %v1088_v49, %v1084_v48  ;;  %v1085_v58 = vld [vmem:[#allocation10 + $0x90] sm:$0xff]  ;;  %v4999_v60 = vpack.c.bf16 %v1090_v53, %v1086_v52  ;;  %v5004_v0 = vpack.c.bf16 %v1087_v56, %v1083_v55  ;;  %v1094_v1 = vld [vmem:[#allocation10 + $0xd8] sm:$0xff] }
  0xba   : > { %706 = vmatprep.mubr.f32.mxu1 %v4609_v11  ;;  %v1089_v59 = vld [vmem:[#allocation10 + $0xb0] sm:$0xff]  ;;  %v1092_v61 = vld [vmem:[#allocation10 + $0xc8] sm:$0xff]  ;;  %v1098_v2 = vld [vmem:[#allocation10 + $0xf8] sm:$0xff] }
  0xbb   : > { %v1096_v62 = vld [vmem:[#allocation10 + $0xe8] sm:$0xff]  ;;  %v3175_v63 = vld [vmem:[%s4903_s12 + $0x50] sm:$0xff]  ;;  %v5008_v3 = vpack.c.bf16 %v1089_v59, %v1085_v58  ;;  %v1091_v4 = vld [vmem:[#allocation10 + $0xc0] sm:$0xff]  ;;  %v5016_v9 = vpack.c.bf16 %v1098_v2, %v1094_v1 }
  0xbc   : > { %3159 = vmatmul.mubr.msk.f32.gmra.mrb[4].mxu0 %vm492_vm0, %v465_v25  ;;  %v1095_v5 = vld [vmem:[#allocation10 + $0xe0] sm:$0xff]  ;;  %v5012_v6 = vpack.c.bf16 %v1096_v62, %v1092_v61  ;;  %v1093_v7 = vld [vmem:[#allocation10 + $0xd0] sm:$0xff]  ;;  %v1100_v10 = vld [vmem:[#allocation10 + $0x108] sm:$0xff] }
  0xbd   : > { %3167 = vmatmul.mubr.msk.f32.gmra.mrb[4].mxu1 %vm492_vm0, %v465_v25  ;;  %599 = vmatprep.mubr.f32.mxu0 %v4609_v11  ;;  %v1097_v8 = vld [vmem:[#allocation10 + $0xf0] sm:$0xff]  ;;  %v1104_v12 = vld [vmem:[#allocation10 + $0x128] sm:$0xff]  ;;  %v3176_v13 = vld [vmem:[%s4903_s12 + $0x58] sm:$0xff]  ;;  %v5021_v14 = vpack.c.bf16 %v1095_v5, %v1091_v4 }
  0xbe   : > { %712 = vmatprep.mubr.f32.mxu1 %v4609_v11  ;;  %v1102_v15 = vld [vmem:[#allocation10 + $0x118] sm:$0xff]  ;;  %v5025_v17 = vpack.c.bf16 %v1097_v8, %v1093_v7  ;;  %v1099_v18 = vld [vmem:[#allocation10 + $0x100] sm:$0xff]  ;;  %v5029_v20 = vpack.c.bf16 %v1104_v12, %v1100_v10  ;;  %v1101_v21 = vld [vmem:[#allocation10 + $0x110] sm:$0xff] }
  0xbf   : > { %v1106_v16 = vld [vmem:[#allocation10 + $0x138] sm:$0xff]  ;;  %v1103_v19 = vld [vmem:[#allocation10 + $0x120] sm:$0xff]  ;;  %v1105_v24 = vld [vmem:[#allocation10 + $0x130] sm:$0xff] }
  0xc0   : > { %3160 = vmatmul.mubr.msk.f32.gmra.mrb[6].mxu0 %vm492_vm0, %v466_v26  ;;  %v5033_v25 = vpack.c.bf16 %v1106_v16, %v1102_v15  ;;  %v1114_v31 = vld [vmem:[#allocation10 + $0x178] sm:$0xff]  ;;  %v5042_v32 = vpack.c.bf16 %v1105_v24, %v1101_v21  ;;  %v1107_v33 = vld [vmem:[#allocation10 + $0x140] sm:$0xff]  ;;  %v1109_v36 = vld [vmem:[#allocation10 + $0x150] sm:$0xff]  ;;  %v472_v24 = vlaneseq }
  0xc1   : > { %3168 = vmatmul.mubr.msk.f32.gmra.mrb[6].mxu1 %vm492_vm0, %v466_v26  ;;  %605 = vmatprep.mubr.f32.mxu0 %v4609_v11  ;;  %v1108_v26 = vld [vmem:[#allocation10 + $0x148] sm:$0xff]  ;;  %v1111_v34 = vld [vmem:[#allocation10 + $0x160] sm:$0xff]  ;;  %v1118_v46 = vld [vmem:[#allocation10 + $0x198] sm:$0xff] }
  0xc2   : > { %718 = vmatprep.mubr.f32.mxu1 %v4609_v11  ;;  %v1116_v40 = vld [vmem:[#allocation10 + $0x188] sm:$0xff]  ;;  %v5055_v45 = vpack.c.bf16 %v1111_v34, %v1107_v33  ;;  %v1122_v48 = vld [vmem:[#allocation10 + $0x1b8] sm:$0xff]  ;;  %v1119_v52 = vld [vmem:[#allocation10 + $0x1a0] sm:$0xff] }
  0xc3   : > { %v1120_v42 = vld [vmem:[#allocation10 + $0x1a8] sm:$0xff]  ;;  %v1117_v55 = vld [vmem:[#allocation10 + $0x190] sm:$0xff]  ;;  %v5067_v58 = vpack.c.bf16 %v1122_v48, %v1118_v46  ;;  %v1126_v1 = vld [vmem:[#allocation10 + $0x1d8] sm:$0xff] }
  0xc4   : > { %3161 = vmatmul.mubr.msk.f32.gmra.mrb[8].mxu0 %vm492_vm0, %v467_v27  ;;  %v3178_v43 = vld [vmem:[%s4903_s12 + $0x68] sm:$0xff]  ;;  %v5063_v53 = vpack.c.bf16 %v1120_v42, %v1116_v40  ;;  %v1121_v56 = vld [vmem:[#allocation10 + $0x1b0] sm:$0xff]  ;;  %v1130_v2 = vld [vmem:[#allocation10 + $0x1f8] sm:$0xff] }
  0xc5   : > { %3169 = vmatmul.mubr.msk.f32.gmra.mrb[8].mxu1 %vm492_vm0, %v467_v27  ;;  %611 = vmatprep.mubr.f32.mxu0 %v4609_v11  ;;  %v1112_v27 = vld [vmem:[#allocation10 + $0x168] sm:$0xff]  ;;  %v3179_v62 = vld [vmem:[%s4903_s12 + $0x70] sm:$0xff]  ;;  %v5076_v4 = vpack.c.bf16 %v1121_v56, %v1117_v55  ;;  %v1123_v5 = vld [vmem:[#allocation10 + $0x1c0] sm:$0xff] }
  0xc6   : > { %724 = vmatprep.mubr.f32.mxu1 %v4609_v11  ;;  %v5046_v35 = vpack.c.bf16 %v1112_v27, %v1108_v26  ;;  %v1124_v59 = vld [vmem:[#allocation10 + $0x1c8] sm:$0xff]  ;;  %v1127_v7 = vld [vmem:[#allocation10 + $0x1e0] sm:$0xff]  ;;  %v1125_v10 = vld [vmem:[#allocation10 + $0x1d0] sm:$0xff]  ;;  %v473_v26 = vshrl.u32 %v472_v24, 7 }
  0xc7   : > { %v1128_v61 = vld [vmem:[#allocation10 + $0x1e8] sm:$0xff]  ;;  %v1129_v12 = vld [vmem:[#allocation10 + $0x1f0] sm:$0xff]  ;;  %v3180_v15 = vld [vmem:[%s4903_s12 + $0x78] sm:$0xff]  ;;  %v5089_v16 = vpack.c.bf16 %v1127_v7, %v1123_v5 }
  0xc8   : > { %3162 = vmatmul.mubr.msk.f32.gmra.mrb[10].mxu0 %vm492_vm0, %v468_v28  ;;  %v5080_v8 = vpack.c.bf16 %v1128_v61, %v1124_v59  ;;  %v1132_v21 = vld [vmem:[#allocation3 + $0x8] sm:$0xff]  ;;  %v474_v27 = vsub.s32 0, %v473_v26  ;;  %v482_v56 = vsub.s32 2, %v473_v26 }
  0xc9   : > { %3170 = vmatmul.mubr.msk.f32.gmra.mrb[10].mxu1 %vm492_vm0, %v468_v28  ;;  %617 = vmatprep.mubr.f32.mxu0 %v4609_v11  ;;  %v3177_v28 = vld [vmem:[%s4903_s12 + $0x60] sm:$0xff] }
  0xca   : > { %730 = vmatprep.mubr.f32.mxu1 %v4609_v11 }
  0xcc   : > { %3163 = vmatmul.mubr.msk.f32.gmra.mrb[12].mxu0 %vm492_vm0, %v469_v29 }
  0xcd   : > { %3171 = vmatmul.mubr.msk.f32.gmra.mrb[12].mxu1 %vm492_vm0, %v469_v29  ;;  %623 = vmatprep.mubr.f32.mxu0 %v4609_v11  ;;  %v5038_v29 = vpack.c.bf16 %v1103_v19, %v1099_v18  ;;  %v5093_v18 = vpack.c.bf16 %v1129_v12, %v1125_v10  ;;  %v1131_v19 = vld [vmem:[#allocation3] sm:$0xff] }
  0xce   : > { %736 = vmatprep.mubr.f32.mxu1 %v4609_v11 }
  0xd0   : > { %3164 = vmatmul.mubr.msk.f32.gmra.mrb[14].mxu0 %vm492_vm0, %v470_v30 }
  0xd1   : > { %3172 = vmatmul.mubr.msk.f32.gmra.mrb[14].mxu1 %vm492_vm0, %v470_v30  ;;  %872 = vmatprep.mubr.f32.mxu0 %v4609_v11  ;;  %v1110_v30 = vld [vmem:[#allocation10 + $0x158] sm:$0xff] }
  0xd2   : > { %985 = vmatprep.mubr.f32.mxu1 %v4609_v11  ;;  %v5050_v39 = vpack.c.bf16 %v1114_v31, %v1110_v30  ;;  %v478_v30 = vsub.s32 1, %v473_v26 }
  0xd4   : > { %3181 = vmatmul.mubr.msk.f32.vlgmr.msra.gmra.mrb[16].mxu0 %vm492_vm0, %v3173_v37 }
  0xd5   : > { %3189 = vmatmul.mubr.msk.f32.vlgmr.msra.gmra.mrb[16].mxu1 %vm492_vm0, %v3173_v37  ;;  %3293 = vmatpush1.bf16.msra.mxu0 %v4974_v38  ;;  %v1113_v37 = vld [vmem:[#allocation10 + $0x170] sm:$0xff] }
  0xd6   : > { %3325 = vmatpush1.bf16.msra.mxu1 %v4977_v41  ;;  %878 = vmatprep.mubr.f32.mxu0 %v4609_v11  ;;  %v5059_v49 = vpack.c.bf16 %v1113_v37, %v1109_v36  ;;  %v486_v36 = vsub.s32 3, %v473_v26 }
  0xd7   : > { %991 = vmatprep.mubr.f32.mxu1 %v4609_v11  ;;  %3295 = vmatprep.subr.bf16.mxu0 %v4979_v44 }
  0xd8   : > { %3182 = vmatmul.mubr.msk.f32.gmra.mrb[18].mxu0 %vm492_vm0, %v3174_v50  ;;  %3327 = vmatprep.subr.bf16.mxu1 %v4982_v47 }
  0xd9   : > { %3190 = vmatmul.mubr.msk.f32.gmra.mrb[18].mxu1 %vm492_vm0, %v3174_v50  ;;  %3297 = vmatpush1.bf16.msra.mxu0 %v4987_v51  ;;  %v1115_v50 = vld [vmem:[#allocation10 + $0x180] sm:$0xff] }
  0xda   : > { %3329 = vmatpush1.bf16.msra.mxu1 %v4991_v54  ;;  %884 = vmatprep.mubr.f32.mxu0 %v4609_v11 }
  0xdb   : > { %997 = vmatprep.mubr.f32.mxu1 %v4609_v11  ;;  %3299 = vmatprep.subr.bf16.mxu0 %v4995_v57 }
  0xdc   : > { %3183 = vmatmul.mubr.msk.f32.gmra.mrb[20].mxu0 %vm492_vm0, %v3175_v63  ;;  %3331 = vmatprep.subr.bf16.mxu1 %v4999_v60 }
  0xdd   : > { %3191 = vmatmul.mubr.msk.f32.gmra.mrb[20].mxu1 %vm492_vm0, %v3175_v63  ;;  %3301 = vmatpush1.bf16.msra.mxu0 %v5004_v0  ;;  %v5072_v63 = vpack.c.bf16 %v1119_v52, %v1115_v50 }
  0xde   : > { %3333 = vmatpush1.bf16.msra.mxu1 %v5008_v3  ;;  %890 = vmatprep.mubr.f32.mxu0 %v4609_v11 }
  0xdf   : > { %1003 = vmatprep.mubr.f32.mxu1 %v4609_v11  ;;  %3303 = vmatprep.subr.bf16.mxu0 %v5012_v6 }
  0xe0   : > { %3184 = vmatmul.mubr.msk.f32.gmra.mrb[22].mxu0 %vm492_vm0, %v3176_v13  ;;  %3335 = vmatprep.subr.bf16.mxu1 %v5016_v9 }
  0xe1   : > { %3192 = vmatmul.mubr.msk.f32.gmra.mrb[22].mxu1 %vm492_vm0, %v3176_v13  ;;  %3305 = vmatpush1.bf16.msra.mxu0 %v5021_v14  ;;  %v5084_v13 = vpack.c.bf16 %v1130_v2, %v1126_v1 }
  0xe2   : > { %3337 = vmatpush1.bf16.msra.mxu1 %v5025_v17  ;;  %896 = vmatprep.mubr.f32.mxu0 %v4609_v11 }
  0xe3   : > { %1009 = vmatprep.mubr.f32.mxu1 %v4609_v11  ;;  %3307 = vmatprep.subr.bf16.mxu0 %v5029_v20 }
  0xe4   : > { %3185 = vmatmul.mubr.msk.f32.gmra.mrb[24].mxu0 %vm492_vm0, %v3177_v28  ;;  %3339 = vmatprep.subr.bf16.mxu1 %v5033_v25 }
  0xe5   : > { %3193 = vmatmul.mubr.msk.f32.gmra.mrb[24].mxu1 %vm492_vm0, %v3177_v28  ;;  %3309 = vmatpush1.bf16.msra.mxu0 %v5038_v29  ;;  %v462_v28 = vld [vmem:[#allocation11] sm:$0xf] }
  0xe6   : > { %3341 = vmatpush1.bf16.msra.mxu1 %v5042_v32  ;;  %902 = vmatprep.mubr.f32.mxu0 %v4609_v11  ;;  %v5142_v31 = vrot.slane %v462_v28, %v474_v27  ;;  %v5144_v33 = vrot.slane %v462_v28, %v478_v30  ;;  %v5148_v52 = vrot.slane %v462_v28, %v486_v36 }
  0xe7   : > { %1015 = vmatprep.mubr.f32.mxu1 %v4609_v11  ;;  %3311 = vmatprep.subr.bf16.mxu0 %v5046_v35  ;;  %v5153_v12 = vrot.slane %v462_v28, %v482_v56 }
  0xe8   : > { %3186 = vmatmul.mubr.msk.f32.gmra.mrb[26].mxu0 %vm492_vm0, %v3178_v43  ;;  %3343 = vmatprep.subr.bf16.mxu1 %v5050_v39 }
  0xe9   : > { %3194 = vmatmul.mubr.msk.f32.gmra.mrb[26].mxu1 %vm492_vm0, %v3178_v43  ;;  %3313 = vmatpush1.bf16.msra.mxu0 %v5055_v45 }
  0xea   : > { %3345 = vmatpush1.bf16.msra.mxu1 %v5059_v49  ;;  %908 = vmatprep.mubr.f32.mxu0 %v4609_v11 }
  0xeb   : > { %1021 = vmatprep.mubr.f32.mxu1 %v4609_v11  ;;  %3315 = vmatprep.subr.bf16.mxu0 %v5063_v53 }
  0xec   : > { %3187 = vmatmul.mubr.msk.f32.gmra.mrb[28].mxu0 %vm492_vm0, %v3179_v62  ;;  %3347 = vmatprep.subr.bf16.mxu1 %v5067_v58 }
  0xed   : > { %3195 = vmatmul.mubr.msk.f32.gmra.mrb[28].mxu1 %vm492_vm0, %v3179_v62  ;;  %3317 = vmatpush1.bf16.msra.mxu0 %v5072_v63 }
  0xee   : > { %3349 = vmatpush1.bf16.msra.mxu1 %v5076_v4  ;;  %914 = vmatprep.mubr.f32.mxu0 %v4609_v11 }
  0xef   : > { %1027 = vmatprep.mubr.f32.mxu1 %v4609_v11  ;;  %3319 = vmatprep.subr.bf16.mxu0 %v5080_v8 }
  0xf0   : > { %3188 = vmatmul.mubr.msk.f32.gmra.mrb[30].mxu0 %vm492_vm0, %v3180_v15  ;;  %3351 = vmatprep.subr.bf16.mxu1 %v5084_v13 }
  0xf1   : > { %3196 = vmatmul.mubr.msk.f32.gmra.mrb[30].mxu1 %vm492_vm0, %v3180_v15  ;;  %3321 = vmatpush1.bf16.msra.mxu0 %v5089_v16 }
  0xf2   : > { %3353 = vmatpush1.bf16.msra.mxu1 %v5093_v18  ;;  %1207 = vmatprep.mubr.f32.mxu0 %v4609_v11 }
  0xf3   : > { %1284 = vmatprep.mubr.f32.mxu1 %v4609_v11  ;;  %3355 = vmatprep.subr.bf16.mxu0 %v4930_v22 }
  0xf4   : > { %1208 = vmatmul.mubr.f32.vlgmr.msra.gmra.mrb[0].mxu0 %v1131_v19  ;;  %3387 = vmatprep.subr.bf16.mxu1 %v4932_v23 }
  0xf5   : > { %1285 = vmatmul.mubr.f32.vlgmr.msra.gmra.mrb[0].mxu1 %v1131_v19  ;;  %1213 = vmatprep.mubr.f32.mxu0 %v4609_v11 }
  0xf6   : > { %1290 = vmatprep.mubr.f32.mxu1 %v4609_v11  ;;  %3357 = vmatpush1.bf16.msra.mxu0 %v4974_v38 }
  0xf7   : > { %3389 = vmatpush1.bf16.msra.mxu1 %v4977_v41  ;;  %3359 = vmatprep.subr.bf16.mxu0 %v4979_v44 }
  0xf8   : > { %1214 = vmatmul.mubr.f32.gmra.mrb[2].mxu0 %v1132_v21  ;;  %3391 = vmatprep.subr.bf16.mxu1 %v4982_v47 }
  0xf9   : > { %1291 = vmatmul.mubr.f32.gmra.mrb[2].mxu1 %v1132_v21  ;;  %1428 = vmatprep.mubr.f32.mxu0 %v4609_v11 }
  0xfa   : > { %3361 = vmatpush1.bf16.msra.mxu0 %v4987_v51  ;;  %1505 = vmatprep.mubr.f32.mxu1 %v4609_v11 }
  0xfb   : > { %3393 = vmatpush1.bf16.msra.mxu1 %v4991_v54  ;;  %3363 = vmatprep.subr.bf16.mxu0 %v4995_v57 }
  0xfc   : > { %3395 = vmatprep.subr.bf16.mxu1 %v4999_v60 }
  0xfe   : > { %3365 = vmatpush1.bf16.msra.mxu0 %v5004_v0 }
  0xff   : > { %3397 = vmatpush1.bf16.msra.mxu1 %v5008_v3  ;;  %3367 = vmatprep.subr.bf16.mxu0 %v5012_v6 }
 0x100   : > { %3399 = vmatprep.subr.bf16.mxu1 %v5016_v9 }
 0x102   : > { %3369 = vmatpush1.bf16.msra.mxu0 %v5021_v14 }
 0x103   : > { %3401 = vmatpush1.bf16.msra.mxu1 %v5025_v17  ;;  %3371 = vmatprep.subr.bf16.mxu0 %v5029_v20 }
 0x104   : > { %3403 = vmatprep.subr.bf16.mxu1 %v5033_v25 }
 0x106   : > { %3373 = vmatpush1.bf16.msra.mxu0 %v5038_v29 }
 0x107   : > { %3405 = vmatpush1.bf16.msra.mxu1 %v5042_v32  ;;  %3375 = vmatprep.subr.bf16.mxu0 %v5046_v35 }
 0x108   : > { %3407 = vmatprep.subr.bf16.mxu1 %v5050_v39 }
 0x10a   : > { %3377 = vmatpush1.bf16.msra.mxu0 %v5055_v45 }
 0x10b   : > { %3409 = vmatpush1.bf16.msra.mxu1 %v5059_v49  ;;  %3379 = vmatprep.subr.bf16.mxu0 %v5063_v53 }
 0x10c   : > { %3411 = vmatprep.subr.bf16.mxu1 %v5067_v58 }
 0x10e   : > { %3381 = vmatpush1.bf16.msra.mxu0 %v5072_v63 }
 0x10f   : > { %3413 = vmatpush1.bf16.msra.mxu1 %v5076_v4  ;;  %3383 = vmatprep.subr.bf16.mxu0 %v5080_v8 }
 0x110   : > { %3415 = vmatprep.subr.bf16.mxu1 %v5084_v13 }
 0x112   : > { %3385 = vmatpush1.bf16.msra.mxu0 %v5089_v16 }
 0x113   : > { %3417 = vmatpush1.bf16.msra.mxu1 %v5093_v18  ;;  %3419 = vmatprep.subr.bf16.mxu0 %v4930_v22 }
 0x114   : > { %3451 = vmatprep.subr.bf16.mxu1 %v4932_v23 }
 0x1c7   : > { %v1209_v34 = vpop.f32.mrb[0].mxu0 }
 0x1c8   : > { %v3802_v37 = vadd.f32 %v1209_v34, %v5142_v31  ;;  %v1286_v40 = vpop.f32.mrb[0].mxu1  ;;  %v1211_v42 = vpop.f32.mrb[1].mxu0 }
 0x1c9   : > { %v3803_v43 = vadd.f32 %v1211_v42, %v5144_v33  ;;  %v1288_v46 = vpop.f32.mrb[1].mxu1  ;;  %v3818_v21 = vadd.f32 %v1286_v40, %v5153_v12 }
 0x1ca   : > { %v3197_v48 = vmul.f32 -1.442695, %v3802_v37  ;;  %v3819_v7 = vadd.f32 %v1288_v46, %v5148_v52 }
 0x1cb   : > { %v3199_v50 = vmul.f32 -1.442695, %v3803_v43  ;;  %v1215_v55 = vpop.f32.mrb[2].mxu0 }
 0x1cc   : > { %4054 = vpow2.f32 %v3197_v48  ;;  %v3804_v59 = vadd.f32 %v1215_v55, %v5142_v31  ;;  %v1292_v61 = vpop.f32.mrb[2].mxu1  ;;  %v1217_v62 = vpop.f32.mrb[3].mxu0  ;;  %v3201_v15 = vmul.f32 -1.442695, %v3819_v7  ;;  %v1133_v48 = vld [vmem:[#allocation4] sm:$0xff] }
 0x1cd   : > { %4056 = vpow2.f32 %v3199_v50  ;;  %v3805_v1 = vadd.f32 %v1217_v62, %v5144_v33  ;;  %v1294_v2 = vpop.f32.mrb[3].mxu1  ;;  %v3820_v36 = vadd.f32 %v1292_v61, %v5153_v12 }
 0x1ce   : > { %v3198_v5 = vmul.f32 -1.442695, %v3804_v59  ;;  %v3821_v19 = vadd.f32 %v1294_v2, %v5148_v52  ;;  %v1134_v2 = vld [vmem:[#allocation4 + $0x8] sm:$0xff] }
 0x1cf   : > { %v3200_v10 = vmul.f32 -1.442695, %v3805_v1 }
 0x1d0   : > { %4058 = vpow2.f32 %v3198_v5  ;;  %v3202_v30 = vmul.f32 -1.442695, %v3821_v19 }
 0x1d1   : > { %4060 = vpow2.f32 %v3200_v10 }
 0x1d2   : > { %4062 = vpow2.f32 %v3201_v15 }
 0x1d3   : > { %4064 = vtanh.f32 %v3818_v21 }
 0x1d6   : > { %v4055_v24 = vpop.eup %4054 }
 0x1d7   : > { %v4057_v26 = vpop.eup %4056  ;;  %v1311_v27 = vadd.f32 1.0, %v4055_v24 }
 0x1d8   : > { %v1323_v34 = vadd.f32 1.0, %v4057_v26 }
 0x1d9   : > { %4066 = vrcp.f32 %v1311_v27 }
 0x1da   : > { %v4059_v37 = vpop.eup %4058  ;;  %4068 = vrcp.f32 %v1323_v34 }
 0x1db   : > { %v4061_v28 = vpop.eup %4060  ;;  %v1312_v42 = vadd.f32 1.0, %v4059_v37  ;;  %4070 = vpow2.f32 %v3202_v30 }
 0x1dc   : > { %4072 = vtanh.f32 %v3820_v36  ;;  %v1324_v43 = vadd.f32 1.0, %v4061_v28  ;;  %v4063_v40 = vpop.eup %4062 }
 0x1dd   : > { %4074 = vrcp.f32 %v1312_v42  ;;  %v4065_v46 = vpop.eup %4064  ;;  %v1337_v59 = vadd.f32 1.0, %v4063_v40 }
 0x1de   : > { %4076 = vrcp.f32 %v1324_v43 }
 0x1df   : > { %4078 = vrcp.f32 %v1337_v59 }
 0x1e3   : > { %v4067_v50 = vpop.eup %4066 }
 0x1e4   : > { %v4069_v55 = vpop.eup %4068  ;;  %v1345_v56 = vmul.f32 %v4067_v50, %v4065_v46 }
 0x1e5   : > { %v4071_v62 = vpop.eup %4070  ;;  %v1343_v1 = vmul.f32 %v4069_v55, %v1133_v48 }
 0x1e6   : > { %v4073_v61 = vpop.eup %4072  ;;  %v1338_v19 = vadd.f32 1.0, %v4071_v62 }
 0x1e7   : > { %v4075_v5 = vpop.eup %4074  ;;  %v5158_v7 = vadd.f32 %v1345_v56, %v1343_v1 }
 0x1e8   : > { %v4077_v10 = vpop.eup %4076  ;;  %v1346_v15 = vmul.f32 %v4075_v5, %v4073_v61 }
 0x1e9   : > { %4080 = vtanh.f32 %v5158_v7  ;;  %v1344_v21 = vmul.f32 %v4077_v10, %v1134_v2  ;;  %v4079_v26 = vpop.eup %4078 }
 0x1ea   : > { %4082 = vrcp.f32 %v1338_v19 }
 0x1eb   : > { %v5161_v24 = vadd.f32 %v1346_v15, %v1344_v21 }
 0x1ed   : > { %4084 = vtanh.f32 %v5161_v24 }
 0x1f3   : > { %v4081_v27 = vpop.eup %4080 }
 0x1f4   : > { %v1351_v30 = vmul.f32 %v4081_v27, %v4079_v26  ;;  %v4083_v34 = vpop.eup %4082 }
 0x1f6   : > { %1353 = vst [vmem:[%s4917_s17] sm:$0xff] %v1351_v30  ;;  %1429 = vmatmul.mubr.f32.vlgmr.msra.gmra.mrb[4].mxu0 %v1351_v30  ;;  %1506 = vmatmul.mubr.f32.vlgmr.msra.gmra.mrb[4].mxu1 %v1351_v30 }
 0x1f7   : > { %v4085_v36 = vpop.eup %4084  ;;  %1434 = vmatprep.mubr.f32.mxu0 %v4609_v11  ;;  %1511 = vmatprep.mubr.f32.mxu1 %v4609_v11 }
 0x1f8   : > { %v1352_v37 = vmul.f32 %v4085_v36, %v4083_v34  ;;  %3421 = vmatpush1.bf16.msra.mxu0 %v4974_v38  ;;  %3453 = vmatpush1.bf16.msra.mxu1 %v4977_v41 }
 0x1f9   : > { %3423 = vmatprep.subr.bf16.mxu0 %v4979_v44  ;;  %3455 = vmatprep.subr.bf16.mxu1 %v4982_v47 }
 0x1fa   : > { %1354 = vst [vmem:[%s4917_s17 + $0x8] sm:$0xff] %v1352_v37  ;;  %1435 = vmatmul.mubr.f32.gmra.mrb[6].mxu0 %v1352_v37  ;;  %1512 = vmatmul.mubr.f32.gmra.mrb[6].mxu1 %v1352_v37 }
 0x1fb   : > { %1650 = vmatprep.mubr.f32.mxu0 %v4609_v11  ;;  %1727 = vmatprep.mubr.f32.mxu1 %v4609_v11 }
 0x1fc   : > { %3425 = vmatpush1.bf16.msra.mxu0 %v4987_v51  ;;  %3457 = vmatpush1.bf16.msra.mxu1 %v4991_v54 }
 0x1fd   : > { %3427 = vmatprep.subr.bf16.mxu0 %v4995_v57  ;;  %3459 = vmatprep.subr.bf16.mxu1 %v4999_v60 }
 0x200   : > { %3429 = vmatpush1.bf16.msra.mxu0 %v5004_v0  ;;  %3461 = vmatpush1.bf16.msra.mxu1 %v5008_v3 }
 0x201   : > { %3431 = vmatprep.subr.bf16.mxu0 %v5012_v6  ;;  %3463 = vmatprep.subr.bf16.mxu1 %v5016_v9 }
 0x204   : > { %3433 = vmatpush1.bf16.msra.mxu0 %v5021_v14  ;;  %3465 = vmatpush1.bf16.msra.mxu1 %v5025_v17 }
 0x205   : > { %3435 = vmatprep.subr.bf16.mxu0 %v5029_v20  ;;  %3467 = vmatprep.subr.bf16.mxu1 %v5033_v25 }
 0x208   : > { %3437 = vmatpush1.bf16.msra.mxu0 %v5038_v29  ;;  %3469 = vmatpush1.bf16.msra.mxu1 %v5042_v32 }
 0x209   : > { %3439 = vmatprep.subr.bf16.mxu0 %v5046_v35  ;;  %3471 = vmatprep.subr.bf16.mxu1 %v5050_v39 }
 0x20c   : > { %3441 = vmatpush1.bf16.msra.mxu0 %v5055_v45  ;;  %3473 = vmatpush1.bf16.msra.mxu1 %v5059_v49 }
 0x20d   : > { %3443 = vmatprep.subr.bf16.mxu0 %v5063_v53  ;;  %3475 = vmatprep.subr.bf16.mxu1 %v5067_v58 }
 0x210   : > { %3445 = vmatpush1.bf16.msra.mxu0 %v5072_v63  ;;  %3477 = vmatpush1.bf16.msra.mxu1 %v5076_v4 }
 0x211   : > { %3447 = vmatprep.subr.bf16.mxu0 %v5080_v8  ;;  %3479 = vmatprep.subr.bf16.mxu1 %v5084_v13 }
 0x214   : > { %3449 = vmatpush1.bf16.msra.mxu0 %v5089_v16  ;;  %3481 = vmatpush1.bf16.msra.mxu1 %v5093_v18 }
 0x215   : > { %3483 = vmatprep.subr.bf16.mxu0 %v4930_v22  ;;  %3515 = vmatprep.subr.bf16.mxu1 %v4932_v23 }
 0x2c9   : > { %v1430_v28 = vpop.f32.mrb[4].mxu0  ;;  %v1507_v42 = vpop.f32.mrb[4].mxu1 }
 0x2ca   : > { %v3806_v43 = vadd.f32 %v1430_v28, %v5142_v31  ;;  %v1432_v40 = vpop.f32.mrb[5].mxu0  ;;  %v1509_v46 = vpop.f32.mrb[5].mxu1  ;;  %v3822_v26 = vadd.f32 %v1507_v42, %v5153_v12 }
 0x2cb   : > { %v3807_v48 = vadd.f32 %v1432_v40, %v5144_v33  ;;  %v3823_v10 = vadd.f32 %v1509_v46, %v5148_v52 }
 0x2cc   : > { %v3203_v50 = vmul.f32 -1.442695, %v3806_v43 }
 0x2cd   : > { %v3205_v55 = vmul.f32 -1.442695, %v3807_v48  ;;  %v1436_v56 = vpop.f32.mrb[6].mxu0  ;;  %v1513_v59 = vpop.f32.mrb[6].mxu1  ;;  %v3207_v19 = vmul.f32 -1.442695, %v3823_v10 }
 0x2ce   : > { %4086 = vpow2.f32 %v3203_v50  ;;  %v3808_v62 = vadd.f32 %v1436_v56, %v5142_v31  ;;  %v1438_v1 = vpop.f32.mrb[7].mxu0  ;;  %v1515_v61 = vpop.f32.mrb[7].mxu1  ;;  %v3824_v28 = vadd.f32 %v1513_v59, %v5153_v12 }
 0x2cf   : > { %4088 = vpow2.f32 %v3205_v55  ;;  %v3809_v2 = vadd.f32 %v1438_v1, %v5144_v33  ;;  %v3825_v21 = vadd.f32 %v1515_v61, %v5148_v52 }
 0x2d0   : > { %v3204_v5 = vmul.f32 -1.442695, %v3808_v62 }
 0x2d1   : > { %v3206_v15 = vmul.f32 -1.442695, %v3809_v2  ;;  %v3208_v36 = vmul.f32 -1.442695, %v3825_v21 }
 0x2d2   : > { %4090 = vpow2.f32 %v3204_v5 }
 0x2d3   : > { %4092 = vpow2.f32 %v3206_v15 }
 0x2d4   : > { %4094 = vpow2.f32 %v3207_v19 }
 0x2d5   : > { %4096 = vtanh.f32 %v3822_v26 }
 0x2d8   : > { %v4087_v27 = vpop.eup %4086 }
 0x2d9   : > { %v4089_v30 = vpop.eup %4088  ;;  %v1532_v34 = vadd.f32 1.0, %v4087_v27 }
 0x2da   : > { %v1544_v37 = vadd.f32 1.0, %v4089_v30 }
 0x2db   : > { %4098 = vrcp.f32 %v1532_v34 }
 0x2dc   : > { %v4091_v43 = vpop.eup %4090  ;;  %4100 = vrcp.f32 %v1544_v37 }
 0x2dd   : > { %v4093_v40 = vpop.eup %4092  ;;  %v1533_v46 = vadd.f32 1.0, %v4091_v43  ;;  %4102 = vpow2.f32 %v3208_v36 }
 0x2de   : > { %4104 = vtanh.f32 %v3824_v28  ;;  %v1545_v48 = vadd.f32 1.0, %v4093_v40  ;;  %v4095_v42 = vpop.eup %4094 }
 0x2df   : > { %4106 = vrcp.f32 %v1533_v46  ;;  %v4097_v50 = vpop.eup %4096  ;;  %v1558_v1 = vadd.f32 1.0, %v4095_v42 }
 0x2e0   : > { %4108 = vrcp.f32 %v1545_v48 }
 0x2e1   : > { %4110 = vrcp.f32 %v1558_v1 }
 0x2e5   : > { %v4099_v55 = vpop.eup %4098 }
 0x2e6   : > { %v4101_v56 = vpop.eup %4100  ;;  %v1566_v62 = vmul.f32 %v4099_v55, %v4097_v50 }
 0x2e7   : > { %v4103_v61 = vpop.eup %4102  ;;  %v1564_v2 = vmul.f32 %v4101_v56, %v5158_v7 }
 0x2e8   : > { %v4105_v59 = vpop.eup %4104  ;;  %v1559_v21 = vadd.f32 1.0, %v4103_v61 }
 0x2e9   : > { %v4107_v5 = vpop.eup %4106  ;;  %v5211_v10 = vadd.f32 %v1566_v62, %v1564_v2 }
 0x2ea   : > { %v4109_v15 = vpop.eup %4108  ;;  %v1567_v19 = vmul.f32 %v4107_v5, %v4105_v59 }
 0x2eb   : > { %4112 = vtanh.f32 %v5211_v10  ;;  %v1565_v26 = vmul.f32 %v4109_v15, %v5161_v24  ;;  %v4111_v7 = vpop.eup %4110 }
 0x2ec   : > { %4114 = vrcp.f32 %v1559_v21 }
 0x2ed   : > { %v5215_v27 = vadd.f32 %v1567_v19, %v1565_v26 }
 0x2ef   : > { %4116 = vtanh.f32 %v5215_v27 }
 0x2f5   : > { %v4113_v30 = vpop.eup %4112 }
 0x2f6   : > { %v1572_v34 = vmul.f32 %v4113_v30, %v4111_v7  ;;  %v4115_v36 = vpop.eup %4114 }
 0x2f8   : > { %3209 = vst [vmem:[%s4917_s17 + $0x10] sm:$0xff] %v1572_v34  ;;  %1651 = vmatmul.mubr.f32.vlgmr.msra.gmra.mrb[8].mxu0 %v1572_v34  ;;  %1728 = vmatmul.mubr.f32.vlgmr.msra.gmra.mrb[8].mxu1 %v1572_v34 }
 0x2f9   : > { %v4117_v37 = vpop.eup %4116  ;;  %1656 = vmatprep.mubr.f32.mxu0 %v4609_v11  ;;  %1733 = vmatprep.mubr.f32.mxu1 %v4609_v11 }
 0x2fa   : > { %v1573_v28 = vmul.f32 %v4117_v37, %v4115_v36  ;;  %3485 = vmatpush1.bf16.msra.mxu0 %v4974_v38  ;;  %3517 = vmatpush1.bf16.msra.mxu1 %v4977_v41 }
 0x2fb   : > { %3487 = vmatprep.subr.bf16.mxu0 %v4979_v44  ;;  %3519 = vmatprep.subr.bf16.mxu1 %v4982_v47 }
 0x2fc   : > { %3210 = vst [vmem:[%s4917_s17 + $0x18] sm:$0xff] %v1573_v28  ;;  %1657 = vmatmul.mubr.f32.gmra.mrb[10].mxu0 %v1573_v28  ;;  %1734 = vmatmul.mubr.f32.gmra.mrb[10].mxu1 %v1573_v28 }
 0x2fd   : > { %1872 = vmatprep.mubr.f32.mxu0 %v4609_v11  ;;  %1949 = vmatprep.mubr.f32.mxu1 %v4609_v11 }
 0x2fe   : > { %3489 = vmatpush1.bf16.msra.mxu0 %v4987_v51  ;;  %3521 = vmatpush1.bf16.msra.mxu1 %v4991_v54 }
 0x2ff   : > { %3491 = vmatprep.subr.bf16.mxu0 %v4995_v57  ;;  %3523 = vmatprep.subr.bf16.mxu1 %v4999_v60 }
 0x302   : > { %3493 = vmatpush1.bf16.msra.mxu0 %v5004_v0  ;;  %3525 = vmatpush1.bf16.msra.mxu1 %v5008_v3 }
 0x303   : > { %3495 = vmatprep.subr.bf16.mxu0 %v5012_v6  ;;  %3527 = vmatprep.subr.bf16.mxu1 %v5016_v9 }
 0x306   : > { %3497 = vmatpush1.bf16.msra.mxu0 %v5021_v14  ;;  %3529 = vmatpush1.bf16.msra.mxu1 %v5025_v17 }
 0x307   : > { %3499 = vmatprep.subr.bf16.mxu0 %v5029_v20  ;;  %3531 = vmatprep.subr.bf16.mxu1 %v5033_v25 }
 0x30a   : > { %3501 = vmatpush1.bf16.msra.mxu0 %v5038_v29  ;;  %3533 = vmatpush1.bf16.msra.mxu1 %v5042_v32 }
 0x30b   : > { %3503 = vmatprep.subr.bf16.mxu0 %v5046_v35  ;;  %3535 = vmatprep.subr.bf16.mxu1 %v5050_v39 }
 0x30e   : > { %3505 = vmatpush1.bf16.msra.mxu0 %v5055_v45  ;;  %3537 = vmatpush1.bf16.msra.mxu1 %v5059_v49 }
 0x30f   : > { %3507 = vmatprep.subr.bf16.mxu0 %v5063_v53  ;;  %3539 = vmatprep.subr.bf16.mxu1 %v5067_v58 }
 0x312   : > { %3509 = vmatpush1.bf16.msra.mxu0 %v5072_v63  ;;  %3541 = vmatpush1.bf16.msra.mxu1 %v5076_v4 }
 0x313   : > { %3511 = vmatprep.subr.bf16.mxu0 %v5080_v8  ;;  %3543 = vmatprep.subr.bf16.mxu1 %v5084_v13 }
 0x316   : > { %3513 = vmatpush1.bf16.msra.mxu0 %v5089_v16  ;;  %3545 = vmatpush1.bf16.msra.mxu1 %v5093_v18 }
 0x317   : > { %3547 = vmatprep.subr.bf16.mxu0 %v4930_v22  ;;  %3579 = vmatprep.subr.bf16.mxu1 %v4932_v23 }
 0x3cb   : > { %v1652_v24 = vpop.f32.mrb[8].mxu0  ;;  %v1729_v43 = vpop.f32.mrb[8].mxu1 }
 0x3cc   : > { %v3810_v40 = vadd.f32 %v1652_v24, %v5142_v31  ;;  %v1654_v46 = vpop.f32.mrb[9].mxu0  ;;  %v1731_v48 = vpop.f32.mrb[9].mxu1  ;;  %v3826_v7 = vadd.f32 %v1729_v43, %v5153_v12 }
 0x3cd   : > { %v3811_v42 = vadd.f32 %v1654_v46, %v5144_v33  ;;  %v3827_v15 = vadd.f32 %v1731_v48, %v5148_v52 }
 0x3ce   : > { %v3211_v50 = vmul.f32 -1.442695, %v3810_v40 }
 0x3cf   : > { %v3213_v55 = vmul.f32 -1.442695, %v3811_v42  ;;  %v1658_v56 = vpop.f32.mrb[10].mxu0  ;;  %v1735_v62 = vpop.f32.mrb[10].mxu1  ;;  %v3215_v21 = vmul.f32 -1.442695, %v3827_v15 }
 0x3d0   : > { %4118 = vpow2.f32 %v3211_v50  ;;  %v3812_v1 = vadd.f32 %v1658_v56, %v5142_v31  ;;  %v1660_v61 = vpop.f32.mrb[11].mxu0  ;;  %v1737_v2 = vpop.f32.mrb[11].mxu1  ;;  %v3828_v24 = vadd.f32 %v1735_v62, %v5153_v12 }
 0x3d1   : > { %4120 = vpow2.f32 %v3213_v55  ;;  %v3813_v59 = vadd.f32 %v1660_v61, %v5144_v33  ;;  %v3829_v26 = vadd.f32 %v1737_v2, %v5148_v52 }
 0x3d2   : > { %v3212_v5 = vmul.f32 -1.442695, %v3812_v1 }
 0x3d3   : > { %v3214_v19 = vmul.f32 -1.442695, %v3813_v59  ;;  %v3216_v37 = vmul.f32 -1.442695, %v3829_v26 }
 0x3d4   : > { %4122 = vpow2.f32 %v3212_v5 }
 0x3d5   : > { %4124 = vpow2.f32 %v3214_v19 }
 0x3d6   : > { %4126 = vpow2.f32 %v3215_v21 }
 0x3d7   : > { %4128 = vtanh.f32 %v3826_v7 }
 0x3da   : > { %v4119_v30 = vpop.eup %4118 }
 0x3db   : > { %v4121_v34 = vpop.eup %4120  ;;  %v1754_v36 = vadd.f32 1.0, %v4119_v30 }
 0x3dc   : > { %v1766_v28 = vadd.f32 1.0, %v4121_v34 }
 0x3dd   : > { %4130 = vrcp.f32 %v1754_v36 }
 0x3de   : > { %v4123_v40 = vpop.eup %4122  ;;  %4132 = vrcp.f32 %v1766_v28 }
 0x3df   : > { %v4125_v46 = vpop.eup %4124  ;;  %v1755_v48 = vadd.f32 1.0, %v4123_v40  ;;  %4134 = vpow2.f32 %v3216_v37 }
 0x3e0   : > { %4136 = vtanh.f32 %v3828_v24  ;;  %v1767_v42 = vadd.f32 1.0, %v4125_v46  ;;  %v4127_v43 = vpop.eup %4126 }
 0x3e1   : > { %4138 = vrcp.f32 %v1755_v48  ;;  %v4129_v50 = vpop.eup %4128  ;;  %v1780_v61 = vadd.f32 1.0, %v4127_v43 }
 0x3e2   : > { %4140 = vrcp.f32 %v1767_v42 }
 0x3e3   : > { %4142 = vrcp.f32 %v1780_v61 }
 0x3e7   : > { %v4131_v55 = vpop.eup %4130 }
 0x3e8   : > { %v4133_v56 = vpop.eup %4132  ;;  %v1788_v1 = vmul.f32 %v4131_v55, %v4129_v50 }
 0x3e9   : > { %v4135_v2 = vpop.eup %4134  ;;  %v1786_v59 = vmul.f32 %v4133_v56, %v5211_v10 }
 0x3ea   : > { %v4137_v62 = vpop.eup %4136  ;;  %v1781_v26 = vadd.f32 1.0, %v4135_v2 }
 0x3eb   : > { %v4139_v5 = vpop.eup %4138  ;;  %v5265_v15 = vadd.f32 %v1788_v1, %v1786_v59 }
 0x3ec   : > { %v4141_v19 = vpop.eup %4140  ;;  %v1789_v21 = vmul.f32 %v4139_v5, %v4137_v62 }
 0x3ed   : > { %4144 = vtanh.f32 %v5265_v15  ;;  %v1787_v7 = vmul.f32 %v4141_v19, %v5215_v27  ;;  %v4143_v10 = vpop.eup %4142 }
 0x3ee   : > { %4146 = vrcp.f32 %v1781_v26 }
 0x3ef   : > { %v5269_v30 = vadd.f32 %v1789_v21, %v1787_v7 }
 0x3f1   : > { %4148 = vtanh.f32 %v5269_v30 }
 0x3f7   : > { %v4145_v34 = vpop.eup %4144 }
 0x3f8   : > { %v1794_v36 = vmul.f32 %v4145_v34, %v4143_v10  ;;  %v4147_v37 = vpop.eup %4146 }
 0x3fa   : > { %3217 = vst [vmem:[%s4917_s17 + $0x20] sm:$0xff] %v1794_v36  ;;  %1873 = vmatmul.mubr.f32.vlgmr.msra.gmra.mrb[12].mxu0 %v1794_v36  ;;  %1950 = vmatmul.mubr.f32.vlgmr.msra.gmra.mrb[12].mxu1 %v1794_v36 }
 0x3fb   : > { %v4149_v28 = vpop.eup %4148  ;;  %1878 = vmatprep.mubr.f32.mxu0 %v4609_v11  ;;  %1955 = vmatprep.mubr.f32.mxu1 %v4609_v11 }
 0x3fc   : > { %v1795_v24 = vmul.f32 %v4149_v28, %v4147_v37  ;;  %3549 = vmatpush1.bf16.msra.mxu0 %v4974_v38  ;;  %3581 = vmatpush1.bf16.msra.mxu1 %v4977_v41 }
 0x3fd   : > { %3551 = vmatprep.subr.bf16.mxu0 %v4979_v44  ;;  %3583 = vmatprep.subr.bf16.mxu1 %v4982_v47 }
 0x3fe   : > { %3218 = vst [vmem:[%s4917_s17 + $0x28] sm:$0xff] %v1795_v24  ;;  %1879 = vmatmul.mubr.f32.gmra.mrb[14].mxu0 %v1795_v24  ;;  %1956 = vmatmul.mubr.f32.gmra.mrb[14].mxu1 %v1795_v24 }
 0x3ff   : > { %2093 = vmatprep.mubr.f32.mxu0 %v4609_v11  ;;  %2170 = vmatprep.mubr.f32.mxu1 %v4609_v11 }
 0x400   : > { %3553 = vmatpush1.bf16.msra.mxu0 %v4987_v51  ;;  %3585 = vmatpush1.bf16.msra.mxu1 %v4991_v54 }
 0x401   : > { %3555 = vmatprep.subr.bf16.mxu0 %v4995_v57  ;;  %3587 = vmatprep.subr.bf16.mxu1 %v4999_v60 }
 0x404   : > { %3557 = vmatpush1.bf16.msra.mxu0 %v5004_v0  ;;  %3589 = vmatpush1.bf16.msra.mxu1 %v5008_v3 }
 0x405   : > { %3559 = vmatprep.subr.bf16.mxu0 %v5012_v6  ;;  %3591 = vmatprep.subr.bf16.mxu1 %v5016_v9 }
 0x408   : > { %3561 = vmatpush1.bf16.msra.mxu0 %v5021_v14  ;;  %3593 = vmatpush1.bf16.msra.mxu1 %v5025_v17 }
 0x409   : > { %3563 = vmatprep.subr.bf16.mxu0 %v5029_v20  ;;  %3595 = vmatprep.subr.bf16.mxu1 %v5033_v25 }
 0x40c   : > { %3565 = vmatpush1.bf16.msra.mxu0 %v5038_v29  ;;  %3597 = vmatpush1.bf16.msra.mxu1 %v5042_v32 }
 0x40d   : > { %3567 = vmatprep.subr.bf16.mxu0 %v5046_v35  ;;  %3599 = vmatprep.subr.bf16.mxu1 %v5050_v39 }
 0x410   : > { %3569 = vmatpush1.bf16.msra.mxu0 %v5055_v45  ;;  %3601 = vmatpush1.bf16.msra.mxu1 %v5059_v49 }
 0x411   : > { %3571 = vmatprep.subr.bf16.mxu0 %v5063_v53  ;;  %3603 = vmatprep.subr.bf16.mxu1 %v5067_v58 }
 0x414   : > { %3573 = vmatpush1.bf16.msra.mxu0 %v5072_v63  ;;  %3605 = vmatpush1.bf16.msra.mxu1 %v5076_v4 }
 0x415   : > { %3575 = vmatprep.subr.bf16.mxu0 %v5080_v8  ;;  %3607 = vmatprep.subr.bf16.mxu1 %v5084_v13 }
 0x418   : > { %3577 = vmatpush1.bf16.msra.mxu0 %v5089_v16  ;;  %3609 = vmatpush1.bf16.msra.mxu1 %v5093_v18 }
 0x419   : > { %3611 = vmatprep.subr.bf16.mxu0 %v4930_v22  ;;  %3643 = vmatprep.subr.bf16.mxu1 %v4932_v23 }
 0x4cd   : > { %v1874_v27 = vpop.f32.mrb[12].mxu0  ;;  %v1951_v40 = vpop.f32.mrb[12].mxu1 }
 0x4ce   : > { %v3814_v46 = vadd.f32 %v1874_v27, %v5142_v31  ;;  %v1876_v48 = vpop.f32.mrb[13].mxu0  ;;  %v1953_v42 = vpop.f32.mrb[13].mxu1  ;;  %v3830_v10 = vadd.f32 %v1951_v40, %v5153_v12 }
 0x4cf   : > { %v3815_v43 = vadd.f32 %v1876_v48, %v5144_v33  ;;  %v3831_v19 = vadd.f32 %v1953_v42, %v5148_v52 }
 0x4d0   : > { %v3219_v50 = vmul.f32 -1.442695, %v3814_v46 }
 0x4d1   : > { %v3221_v55 = vmul.f32 -1.442695, %v3815_v43  ;;  %v1880_v56 = vpop.f32.mrb[14].mxu0  ;;  %v1957_v1 = vpop.f32.mrb[14].mxu1  ;;  %v3223_v26 = vmul.f32 -1.442695, %v3831_v19 }
 0x4d2   : > { %4150 = vpow2.f32 %v3219_v50  ;;  %v3816_v61 = vadd.f32 %v1880_v56, %v5142_v31  ;;  %v1882_v2 = vpop.f32.mrb[15].mxu0  ;;  %v1959_v59 = vpop.f32.mrb[15].mxu1  ;;  %v3832_v27 = vadd.f32 %v1957_v1, %v5153_v12 }
 0x4d3   : > { %4152 = vpow2.f32 %v3221_v55  ;;  %v3817_v62 = vadd.f32 %v1882_v2, %v5144_v33  ;;  %v3833_v7 = vadd.f32 %v1959_v59, %v5148_v52 }
 0x4d4   : > { %v3220_v5 = vmul.f32 -1.442695, %v3816_v61 }
 0x4d5   : > { %v3222_v21 = vmul.f32 -1.442695, %v3817_v62  ;;  %v3224_v28 = vmul.f32 -1.442695, %v3833_v7 }
 0x4d6   : > { %4154 = vpow2.f32 %v3220_v5 }
 0x4d7   : > { %4156 = vpow2.f32 %v3222_v21 }
 0x4d8   : > { %4158 = vpow2.f32 %v3223_v26 }
 0x4d9   : > { %4160 = vtanh.f32 %v3830_v10 }
 0x4dc   : > { %v4151_v34 = vpop.eup %4150 }
 0x4dd   : > { %v4153_v36 = vpop.eup %4152  ;;  %v1976_v37 = vadd.f32 1.0, %v4151_v34 }
 0x4de   : > { %v1988_v24 = vadd.f32 1.0, %v4153_v36 }
 0x4df   : > { %4162 = vrcp.f32 %v1976_v37 }
 0x4e0   : > { %v4155_v46 = vpop.eup %4154  ;;  %4164 = vrcp.f32 %v1988_v24 }
 0x4e1   : > { %v4157_v48 = vpop.eup %4156  ;;  %v1977_v42 = vadd.f32 1.0, %v4155_v46  ;;  %4166 = vpow2.f32 %v3224_v28 }
 0x4e2   : > { %4168 = vtanh.f32 %v3832_v27  ;;  %v1989_v43 = vadd.f32 1.0, %v4157_v48  ;;  %v4159_v40 = vpop.eup %4158 }
 0x4e3   : > { %4170 = vrcp.f32 %v1977_v42  ;;  %v4161_v50 = vpop.eup %4160  ;;  %v2002_v2 = vadd.f32 1.0, %v4159_v40 }
 0x4e4   : > { %4172 = vrcp.f32 %v1989_v43 }
 0x4e5   : > { %4174 = vrcp.f32 %v2002_v2 }
 0x4e9   : > { %v4163_v55 = vpop.eup %4162 }
 0x4ea   : > { %v4165_v56 = vpop.eup %4164  ;;  %v2010_v61 = vmul.f32 %v4163_v55, %v4161_v50 }
 0x4eb   : > { %v4167_v59 = vpop.eup %4166  ;;  %v2008_v62 = vmul.f32 %v4165_v56, %v5265_v15 }
 0x4ec   : > { %v4169_v1 = vpop.eup %4168  ;;  %v2003_v7 = vadd.f32 1.0, %v4167_v59 }
 0x4ed   : > { %v4171_v5 = vpop.eup %4170  ;;  %v5319_v19 = vadd.f32 %v2010_v61, %v2008_v62 }
 0x4ee   : > { %v4173_v21 = vpop.eup %4172  ;;  %v2011_v26 = vmul.f32 %v4171_v5, %v4169_v1 }
 0x4ef   : > { %4176 = vtanh.f32 %v5319_v19  ;;  %v2009_v10 = vmul.f32 %v4173_v21, %v5269_v30  ;;  %v4175_v15 = vpop.eup %4174 }
 0x4f0   : > { %4178 = vrcp.f32 %v2003_v7 }
 0x4f1   : > { %v5323_v34 = vadd.f32 %v2011_v26, %v2009_v10 }
 0x4f3   : > { %4180 = vtanh.f32 %v5323_v34 }
 0x4f9   : > { %v4177_v36 = vpop.eup %4176 }
 0x4fa   : > { %v2016_v37 = vmul.f32 %v4177_v36, %v4175_v15  ;;  %v4179_v28 = vpop.eup %4178 }
 0x4fc   : > { %3225 = vst [vmem:[%s4917_s17 + $0x30] sm:$0xff] %v2016_v37  ;;  %2094 = vmatmul.mubr.f32.vlgmr.msra.gmra.mrb[16].mxu0 %v2016_v37  ;;  %2171 = vmatmul.mubr.f32.vlgmr.msra.gmra.mrb[16].mxu1 %v2016_v37 }
 0x4fd   : > { %v4181_v24 = vpop.eup %4180  ;;  %2099 = vmatprep.mubr.f32.mxu0 %v4609_v11  ;;  %2176 = vmatprep.mubr.f32.mxu1 %v4609_v11 }
 0x4fe   : > { %v2017_v27 = vmul.f32 %v4181_v24, %v4179_v28  ;;  %3613 = vmatpush1.bf16.msra.mxu0 %v4974_v38  ;;  %3645 = vmatpush1.bf16.msra.mxu1 %v4977_v41 }
 0x4ff   : > { %3615 = vmatprep.subr.bf16.mxu0 %v4979_v44  ;;  %3647 = vmatprep.subr.bf16.mxu1 %v4982_v47 }
 0x500   : > { %3226 = vst [vmem:[%s4917_s17 + $0x38] sm:$0xff] %v2017_v27  ;;  %2100 = vmatmul.mubr.f32.gmra.mrb[18].mxu0 %v2017_v27  ;;  %2177 = vmatmul.mubr.f32.gmra.mrb[18].mxu1 %v2017_v27 }
 0x501   : > { %2315 = vmatprep.mubr.f32.mxu0 %v4609_v11  ;;  %2392 = vmatprep.mubr.f32.mxu1 %v4609_v11 }
 0x502   : > { %3617 = vmatpush1.bf16.msra.mxu0 %v4987_v51  ;;  %3649 = vmatpush1.bf16.msra.mxu1 %v4991_v54 }
 0x503   : > { %3619 = vmatprep.subr.bf16.mxu0 %v4995_v57  ;;  %3651 = vmatprep.subr.bf16.mxu1 %v4999_v60 }
 0x506   : > { %3621 = vmatpush1.bf16.msra.mxu0 %v5004_v0  ;;  %3653 = vmatpush1.bf16.msra.mxu1 %v5008_v3 }
 0x507   : > { %3623 = vmatprep.subr.bf16.mxu0 %v5012_v6  ;;  %3655 = vmatprep.subr.bf16.mxu1 %v5016_v9 }
 0x50a   : > { %3625 = vmatpush1.bf16.msra.mxu0 %v5021_v14  ;;  %3657 = vmatpush1.bf16.msra.mxu1 %v5025_v17 }
 0x50b   : > { %3627 = vmatprep.subr.bf16.mxu0 %v5029_v20  ;;  %3659 = vmatprep.subr.bf16.mxu1 %v5033_v25 }
 0x50e   : > { %3629 = vmatpush1.bf16.msra.mxu0 %v5038_v29  ;;  %3661 = vmatpush1.bf16.msra.mxu1 %v5042_v32 }
 0x50f   : > { %3631 = vmatprep.subr.bf16.mxu0 %v5046_v35  ;;  %3663 = vmatprep.subr.bf16.mxu1 %v5050_v39 }
 0x512   : > { %3633 = vmatpush1.bf16.msra.mxu0 %v5055_v45  ;;  %3665 = vmatpush1.bf16.msra.mxu1 %v5059_v49 }
 0x513   : > { %3635 = vmatprep.subr.bf16.mxu0 %v5063_v53  ;;  %3667 = vmatprep.subr.bf16.mxu1 %v5067_v58 }
 0x516   : > { %3637 = vmatpush1.bf16.msra.mxu0 %v5072_v63  ;;  %3669 = vmatpush1.bf16.msra.mxu1 %v5076_v4 }
 0x517   : > { %3639 = vmatprep.subr.bf16.mxu0 %v5080_v8  ;;  %3671 = vmatprep.subr.bf16.mxu1 %v5084_v13 }
 0x51a   : > { %3641 = vmatpush1.bf16.msra.mxu0 %v5089_v16  ;;  %3673 = vmatpush1.bf16.msra.mxu1 %v5093_v18 }
 0x51b   : > { %3675 = vmatprep.subr.bf16.mxu0 %v4930_v22  ;;  %3707 = vmatprep.subr.bf16.mxu1 %v4932_v23 }
 0x5cf   : > { %v2095_v30 = vpop.f32.mrb[16].mxu0  ;;  %v2172_v46 = vpop.f32.mrb[16].mxu1 }
 0x5d0   : > { %v3834_v48 = vadd.f32 %v2095_v30, %v5142_v31  ;;  %v2097_v42 = vpop.f32.mrb[17].mxu0  ;;  %v2174_v43 = vpop.f32.mrb[17].mxu1  ;;  %v3850_v15 = vadd.f32 %v2172_v46, %v5153_v12 }
 0x5d1   : > { %v3835_v40 = vadd.f32 %v2097_v42, %v5144_v33  ;;  %v3851_v21 = vadd.f32 %v2174_v43, %v5148_v52 }
 0x5d2   : > { %v3227_v50 = vmul.f32 -1.442695, %v3834_v48 }
 0x5d3   : > { %v3229_v55 = vmul.f32 -1.442695, %v3835_v40  ;;  %v2101_v56 = vpop.f32.mrb[18].mxu0  ;;  %v2178_v61 = vpop.f32.mrb[18].mxu1  ;;  %v3231_v7 = vmul.f32 -1.442695, %v3851_v21 }
 0x5d4   : > { %4182 = vpow2.f32 %v3227_v50  ;;  %v3836_v2 = vadd.f32 %v2101_v56, %v5142_v31  ;;  %v2103_v59 = vpop.f32.mrb[19].mxu0  ;;  %v2180_v62 = vpop.f32.mrb[19].mxu1  ;;  %v3852_v30 = vadd.f32 %v2178_v61, %v5153_v12 }
 0x5d5   : > { %4184 = vpow2.f32 %v3229_v55  ;;  %v3837_v1 = vadd.f32 %v2103_v59, %v5144_v33  ;;  %v3853_v10 = vadd.f32 %v2180_v62, %v5148_v52 }
 0x5d6   : > { %v3228_v5 = vmul.f32 -1.442695, %v3836_v2 }
 0x5d7   : > { %v3230_v26 = vmul.f32 -1.442695, %v3837_v1  ;;  %v3232_v24 = vmul.f32 -1.442695, %v3853_v10 }
 0x5d8   : > { %4186 = vpow2.f32 %v3228_v5 }
 0x5d9   : > { %4188 = vpow2.f32 %v3230_v26 }
 0x5da   : > { %4190 = vpow2.f32 %v3231_v7 }
 0x5db   : > { %4192 = vtanh.f32 %v3850_v15 }
 0x5de   : > { %v4183_v36 = vpop.eup %4182 }
 0x5df   : > { %v4185_v37 = vpop.eup %4184  ;;  %v2197_v28 = vadd.f32 1.0, %v4183_v36 }
 0x5e0   : > { %v2209_v27 = vadd.f32 1.0, %v4185_v37 }
 0x5e1   : > { %4194 = vrcp.f32 %v2197_v28 }
 0x5e2   : > { %v4187_v48 = vpop.eup %4186  ;;  %4196 = vrcp.f32 %v2209_v27 }
 0x5e3   : > { %v4189_v42 = vpop.eup %4188  ;;  %v2198_v43 = vadd.f32 1.0, %v4187_v48  ;;  %4198 = vpow2.f32 %v3232_v24 }
 0x5e4   : > { %4200 = vtanh.f32 %v3852_v30  ;;  %v2210_v40 = vadd.f32 1.0, %v4189_v42  ;;  %v4191_v46 = vpop.eup %4190 }
 0x5e5   : > { %4202 = vrcp.f32 %v2198_v43  ;;  %v4193_v50 = vpop.eup %4192  ;;  %v2223_v59 = vadd.f32 1.0, %v4191_v46 }
 0x5e6   : > { %4204 = vrcp.f32 %v2210_v40 }
 0x5e7   : > { %4206 = vrcp.f32 %v2223_v59 }
 0x5eb   : > { %v4195_v55 = vpop.eup %4194 }
 0x5ec   : > { %v4197_v56 = vpop.eup %4196  ;;  %v2231_v2 = vmul.f32 %v4195_v55, %v4193_v50 }
 0x5ed   : > { %v4199_v62 = vpop.eup %4198  ;;  %v2229_v1 = vmul.f32 %v4197_v56, %v5319_v19 }
 0x5ee   : > { %v4201_v61 = vpop.eup %4200  ;;  %v2224_v10 = vadd.f32 1.0, %v4199_v62 }
 0x5ef   : > { %v4203_v5 = vpop.eup %4202  ;;  %v5373_v21 = vadd.f32 %v2231_v2, %v2229_v1 }
 0x5f0   : > { %v4205_v26 = vpop.eup %4204  ;;  %v2232_v7 = vmul.f32 %v4203_v5, %v4201_v61 }
 0x5f1   : > { %4208 = vtanh.f32 %v5373_v21  ;;  %v2230_v15 = vmul.f32 %v4205_v26, %v5323_v34  ;;  %v4207_v19 = vpop.eup %4206 }
 0x5f2   : > { %4210 = vrcp.f32 %v2224_v10 }
 0x5f3   : > { %v5377_v36 = vadd.f32 %v2232_v7, %v2230_v15 }
 0x5f5   : > { %4212 = vtanh.f32 %v5377_v36 }
 0x5fb   : > { %v4209_v37 = vpop.eup %4208 }
 0x5fc   : > { %v2237_v28 = vmul.f32 %v4209_v37, %v4207_v19  ;;  %v4211_v24 = vpop.eup %4210 }
 0x5fe   : > { %3233 = vst [vmem:[%s4917_s17 + $0x40] sm:$0xff] %v2237_v28  ;;  %2316 = vmatmul.mubr.f32.vlgmr.msra.gmra.mrb[20].mxu0 %v2237_v28  ;;  %2393 = vmatmul.mubr.f32.vlgmr.msra.gmra.mrb[20].mxu1 %v2237_v28 }
 0x5ff   : > { %v4213_v27 = vpop.eup %4212  ;;  %2321 = vmatprep.mubr.f32.mxu0 %v4609_v11  ;;  %2398 = vmatprep.mubr.f32.mxu1 %v4609_v11 }
 0x600   : > { %v2238_v30 = vmul.f32 %v4213_v27, %v4211_v24  ;;  %3677 = vmatpush1.bf16.msra.mxu0 %v4974_v38  ;;  %3709 = vmatpush1.bf16.msra.mxu1 %v4977_v41 }
 0x601   : > { %3679 = vmatprep.subr.bf16.mxu0 %v4979_v44  ;;  %3711 = vmatprep.subr.bf16.mxu1 %v4982_v47 }
 0x602   : > { %3234 = vst [vmem:[%s4917_s17 + $0x48] sm:$0xff] %v2238_v30  ;;  %2322 = vmatmul.mubr.f32.gmra.mrb[22].mxu0 %v2238_v30  ;;  %2399 = vmatmul.mubr.f32.gmra.mrb[22].mxu1 %v2238_v30 }
 0x603   : > { %2537 = vmatprep.mubr.f32.mxu0 %v4609_v11  ;;  %2614 = vmatprep.mubr.f32.mxu1 %v4609_v11 }
 0x604   : > { %3681 = vmatpush1.bf16.msra.mxu0 %v4987_v51  ;;  %3713 = vmatpush1.bf16.msra.mxu1 %v4991_v54 }
 0x605   : > { %3683 = vmatprep.subr.bf16.mxu0 %v4995_v57  ;;  %3715 = vmatprep.subr.bf16.mxu1 %v4999_v60 }
 0x608   : > { %3685 = vmatpush1.bf16.msra.mxu0 %v5004_v0  ;;  %3717 = vmatpush1.bf16.msra.mxu1 %v5008_v3 }
 0x609   : > { %3687 = vmatprep.subr.bf16.mxu0 %v5012_v6  ;;  %3719 = vmatprep.subr.bf16.mxu1 %v5016_v9 }
 0x60c   : > { %3689 = vmatpush1.bf16.msra.mxu0 %v5021_v14  ;;  %3721 = vmatpush1.bf16.msra.mxu1 %v5025_v17 }
 0x60d   : > { %3691 = vmatprep.subr.bf16.mxu0 %v5029_v20  ;;  %3723 = vmatprep.subr.bf16.mxu1 %v5033_v25 }
 0x610   : > { %3693 = vmatpush1.bf16.msra.mxu0 %v5038_v29  ;;  %3725 = vmatpush1.bf16.msra.mxu1 %v5042_v32 }
 0x611   : > { %3695 = vmatprep.subr.bf16.mxu0 %v5046_v35  ;;  %3727 = vmatprep.subr.bf16.mxu1 %v5050_v39 }
 0x614   : > { %3697 = vmatpush1.bf16.msra.mxu0 %v5055_v45  ;;  %3729 = vmatpush1.bf16.msra.mxu1 %v5059_v49 }
 0x615   : > { %3699 = vmatprep.subr.bf16.mxu0 %v5063_v53  ;;  %3731 = vmatprep.subr.bf16.mxu1 %v5067_v58 }
 0x618   : > { %3701 = vmatpush1.bf16.msra.mxu0 %v5072_v63  ;;  %3733 = vmatpush1.bf16.msra.mxu1 %v5076_v4 }
 0x619   : > { %3703 = vmatprep.subr.bf16.mxu0 %v5080_v8  ;;  %3735 = vmatprep.subr.bf16.mxu1 %v5084_v13 }
 0x61c   : > { %3705 = vmatpush1.bf16.msra.mxu0 %v5089_v16  ;;  %3737 = vmatpush1.bf16.msra.mxu1 %v5093_v18 }
 0x61d   : > { %3739 = vmatprep.subr.bf16.mxu0 %v4930_v22  ;;  %3771 = vmatprep.subr.bf16.mxu1 %v4932_v23 }
 0x6d1   : > { %v2317_v34 = vpop.f32.mrb[20].mxu0  ;;  %v2394_v48 = vpop.f32.mrb[20].mxu1 }
 0x6d2   : > { %v3838_v42 = vadd.f32 %v2317_v34, %v5142_v31  ;;  %v2319_v43 = vpop.f32.mrb[21].mxu0  ;;  %v2396_v40 = vpop.f32.mrb[21].mxu1  ;;  %v3854_v10 = vadd.f32 %v2394_v48, %v5153_v12 }
 0x6d3   : > { %v3839_v46 = vadd.f32 %v2319_v43, %v5144_v33  ;;  %v3855_v61 = vadd.f32 %v2396_v40, %v5148_v52 }
 0x6d4   : > { %v3235_v50 = vmul.f32 -1.442695, %v3838_v42 }
 0x6d5   : > { %v3237_v55 = vmul.f32 -1.442695, %v3839_v46  ;;  %v2323_v56 = vpop.f32.mrb[22].mxu0  ;;  %v2400_v2 = vpop.f32.mrb[22].mxu1  ;;  %v3239_v26 = vmul.f32 -1.442695, %v3855_v61 }
 0x6d6   : > { %4214 = vpow2.f32 %v3235_v50  ;;  %v3840_v59 = vadd.f32 %v2323_v56, %v5142_v31  ;;  %v2325_v62 = vpop.f32.mrb[23].mxu0  ;;  %v2402_v1 = vpop.f32.mrb[23].mxu1  ;;  %v3856_v27 = vadd.f32 %v2400_v2, %v5153_v12 }
 0x6d7   : > { %4216 = vpow2.f32 %v3237_v55  ;;  %v3841_v22 = vadd.f32 %v2325_v62, %v5144_v33  ;;  %v3857_v7 = vadd.f32 %v2402_v1, %v5148_v52 }
 0x6d8   : > { %v3236_v23 = vmul.f32 -1.442695, %v3840_v59 }
 0x6d9   : > { %v3238_v5 = vmul.f32 -1.442695, %v3841_v22  ;;  %v3240_v28 = vmul.f32 -1.442695, %v3857_v7 }
 0x6da   : > { %4218 = vpow2.f32 %v3236_v23 }
 0x6db   : > { %4220 = vpow2.f32 %v3238_v5 }
 0x6dc   : > { %4222 = vpow2.f32 %v3239_v26 }
 0x6dd   : > { %4224 = vtanh.f32 %v3854_v10 }
 0x6e0   : > { %v4215_v15 = vpop.eup %4214 }
 0x6e1   : > { %v4217_v19 = vpop.eup %4216  ;;  %v2419_v37 = vadd.f32 1.0, %v4215_v15 }
 0x6e2   : > { %v2431_v24 = vadd.f32 1.0, %v4217_v19 }
 0x6e3   : > { %4226 = vrcp.f32 %v2419_v37 }
 0x6e4   : > { %v4219_v30 = vpop.eup %4218  ;;  %4228 = vrcp.f32 %v2431_v24 }
 0x6e5   : > { %v4221_v34 = vpop.eup %4220  ;;  %v2420_v42 = vadd.f32 1.0, %v4219_v30  ;;  %4230 = vpow2.f32 %v3240_v28 }
 0x6e6   : > { %4232 = vtanh.f32 %v3856_v27  ;;  %v2432_v43 = vadd.f32 1.0, %v4221_v34  ;;  %v4223_v48 = vpop.eup %4222 }
 0x6e7   : > { %4234 = vrcp.f32 %v2420_v42  ;;  %v4225_v40 = vpop.eup %4224  ;;  %v2445_v56 = vadd.f32 1.0, %v4223_v48 }
 0x6e8   : > { %4236 = vrcp.f32 %v2432_v43 }
 0x6e9   : > { %4238 = vrcp.f32 %v2445_v56 }
 0x6ed   : > { %v4227_v46 = vpop.eup %4226 }
 0x6ee   : > { %v4229_v50 = vpop.eup %4228  ;;  %v2453_v55 = vmul.f32 %v4227_v46, %v4225_v40 }
 0x6ef   : > { %v4231_v59 = vpop.eup %4230  ;;  %v2451_v62 = vmul.f32 %v4229_v50, %v5373_v21 }
 0x6f0   : > { %v4233_v2 = vpop.eup %4232  ;;  %v2446_v5 = vadd.f32 1.0, %v4231_v59 }
 0x6f1   : > { %v4235_v1 = vpop.eup %4234  ;;  %v5427_v22 = vadd.f32 %v2453_v55, %v2451_v62 }
 0x6f2   : > { %v4237_v23 = vpop.eup %4236  ;;  %v2454_v61 = vmul.f32 %v4235_v1, %v4233_v2 }
 0x6f3   : > { %4240 = vtanh.f32 %v5427_v22  ;;  %v2452_v26 = vmul.f32 %v4237_v23, %v5377_v36  ;;  %v4239_v21 = vpop.eup %4238 }
 0x6f4   : > { %4242 = vrcp.f32 %v2446_v5 }
 0x6f5   : > { %v5431_v7 = vadd.f32 %v2454_v61, %v2452_v26 }
 0x6f7   : > { %4244 = vtanh.f32 %v5431_v7 }
 0x6fd   : > { %v4241_v10 = vpop.eup %4240 }
 0x6fe   : > { %v2459_v15 = vmul.f32 %v4241_v10, %v4239_v21  ;;  %v4243_v19 = vpop.eup %4242 }
 0x700   : > { %3241 = vst [vmem:[%s4917_s17 + $0x50] sm:$0xff] %v2459_v15  ;;  %2538 = vmatmul.mubr.f32.vlgmr.msra.gmra.mrb[24].mxu0 %v2459_v15  ;;  %2615 = vmatmul.mubr.f32.vlgmr.msra.gmra.mrb[24].mxu1 %v2459_v15 }
 0x701   : > { %v4245_v37 = vpop.eup %4244  ;;  %2543 = vmatprep.mubr.f32.mxu0 %v4609_v11  ;;  %2620 = vmatprep.mubr.f32.mxu1 %v4609_v11 }
 0x702   : > { %v2460_v28 = vmul.f32 %v4245_v37, %v4243_v19  ;;  %3741 = vmatpush1.bf16.msra.mxu0 %v4974_v38  ;;  %3773 = vmatpush1.bf16.msra.mxu1 %v4977_v41 }
 0x703   : > { %3743 = vmatprep.subr.bf16.mxu0 %v4979_v44  ;;  %3775 = vmatprep.subr.bf16.mxu1 %v4982_v47 }
 0x704   : > { %3242 = vst [vmem:[%s4917_s17 + $0x58] sm:$0xff] %v2460_v28  ;;  %2544 = vmatmul.mubr.f32.gmra.mrb[26].mxu0 %v2460_v28  ;;  %2621 = vmatmul.mubr.f32.gmra.mrb[26].mxu1 %v2460_v28 }
 0x705   : > { %2759 = vmatprep.mubr.f32.mxu0 %v4609_v11  ;;  %2836 = vmatprep.mubr.f32.mxu1 %v4609_v11 }
 0x706   : > { %3745 = vmatpush1.bf16.msra.mxu0 %v4987_v51  ;;  %3777 = vmatpush1.bf16.msra.mxu1 %v4991_v54 }
 0x707   : > { %3747 = vmatprep.subr.bf16.mxu0 %v4995_v57  ;;  %3779 = vmatprep.subr.bf16.mxu1 %v4999_v60 }
 0x70a   : > { %3749 = vmatpush1.bf16.msra.mxu0 %v5004_v0  ;;  %3781 = vmatpush1.bf16.msra.mxu1 %v5008_v3 }
 0x70b   : > { %3751 = vmatprep.subr.bf16.mxu0 %v5012_v6  ;;  %3783 = vmatprep.subr.bf16.mxu1 %v5016_v9 }
 0x70e   : > { %3753 = vmatpush1.bf16.msra.mxu0 %v5021_v14  ;;  %3785 = vmatpush1.bf16.msra.mxu1 %v5025_v17 }
 0x70f   : > { %3755 = vmatprep.subr.bf16.mxu0 %v5029_v20  ;;  %3787 = vmatprep.subr.bf16.mxu1 %v5033_v25 }
 0x712   : > { %3757 = vmatpush1.bf16.msra.mxu0 %v5038_v29  ;;  %3789 = vmatpush1.bf16.msra.mxu1 %v5042_v32 }
 0x713   : > { %3759 = vmatprep.subr.bf16.mxu0 %v5046_v35  ;;  %3791 = vmatprep.subr.bf16.mxu1 %v5050_v39 }
 0x716   : > { %3761 = vmatpush1.bf16.msra.mxu0 %v5055_v45  ;;  %3793 = vmatpush1.bf16.msra.mxu1 %v5059_v49 }
 0x717   : > { %3763 = vmatprep.subr.bf16.mxu0 %v5063_v53  ;;  %3795 = vmatprep.subr.bf16.mxu1 %v5067_v58 }
 0x71a   : > { %3765 = vmatpush1.bf16.msra.mxu0 %v5072_v63  ;;  %3797 = vmatpush1.bf16.msra.mxu1 %v5076_v4 }
 0x71b   : > { %3767 = vmatprep.subr.bf16.mxu0 %v5080_v8  ;;  %3799 = vmatprep.subr.bf16.mxu1 %v5084_v13 }
 0x71e   : > { %3769 = vmatpush1.bf16.msra.mxu0 %v5089_v16  ;;  %3801 = vmatpush1.bf16.msra.mxu1 %v5093_v18 }
 0x7d3   : > { %v2539_v38 = vpop.f32.mrb[24].mxu0  ;;  %v2616_v41 = vpop.f32.mrb[24].mxu1 }
 0x7d4   : > { %v3842_v44 = vadd.f32 %v2539_v38, %v5142_v31  ;;  %v2541_v47 = vpop.f32.mrb[25].mxu0  ;;  %v2618_v51 = vpop.f32.mrb[25].mxu1  ;;  %v3858_v39 = vadd.f32 %v2616_v41, %v5153_v12 }
 0x7d5   : > { %v3843_v54 = vadd.f32 %v2541_v47, %v5144_v33  ;;  %v3859_v25 = vadd.f32 %v2618_v51, %v5148_v52 }
 0x7d6   : > { %v3243_v57 = vmul.f32 -1.442695, %v3842_v44 }
 0x7d7   : > { %v3245_v60 = vmul.f32 -1.442695, %v3843_v54  ;;  %v2545_v0 = vpop.f32.mrb[26].mxu0  ;;  %v2622_v3 = vpop.f32.mrb[26].mxu1  ;;  %v3247_v32 = vmul.f32 -1.442695, %v3859_v25 }
 0x7d8   : > { %4246 = vpow2.f32 %v3243_v57  ;;  %v3844_v6 = vadd.f32 %v2545_v0, %v5142_v31  ;;  %v2547_v9 = vpop.f32.mrb[27].mxu0  ;;  %v2624_v14 = vpop.f32.mrb[27].mxu1  ;;  %v3860_v4 = vadd.f32 %v2622_v3, %v5153_v12 }
 0x7d9   : > { %4248 = vpow2.f32 %v3245_v60  ;;  %v3845_v17 = vadd.f32 %v2547_v9, %v5144_v33  ;;  %v3861_v35 = vadd.f32 %v2624_v14, %v5148_v52 }
 0x7da   : > { %v3244_v20 = vmul.f32 -1.442695, %v3844_v6 }
 0x7db   : > { %v3246_v29 = vmul.f32 -1.442695, %v3845_v17  ;;  %v3248_v58 = vmul.f32 -1.442695, %v3861_v35 }
 0x7dc   : > { %4250 = vpow2.f32 %v3244_v20 }
 0x7dd   : > { %4252 = vpow2.f32 %v3246_v29 }
 0x7de   : > { %4254 = vpow2.f32 %v3247_v32 }
 0x7df   : > { %4256 = vtanh.f32 %v3858_v39 }
 0x7e2   : > { %v4247_v45 = vpop.eup %4246 }
 0x7e3   : > { %v4249_v49 = vpop.eup %4248  ;;  %v2641_v53 = vadd.f32 1.0, %v4247_v45 }
 0x7e4   : > { %v2653_v63 = vadd.f32 1.0, %v4249_v49 }
 0x7e5   : > { %4258 = vrcp.f32 %v2641_v53 }
 0x7e6   : > { %v4251_v8 = vpop.eup %4250  ;;  %4260 = vrcp.f32 %v2653_v63 }
 0x7e7   : > { %v4253_v13 = vpop.eup %4252  ;;  %v2642_v16 = vadd.f32 1.0, %v4251_v8  ;;  %4262 = vpow2.f32 %v3248_v58 }
 0x7e8   : > { %4264 = vtanh.f32 %v3860_v4  ;;  %v2654_v18 = vadd.f32 1.0, %v4253_v13  ;;  %v4255_v36 = vpop.eup %4254 }
 0x7e9   : > { %4266 = vrcp.f32 %v2642_v16  ;;  %v4257_v24 = vpop.eup %4256  ;;  %v2667_v42 = vadd.f32 1.0, %v4255_v36 }
 0x7ea   : > { %4268 = vrcp.f32 %v2654_v18 }
 0x7eb   : > { %4270 = vrcp.f32 %v2667_v42 }
 0x7ef   : > { %v4259_v27 = vpop.eup %4258 }
 0x7f0   : > { %v4261_v30 = vpop.eup %4260  ;;  %v2675_v34 = vmul.f32 %v4259_v27, %v4257_v24 }
 0x7f1   : > { %v4263_v43 = vpop.eup %4262  ;;  %v2673_v48 = vmul.f32 %v4261_v30, %v5427_v22 }
 0x7f2   : > { %v4265_v40 = vpop.eup %4264  ;;  %v2668_v59 = vadd.f32 1.0, %v4263_v43 }
 0x7f3   : > { %v4267_v46 = vpop.eup %4266  ;;  %v5479_v50 = vadd.f32 %v2675_v34, %v2673_v48 }
 0x7f4   : > { %v4269_v55 = vpop.eup %4268  ;;  %v2676_v56 = vmul.f32 %v4267_v46, %v4265_v40 }
 0x7f5   : > { %4272 = vtanh.f32 %v5479_v50  ;;  %v2674_v62 = vmul.f32 %v4269_v55, %v5431_v7  ;;  %v4271_v1 = vpop.eup %4270 }
 0x7f6   : > { %4274 = vrcp.f32 %v2668_v59 }
 0x7f7   : > { %v5483_v2 = vadd.f32 %v2676_v56, %v2674_v62 }
 0x7f9   : > { %4276 = vtanh.f32 %v5483_v2 }
 0x7ff   : > { %v4273_v22 = vpop.eup %4272 }
 0x800   : > { %v2681_v23 = vmul.f32 %v4273_v22, %v4271_v1  ;;  %v4275_v61 = vpop.eup %4274 }
 0x802   : > { %3249 = vst [vmem:[%s4917_s17 + $0x60] sm:$0xff] %v2681_v23  ;;  %2760 = vmatmul.mubr.f32.vlgmr.msra.gmra.mrb[28].mxu0 %v2681_v23  ;;  %2837 = vmatmul.mubr.f32.vlgmr.msra.gmra.mrb[28].mxu1 %v2681_v23 }
 0x803   : > { %v4277_v5 = vpop.eup %4276  ;;  %2765 = vmatprep.mubr.f32.mxu0 %v4609_v11  ;;  %2842 = vmatprep.mubr.f32.mxu1 %v4609_v11 }
 0x804   : > { %v2682_v26 = vmul.f32 %v4277_v5, %v4275_v61 }
 0x806   : > { %3250 = vst [vmem:[%s4917_s17 + $0x68] sm:$0xff] %v2682_v26  ;;  %2766 = vmatmul.mubr.f32.gmra.mrb[30].mxu0 %v2682_v26  ;;  %2843 = vmatmul.mubr.f32.gmra.mrb[30].mxu1 %v2682_v26 }
 0x8d5   : > { %v2761_v7 = vpop.f32.mrb[28].mxu0  ;;  %v2838_v21 = vpop.f32.mrb[28].mxu1 }
 0x8d6   : > { %v3846_v10 = vadd.f32 %v2761_v7, %v5142_v31  ;;  %v2763_v15 = vpop.f32.mrb[29].mxu0  ;;  %v2840_v19 = vpop.f32.mrb[29].mxu1  ;;  %v3862_v9 = vadd.f32 %v2838_v21, %v5153_v12 }
 0x8d7   : > { %v3847_v37 = vadd.f32 %v2763_v15, %v5144_v33  ;;  %v3863_v60 = vadd.f32 %v2840_v19, %v5148_v52 }
 0x8d8   : > { %v3251_v28 = vmul.f32 -1.442695, %v3846_v10 }
 0x8d9   : > { %v3253_v38 = vmul.f32 -1.442695, %v3847_v37  ;;  %v2767_v41 = vpop.f32.mrb[30].mxu0  ;;  %v2844_v44 = vpop.f32.mrb[30].mxu1  ;;  %v3255_v3 = vmul.f32 -1.442695, %v3863_v60 }
 0x8da   : > { %4278 = vpow2.f32 %v3251_v28  ;;  %v3848_v47 = vadd.f32 %v2767_v41, %v5142_v31  ;;  %v2769_v11 = vpop.f32.mrb[31].mxu0  ;;  %v2846_v51 = vpop.f32.mrb[31].mxu1 }
 0x8db   : > { %4280 = vpow2.f32 %v3253_v38  ;;  %v3849_v54 = vadd.f32 %v2769_v11, %v5144_v33  ;;  %v3865_v6 = vadd.f32 %v2846_v51, %v5148_v52  ;;  %v3864_v33 = vadd.f32 %v2844_v44, %v5153_v12 }
 0x8dc   : > { %v3252_v57 = vmul.f32 -1.442695, %v3848_v47 }
 0x8dd   : > { %v3254_v0 = vmul.f32 -1.442695, %v3849_v54  ;;  %v3256_v31 = vmul.f32 -1.442695, %v3865_v6 }
 0x8de   : > { %4282 = vpow2.f32 %v3252_v57 }
 0x8df   : > { %4284 = vpow2.f32 %v3254_v0 }
 0x8e0   : > { %4286 = vpow2.f32 %v3255_v3 }
 0x8e1   : > { %4288 = vtanh.f32 %v3862_v9 }
 0x8e4   : > { %v4279_v14 = vpop.eup %4278 }
 0x8e5   : > { %v4281_v17 = vpop.eup %4280  ;;  %v2863_v20 = vadd.f32 1.0, %v4279_v14 }
 0x8e6   : > { %v2875_v25 = vadd.f32 1.0, %v4281_v17 }
 0x8e7   : > { %4290 = vrcp.f32 %v2863_v20 }
 0x8e8   : > { %v4283_v29 = vpop.eup %4282  ;;  %4292 = vrcp.f32 %v2875_v25 }
 0x8e9   : > { %v4285_v32 = vpop.eup %4284  ;;  %v2864_v35 = vadd.f32 1.0, %v4283_v29  ;;  %4294 = vpow2.f32 %v3256_v31 }
 0x8ea   : > { %4296 = vtanh.f32 %v3864_v33  ;;  %v2876_v39 = vadd.f32 1.0, %v4285_v32  ;;  %v4287_v52 = vpop.eup %4286 }
 0x8eb   : > { %4298 = vrcp.f32 %v2864_v35  ;;  %v4289_v45 = vpop.eup %4288  ;;  %v2889_v63 = vadd.f32 1.0, %v4287_v52 }
 0x8ec   : > { %4300 = vrcp.f32 %v2876_v39 }
 0x8ed   : > { %4302 = vrcp.f32 %v2889_v63 }
 0x8f1   : > { %v4291_v49 = vpop.eup %4290 }
 0x8f2   : > { %v4293_v53 = vpop.eup %4292  ;;  %v2897_v58 = vmul.f32 %v4291_v49, %v4289_v45 }
 0x8f3   : > { %v4295_v4 = vpop.eup %4294  ;;  %v2895_v8 = vmul.f32 %v4293_v53, %v5479_v50 }
 0x8f4   : > { %v4297_v12 = vpop.eup %4296  ;;  %v2890_v24 = vadd.f32 1.0, %v4295_v4 }
 0x8f5   : > { %v4299_v13 = vpop.eup %4298  ;;  %v2899_v16 = vadd.f32 %v2897_v58, %v2895_v8 }
 0x8f6   : > { %v4301_v18 = vpop.eup %4300  ;;  %v2898_v36 = vmul.f32 %v4299_v13, %v4297_v12 }
 0x8f7   : > { %4304 = vtanh.f32 %v2899_v16  ;;  %2910 = vst [vmem:[#allocation4] sm:$0xff] %v2899_v16  ;;  %v2896_v27 = vmul.f32 %v4301_v18, %v5483_v2  ;;  %v4303_v34 = vpop.eup %4302  ;;  %2918 = vst [vmem:[#allocation17] sm:$0xff] (!%p3259_p6), %v2899_v16 }
 0x8f8   : > { %4306 = vrcp.f32 %v2890_v24 }
 0x8f9   : > { %v2900_v30 = vadd.f32 %v2898_v36, %v2896_v27 }
 0x8fb   : > { %4308 = vtanh.f32 %v2900_v30  ;;  %2911 = vst [vmem:[#allocation4 + $0x8] sm:$0xff] %v2900_v30  ;;  %2919 = vst [vmem:[#allocation17 + $0x8] sm:$0xff] (!%p3259_p6), %v2900_v30 }
 0x901   : > { %v4305_v42 = vpop.eup %4304 }
 0x902   : > { %v2903_v43 = vmul.f32 %v4305_v42, %v4303_v34  ;;  %v4307_v48 = vpop.eup %4306  ;;  %2915 = sbr.rel (%p3259_p6) target bundleno = 2314 (0x90a), region = 72 }
 0x904   : > { %3257 = vst [vmem:[%s4917_s17 + $0x70] sm:$0xff] %v2903_v43  ;;  %2908 = vst [vmem:[#allocation3] sm:$0xff] %v2903_v43 }
 0x905   : > { %v4309_v40 = vpop.eup %4308  ;;  %2916 = vst [vmem:[#allocation15] sm:$0xff] (!%p3259_p6), %v2903_v43 }
 0x906   : > { %v2904_v46 = vmul.f32 %v4309_v40, %v4307_v48 }
 0x908   : > { %3258 = vst [vmem:[%s4917_s17 + $0x78] sm:$0xff] %v2904_v46  ;;  %2909 = vst [vmem:[#allocation3 + $0x8] sm:$0xff] %v2904_v46 }
 0x909   : > { %2917 = vst [vmem:[#allocation15 + $0x8] sm:$0xff] %v2904_v46 }
 0x90a PF: > { %s4610_s13 = smov [#allocation15]   ;;  %s3273_s22 = sshll.u32 %s4590_s30, 11 }
 0x90b   : > { %s2953_s11 = sshll.u32 %s4610_s13, 4  ;;  %p5645_p3 = scmp.ne.s32.totalorder %s5632_s14, 0  ;;  %s2954_s11 = int_to_ptr.vmem [resolvable:$true] %s2953_s11 }
 0x90c   : > { %s4452_s7 = scalar_lea.vmem %s2954_s11, 256  ;;  %p4459_p0 = scmp.lt.s32.totalorder %s2954_s11, %s2954_s11 }
 0x90d   : > { %p4453_p10 = scmp.ne.s32.totalorder %s2954_s11, %s4452_s7  ;;  %p4460_p4 = scmp.lt.s32.totalorder %s4452_s7, %s4452_s7 }
 0x90f   : > { %p4454_p7 = pnand %p4453_p10, %p5645_p3  ;;  %p4461_p13 = por %p4460_p4, %p4459_p0 }
 0x911   : > { %p4455_p9 = pneg %p4454_p7 }
 0x913   : > { %p4462_p2 = pnand %p4461_p13, %p4455_p9 }
 0x915   : > { %4465 = shalt.err (!%p4462_p2)
}
 0x916   : > { %s5646_s25 = sld [smem:[#allocation26_spill]] }
 0x91c   : > { %s4466_s23 = scalar_lea.hbm %s5646_s25, 256 }
 0x91d   : > { %p4467_p12 = scmp.ne.s32.totalorder %s5646_s25, %s4466_s23  ;;  %p4472_p8 = scmp.lt.u32.totalorder %s4466_s23, %s5646_s25 }
 0x91f   : > { %p4468_p1 = pnand %p4467_p12, %p5645_p3 }
 0x921   : > { %p4469_p11 = pneg %p4468_p1 }
 0x923   : > { %p4474_p6 = pnand %p4472_p8, %p4469_p11 }
 0x925   : > { %4477 = shalt.err (!%p4474_p6)
}
 0x926   : > { %s4611_s26 = smov 128   ;;  %s4612_s16 = smov 8  }
 0x927   : > { %3950 = dma.vmem_to_hbm [thread:$0]  (%p5645_p3), %s2954_s11, 256, %s5646_s25, [#allocation16], %s4611_s26, %s4611_s26, %s4612_s16  }
 0x928   : > { %s5647_s18 = sld [smem:[#allocation25_spill]]  ;;  %s2937_s24 = sshll.u32 %s4917_s17, 4  ;;  %s5531_s24 = int_to_ptr.vmem [resolvable:$true] %s2937_s24 }
 0x929   : > { %s2921_s12 = scalar_lea.sflag [#allocation7], %s4899_s27  ;;  %s4478_s30 = scalar_lea.vmem %s5531_s24, 2048 }
 0x92a   : > { %p4479_p10 = scmp.ne.s32.totalorder %s5531_s24, %s4478_s30  ;;  %s4613_s15 = smov [#allocation14]  }
 0x92b   : > { %s4482_s19 = sshll.u32 %s4613_s15, 4  ;;  %s4483_s19 = int_to_ptr.vmem [resolvable:$false] %s4482_s19 }
 0x92c   : > { %p4480_p7 = pnand %p4479_p10, %p4841_p5  ;;  %s4484_s11 = scalar_lea.vmem %s4483_s19, 4096 }
 0x92d   : > { %p4485_p0 = scmp.lt.s32.totalorder %s5531_s24, %s4483_s19  ;;  %p4486_p4 = scmp.lt.s32.totalorder %s4484_s11, %s4478_s30 }
 0x92e   : > { %s5528_s23 = scalar_lea.hbm %s5647_s18, %s3273_s22  ;;  %p4481_p9 = pneg %p4480_p7 }
 0x92f   : > { %p4487_p13 = por %p4486_p4, %p4485_p0 }
 0x931   : > { %p4488_p2 = pnand %p4487_p13, %p4481_p9 }
 0x933   : > { %4491 = shalt.err (!%p4488_p2)
}
 0x934   : > { %s4492_s17 = scalar_lea.hbm %s5528_s23, 2048  ;;  %s4496_s7 = scalar_lea.hbm %s5647_s18, 4096 }
 0x935   : > { %p4493_p12 = scmp.ne.s32.totalorder %s5528_s23, %s4492_s17  ;;  %p4497_p8 = scmp.lt.u32.totalorder %s5528_s23, %s5647_s18 }
 0x936   : > { %p4498_p6 = scmp.lt.u32.totalorder %s4496_s7, %s4492_s17  ;;  %p4500_p7 = scmp.lt.u32.totalorder %s4492_s17, %s5528_s23 }
 0x937   : > { %p4494_p1 = pnand %p4493_p12, %p4841_p5 }
 0x938   : > { %p4499_p10 = por %p4498_p6, %p4497_p8 }
 0x939   : > { %p4495_p11 = pneg %p4494_p1 }
 0x93a   : > { %p4501_p9 = por %p4500_p7, %p4499_p10 }
 0x93c   : > { %p4502_p0 = pnand %p4501_p9, %p4495_p11 }
 0x93e   : > { %4505 = shalt.err (!%p4502_p0)
}
 0x93f   : > { %3948 = dma.vmem_to_hbm [thread:$0]  (%p4841_p5), %s5531_s24, 2048, %s5528_s23, %s2921_s12, %s4611_s26, %s4611_s26, %s4612_s16  }
 0x940   : > { %s4614_s30 = smov [#allocation17]  }
 0x941   : > { %s2969_s19 = sshll.u32 %s4614_s30, 4  ;;  %s2970_s19 = int_to_ptr.vmem [resolvable:$true] %s2969_s19 }
 0x942   : > { %s4506_s11 = scalar_lea.vmem %s2970_s19, 256  ;;  %p4513_p12 = scmp.lt.s32.totalorder %s2970_s19, %s2970_s19 }
 0x943   : > { %p4507_p4 = scmp.ne.s32.totalorder %s2970_s19, %s4506_s11  ;;  %p4514_p1 = scmp.lt.s32.totalorder %s4506_s11, %s4506_s11 }
 0x945   : > { %p4508_p13 = pnand %p4507_p4, %p5645_p3  ;;  %p4515_p11 = por %p4514_p1, %p4513_p12 }
 0x947   : > { %p4509_p2 = pneg %p4508_p13 }
 0x949   : > { %p4516_p8 = pnand %p4515_p11, %p4509_p2 }
 0x94b   : > { %4519 = shalt.err (!%p4516_p8)
}
 0x94c   : > { %s5648_s27 = sld [smem:[#allocation27_spill]] }
 0x952   : > { %s5649_s22 = smov %s5648_s27  ;;  %s4520_s13 = scalar_lea.hbm %s5648_s27, 256 }
 0x953   : > { %p4521_p5 = scmp.ne.s32.totalorder %s5649_s22, %s4520_s13  ;;  %p4526_p7 = scmp.lt.u32.totalorder %s4520_s13, %s5649_s22 }
 0x955   : > { %p4522_p6 = pnand %p4521_p5, %p5645_p3 }
 0x957   : > { %p4523_p10 = pneg %p4522_p6 }
 0x959   : > { %p4528_p9 = pnand %p4526_p7, %p4523_p10 }
 0x95b   : > { %4531 = shalt.err (!%p4528_p9)
}
 0x95c   : > { %3952 = dma.vmem_to_hbm [thread:$0]  (%p5645_p3), %s2970_s19, 256, %s5649_s22, [#allocation16], %s4611_s26, %s4611_s26, %s4612_s16  }
 0x95d   : > { %4569 = dma.done.wait (%p5645_p3), [#allocation16], 512  }
 0x95e   : > { %4571 = vsyncadd (%p5645_p3), [#allocation16], 4294966784 }
 0x95f PF: > { %s5650_s30 = sld [smem:[#allocation23_spill]]  ;;  %s5651_s11 = sld [smem:[#allocation24_spill]] }
 0x960   : > { %p5653_p4 = scmp.ge.s32.totalorder %s4598_s10, 2 }
 0x965   : > { %s2992_s20 = sand.u32 1, %s5650_s30   ;;  %p5652_p0 = scmp.ne.s32.totalorder %s5651_s11, 0 }
 0x966   : > { %s2993_s17 = scalar_lea.sflag [#allocation7], %s2992_s20 }
 0x967   : > { %p3976_p13 = pnand %p5653_p4, %p5652_p0 }
 0x969   : > { %4573 = dma.done.wait (!%p3976_p13), %s2993_s17, 2048  }
 0x96a   : > { %4575 = vsyncadd (!%p3976_p13), %s2993_s17, 4294965248  ;;  %s28_s10 = sadd.s32 1, %s4598_s10   ;;  %s5654_s27 = smov %s4582_s28 }
 0x96b   : > { %p25_p2 = scmp.ge.s32.totalorder %s28_s10, 4   ;;  %s5655_s28 = smov %s4586_s29 }
 0x96c   : > { %s5656_s29 = smov %s4850_s21  ;;  %s5657_s30 = smov %s4594_s9 }
 0x96d   : > { %s5658_s9 = smov %s5660_s6  ;;  %27 = sbr.rel (!%p25_p2) target bundleno = 13 (0xd), region = 150 }
 0x974   :  { %2998 = vsyncpa [#allocation6], 1 }
 0x975   :  { %3000 = vsyncpa [#allocation6 + $0x1], 1 }
 0x976   :  { %3001 = vsyncpa [#allocation9], 1 }
 0x977   :  { %3002 = vsyncpa [#allocation12], 1 }
 0x978   :  { %3003 = vsyncpa [#allocation7], 1 }
 0x979   :  { %3005 = vsyncpa [#allocation7 + $0x1], 1 }
 0x97a   :  { %3006 = vsyncpa [#allocation16], 1 }

// kernel: tpu_custom_call.1
= control target key start
LH: loop header
LB: loop body
LE: loop exit
PB: predicated region body
PF: predicated region fallthrough
CT: control target
= control target key end

     0   :  { %s5608_s0 = inlined_call_operand.hbm [shape: f32[16,16,16], index: 0, kind: input, shape index: {}]   ;;  %s5609_s1 = inlined_call_operand.hbm [shape: f32[16,512], index: 1, kind: input, shape index: {}]   ;;  %s5610_s2 = inlined_call_operand.hbm [shape: f32[128,512], index: 2, kind: input, shape index: {}]   ;;  %s5611_s3 = inlined_call_operand.hbm [shape: f32[1,512], index: 3, kind: input, shape index: {}]   ;;  %s5612_s4 = inlined_call_operand.hbm [shape: f32[16,128], index: 4, kind: input, shape index: {}]   ;;  %s5613_s5 = inlined_call_operand.vmem [shape: f32[16,128], index: 5, kind: input, shape index: {}]   ;;  %s5614_s6 = inlined_call_operand.hbm [shape: f32[16,16,128], index: 6, kind: output, shape index: {0}]   ;;  %s5615_s7 = inlined_call_operand.hbm [shape: f32[16,128], index: 7, kind: output, shape index: {1}]   ;;  %s5616_s8 = inlined_call_operand.hbm [shape: f32[16,128], index: 8, kind: output, shape index: {2}]  }
   0x1   :  { %5627 = sst [smem:[#allocation25_spill]] %s5614_s6 }
   0x2   :  { %5628 = sst [smem:[#allocation26_spill]] %s5615_s7 }
   0x3   :  { %5629 = sst [smem:[#allocation27_spill]] %s5616_s8 }
   0x4   :  { %14 = vsyncpa [#allocation6], 0 }
   0x5   :  { %16 = vsyncpa [#allocation6 + $0x1], 0 }
   0x6   :  { %17 = vsyncpa [#allocation9], 0 }
   0x7   :  { %18 = vsyncpa [#allocation12], 0 }
   0x8   :  { %19 = vsyncpa [#allocation7], 0 }
   0x9   :  { %21 = vsyncpa [#allocation7 + $0x1], 0 }
   0xa   :  { %22 = vsyncpa [#allocation16], 0  ;;  %s4660_s27 = smov 0   ;;  %s4662_s28 = smov 0  }
   0xb   :  { %s4664_s29 = smov 0   ;;  %s4666_s30 = smov 0  }
   0xc   :  { %s4668_s9 = smov 0   ;;  %s4670_s10 = smov 0  }
   0xd LB: > { %5630 = sst [smem:[#allocation23_spill]] %s4578_s27  ;;  %s3136_s11 = sadd.s32 4294967295, %s4598_s10   ;;  %s4598_s10 = sphi %s4670_s10, %s28_s10   ;;  %s4594_s9 = sphi %s4668_s9, %s5658_s9   ;;  %s4590_s30 = sphi %s4666_s30, %s5657_s30   ;;  %s4586_s29 = sphi %s4664_s29, %s5656_s29   ;;  %s4582_s28 = sphi %s4662_s28, %s5655_s28   ;;  %s4578_s27 = sphi %s4660_s27, %s5654_s27  }
   0xe   : > { %s3137_s12 = sadd.s32 4294967294, %s4598_s10   ;;  %p62_p0 = scmp.ne.s32.totalorder %s4582_s28, %s4578_s27 }
   0xf   : > { %p4694_p1 = scmp.eq.s32.totalorder %s3136_s11, 0  ;;  %p4698_p2 = scmp.eq.s32.totalorder %s3136_s11, 1 }
  0x10   : > { %p209_p3 = scmp.eq.s32.totalorder %s3137_s12, 1  ;;  %p3138_p5 = scmp.ge.s32.totalorder %s4598_s10, 1 }
  0x11   : > { %s5631_s13 = scalar_select %p4694_p1, 1, 0 }
  0x12   : > { %s5632_s14 = scalar_select %p4698_p2, 1, 0 }
  0x13   : > { %p4704_p4 = por %p4694_p1, %p62_p0  ;;  %p4709_p6 = por %p209_p3, %p62_p0 }
  0x14   : > { %p268_p7 = scmp.lt.s32.totalorder %s4598_s10, 3  ;;  %s4600_s18 = smov [#allocation8]  }
  0x15   : > { %s5633_s15 = scalar_select %p4704_p4, 1, 0 }
  0x16   : > { %s5634_s16 = scalar_select %p4709_p6, 1, 0 }
  0x17   : > { %p4714_p8 = pnand %p3138_p5, %p268_p7  ;;  %s280_s19 = sshll.u32 %s4600_s18, 4  ;;  %s4718_s19 = int_to_ptr.vmem [resolvable:$true] %s280_s19 }
  0x18   : > { %5635 = sst [smem:[#allocation24_spill]] %s5634_s16  ;;  %s4601_s21 = smov [#allocation11]  }
  0x19   : > { %s5636_s17 = scalar_select %p4714_p8, 1, 0 }
  0x1a   : > { %p3958_p9 = pneg %p4714_p8  ;;  %s307_s22 = sshll.u32 %s4601_s21, 4  ;;  %s4729_s22 = int_to_ptr.vmem [resolvable:$true] %s307_s22 }
  0x1b   : > { %s4602_s23 = smov [#allocation10]   ;;  %s4310_s11 = scalar_lea.hbm %s5609_s1, 1024 }
  0x1c   : > { %p4725_p11 = pnand %p3958_p9, %p4694_p1  ;;  %s4731_s24 = sshll.u32 %s4602_s23, 4  ;;  %s294_s24 = int_to_ptr.vmem [resolvable:$true] %s4731_s24 }
  0x1d   : > { %p4311_p12 = scmp.ne.s32.totalorder %s5609_s1, %s4310_s11  ;;  %p4317_p5 = scmp.lt.u32.totalorder %s4310_s11, %s5609_s1 }
  0x1e   : > { %p4741_p13 = pneg %p4725_p11 }
  0x20   : > { %p4313_p0 = pnand %p4741_p13, %p4311_p12 }
  0x22   : > { %p4314_p3 = pneg %p4313_p0 }
  0x24   : > { %p4319_p7 = pnand %p4317_p5, %p4314_p3 }
  0x26   : > { %4322 = shalt.err (!%p4319_p7)
}
  0x27   : > { %s4323_s25 = scalar_lea.vmem %s4718_s19, 1024  ;;  %p4331_p1 = scmp.lt.s32.totalorder %s4718_s19, %s4718_s19 }
  0x28   : > { %p4324_p9 = scmp.ne.s32.totalorder %s4718_s19, %s4323_s25  ;;  %p4332_p4 = scmp.lt.s32.totalorder %s4323_s25, %s4323_s25 }
  0x2a   : > { %p4326_p10 = pnand %p4324_p9, %p4741_p13  ;;  %p4333_p12 = por %p4332_p4, %p4331_p1 }
  0x2c   : > { %p4327_p6 = pneg %p4326_p10 }
  0x2e   : > { %p4334_p0 = pnand %p4333_p12, %p4327_p6 }
  0x30   : > { %4337 = shalt.err (!%p4334_p0)
}
  0x31   : > { %s4603_s26 = smov 512   ;;  %s4604_s11 = smov 32  }
  0x32   : > { %3961 = dma.hbm_to_vmem [thread:$0]  (!%p4725_p11), %s5609_s1, 1024, %s4718_s19, [#allocation9], %s4603_s26, %s4603_s26, %s4604_s11  }
  0x33   : > { %s4338_s25 = scalar_lea.hbm %s5611_s3, 64 }
  0x34   : > { %p4339_p1 = scmp.ne.s32.totalorder %s5611_s3, %s4338_s25  ;;  %p4345_p10 = scmp.lt.u32.totalorder %s4338_s25, %s5611_s3 }
  0x36   : > { %p4341_p4 = pnand %p4339_p1, %p4741_p13 }
  0x38   : > { %p4342_p6 = pneg %p4341_p4 }
  0x3a   : > { %p4347_p3 = pnand %p4345_p10, %p4342_p6 }
  0x3c   : > { %4350 = shalt.err (!%p4347_p3)
}
  0x3d   : > { %s4351_s19 = scalar_lea.vmem %s4729_s22, 64  ;;  %p4359_p12 = scmp.lt.s32.totalorder %s4729_s22, %s4729_s22 }
  0x3e   : > { %p4352_p5 = scmp.ne.s32.totalorder %s4729_s22, %s4351_s19  ;;  %p4360_p0 = scmp.lt.s32.totalorder %s4351_s19, %s4351_s19 }
  0x40   : > { %p4354_p7 = pnand %p4352_p5, %p4741_p13  ;;  %p4361_p1 = por %p4360_p0, %p4359_p12 }
  0x42   : > { %p4355_p9 = pneg %p4354_p7 }
  0x44   : > { %p4362_p4 = pnand %p4361_p1, %p4355_p9 }
  0x46   : > { %4365 = shalt.err (!%p4362_p4)
}
  0x47   : > { %3967 = dma.hbm_to_vmem [thread:$0]  (!%p4725_p11), %s5611_s3, 64, %s4729_s22, [#allocation12]  }
  0x48   : > { %s4366_s12 = scalar_lea.hbm %s5610_s2, 8192 }
  0x49   : > { %p4367_p6 = scmp.ne.s32.totalorder %s5610_s2, %s4366_s12  ;;  %p4373_p5 = scmp.lt.u32.totalorder %s4366_s12, %s5610_s2 }
  0x4b   : > { %p4369_p10 = pnand %p4367_p6, %p4741_p13 }
  0x4d   : > { %p4370_p3 = pneg %p4369_p10 }
  0x4f   : > { %p4375_p7 = pnand %p4373_p5, %p4370_p3 }
  0x51   : > { %4378 = shalt.err (!%p4375_p7)
}
  0x52   : > { %s4379_s19 = scalar_lea.vmem %s294_s24, 8192  ;;  %p4387_p1 = scmp.lt.s32.totalorder %s294_s24, %s294_s24 }
  0x53   : > { %p4380_p9 = scmp.ne.s32.totalorder %s294_s24, %s4379_s19  ;;  %p4388_p4 = scmp.lt.s32.totalorder %s4379_s19, %s4379_s19 }
  0x55   : > { %p4382_p12 = pnand %p4380_p9, %p4741_p13  ;;  %p4389_p8 = por %p4388_p4, %p4387_p1 }
  0x57   : > { %p4383_p0 = pneg %p4382_p12 }
  0x59   : > { %p4390_p2 = pnand %p4389_p8, %p4383_p0 }
  0x5b   : > { %4393 = shalt.err (!%p4390_p2)
}
  0x5c   : > { %3964 = dma.hbm_to_vmem [thread:$0]  (!%p4725_p11), %s5610_s2, 8192, %s294_s24, [#allocation9], %s4603_s26, %s4603_s26, %s4604_s11  }
  0x5d   : > { %s4605_s7 = smov [#allocation13]   ;;  %s4394_s18 = scalar_lea.hbm %s5612_s4, 256 }
  0x5e   : > { %s320_s8 = sshll.u32 %s4605_s7, 4  ;;  %p4395_p2 = scmp.ne.s32.totalorder %s5612_s4, %s4394_s18  ;;  %s321_s8 = int_to_ptr.vmem [resolvable:$true] %s320_s8 }
  0x5f   : > { %p4401_p10 = scmp.lt.u32.totalorder %s4394_s18, %s5612_s4 }
  0x60   : > { %p4397_p8 = pnand %p4395_p2, %p4741_p13 }
  0x62   : > { %p4398_p6 = pneg %p4397_p8 }
  0x64   : > { %p4403_p3 = pnand %p4401_p10, %p4398_p6 }
  0x66   : > { %4406 = shalt.err (!%p4403_p3)
}
  0x67   : > { %s4407_s24 = scalar_lea.vmem %s321_s8, 256  ;;  %p4415_p12 = scmp.lt.s32.totalorder %s321_s8, %s321_s8 }
  0x68   : > { %p4408_p5 = scmp.ne.s32.totalorder %s321_s8, %s4407_s24  ;;  %p4416_p0 = scmp.lt.s32.totalorder %s4407_s24, %s4407_s24 }
  0x6a   : > { %p4410_p7 = pnand %p4408_p5, %p4741_p13  ;;  %p4417_p1 = por %p4416_p0, %p4415_p12 }
  0x6c   : > { %p4411_p9 = pneg %p4410_p7 }
  0x6e   : > { %p4418_p4 = pnand %p4417_p1, %p4411_p9 }
  0x70   : > { %4421 = shalt.err (!%p4418_p4)
}
  0x71   : > { %s4606_s26 = smov 128   ;;  %s4607_s16 = smov 8  }
  0x72   : > { %3970 = dma.hbm_to_vmem [thread:$0]  (!%p4725_p11), %s5612_s4, 256, %s321_s8, [#allocation12], %s4606_s26, %s4606_s26, %s4607_s16  }
  0x73   : > { %s37_s6 = sadd.s32 1, %s4594_s9  ;;  %s49_s7 = sadd.s32 1, %s4586_s29 }
  0x74   : > { %p38_p13 = scmp.ge.s32.totalorder %s37_s6, 2  ;;  %p56_p2 = scmp.ne.s32.totalorder %s4586_s29, %s4582_s28 }
  0x75   : > { %p57_p8 = scmp.eq.s32.totalorder %s4598_s10, 0  ;;  %p3983_p6 = scmp.lt.s32.totalorder %s4598_s10, 2 }
  0x76   : > { %s5660_s6 = smov (%p38_p13, %s37_s6), 0  ;;  %p5639_p3 = scmp.ne.s32.totalorder %s5632_s14, 0 }
  0x77   : > { %p58_p10 = por %p57_p8, %p56_p2  ;;  %s44_s27 = ssub.s32 %s4594_s9, %s5660_s6 }
  0x78   : > { %p4841_p5 = por %p5639_p3, %p56_p2  ;;  %s343_s12 = sand.u32 1, %s4586_s29  }
  0x79   : > { %p47_p7 = scmp.eq.s32.totalorder %s44_s27, 0  ;;  %s3145_s8 = sshll.u32 %s343_s12, 7 }
  0x7a   : > { %s3271_s18 = sshll.u32 %s4594_s9, 11  ;;  %s347_s24 = scalar_lea.vmem [#allocation5], %s3145_s8 }
  0x7b   : > { %s4850_s21 = scalar_select %p47_p7, %s4586_s29, %s49_s7  }
  0x7c   : > { %s4855_s19 = scalar_lea.hbm %s5608_s0, %s3271_s18  ;;  %s357_s11 = sshll.u32 %s347_s24, 4  ;;  %s4863_s11 = int_to_ptr.vmem [resolvable:$true] %s357_s11 }
  0x7d   : > { %p4859_p11 = pnand %p3983_p6, %p58_p10  ;;  %s4865_s7 = scalar_lea.sflag [#allocation6], %s343_s12 }
  0x7e   : > { %s4422_s27 = scalar_lea.hbm %s4855_s19, 2048  ;;  %s4427_s23 = scalar_lea.hbm %s5608_s0, 4096 }
  0x7f   : > { %p4423_p9 = scmp.ne.s32.totalorder %s4855_s19, %s4422_s27  ;;  %p4424_p12 = pneg %p4859_p11 }
  0x80   : > { %p4428_p4 = scmp.lt.u32.totalorder %s4855_s19, %s5608_s0  ;;  %p4429_p13 = scmp.lt.u32.totalorder %s4427_s23, %s4422_s27 }
  0x81   : > { %p4425_p0 = pnand %p4424_p12, %p4423_p9  ;;  %p4431_p8 = scmp.lt.u32.totalorder %s4422_s27, %s4855_s19 }
  0x82   : > { %p4430_p2 = por %p4429_p13, %p4428_p4 }
  0x83   : > { %p4426_p1 = pneg %p4425_p0 }
  0x84   : > { %p4432_p6 = por %p4431_p8, %p4430_p2 }
  0x86   : > { %p4433_p10 = pnand %p4432_p6, %p4426_p1 }
  0x88   : > { %4436 = shalt.err (!%p4433_p10)
}
  0x89   : > { %s4437_s12 = scalar_lea.vmem %s4863_s11, 2048  ;;  %s4608_s8 = smov [#allocation5]  }
  0x8a   : > { %p4438_p3 = scmp.ne.s32.totalorder %s4863_s11, %s4437_s12  ;;  %s4442_s18 = sshll.u32 %s4608_s8, 4  ;;  %s4443_s18 = int_to_ptr.vmem [resolvable:$false] %s4442_s18 }
  0x8b   : > { %s4444_s25 = scalar_lea.vmem %s4443_s18, 4096  ;;  %p4445_p0 = scmp.lt.s32.totalorder %s4863_s11, %s4443_s18 }
  0x8c   : > { %p4440_p7 = pnand %p4438_p3, %p4424_p12  ;;  %p4446_p4 = scmp.lt.s32.totalorder %s4444_s25, %s4437_s12 }
  0x8e   : > { %p4441_p9 = pneg %p4440_p7  ;;  %p4447_p13 = por %p4446_p4, %p4445_p0 }
  0x90   : > { %p4448_p2 = pnand %p4447_p13, %p4441_p9 }
  0x92   : > { %4451 = shalt.err (!%p4448_p2)
}
  0x93   : > { %3974 = dma.hbm_to_vmem [thread:$0]  (!%p4859_p11), %s4855_s19, 2048, %s4863_s11, %s4865_s7, %s4606_s26, %s4606_s26, %s4607_s16  }
  0x94   : > { %p5642_p12 = scmp.ne.s32.totalorder %s5636_s17, 0 }
  0x95   : > { %s4899_s27 = sand.u32 (!%p5642_p12), 1, %s4582_s28   ;;  %p5643_p1 = scmp.ne.s32.totalorder (!%p5642_p12), %s5633_s15, 0 }
  0x96   : > { %369 = sbr.rel (%p5642_p12) target bundleno = 2399 (0x95f), region = 44  ;;  %s3150_s23 = sshll.u32 (!%p5642_p12), %s4899_s27, 7 }
  0x97   : > { %s372_s24 = scalar_lea.sflag (!%p5642_p12), [#allocation6], %s4899_s27  ;;  %s4903_s12 = scalar_lea.vmem (!%p5642_p12), [#allocation5], %s3150_s23 }
  0x9d   : > { %4557 = dma.done.wait (%p5643_p1), %s372_s24, 2048  }
  0x9e   : > { %4559 = vsyncadd (%p5643_p1), %s372_s24, 4294965248  ;;  %p5644_p11 = scmp.ne.s32.totalorder %s5631_s13, 0 }
  0xa0   : > { %4561 = dma.done.wait (%p5644_p11), [#allocation9], 9216  }
  0xa1   : > { %4563 = vsyncadd (%p5644_p11), [#allocation9], 4294958080 }
  0xa2   : > { %4565 = dma.done.wait (%p5644_p11), [#allocation12], 320  }
  0xa3   : > { %4567 = vsyncadd (%p5644_p11), [#allocation12], 4294966976  ;;  %s4917_s17 = scalar_lea.vmem [#allocation14], %s3150_s23  ;;  %p3156_p8 = scmp.ne.s32.totalorder %s4590_s30, 0 }
  0xa4   : > { %v446_v0 = vld [vmem:[#allocation13] sm:$0xff] (!%p3156_p8)  ;;  %v447_v1 = vld [vmem:[#allocation13 + $0x8] sm:$0xff] (!%p3156_p8) }
  0xa5   : > { %445 = sbr.rel (%p3156_p8) target bundleno = 172 (0xac), region = 68  ;;  %v450_v2 = vld [vmem:[%s5613_s5] sm:$0xff] (!%p3156_p8)  ;;  %448 = vst [vmem:[#allocation3] sm:$0xff] (!%p3156_p8), %v446_v0  ;;  %449 = vst [vmem:[#allocation3 + $0x8] sm:$0xff] (!%p3156_p8), %v447_v1  ;;  %v451_v3 = vld [vmem:[%s5613_s5 + $0x8] sm:$0xff] (!%p3156_p8) }
  0xa6   : > { %452 = vst [vmem:[#allocation4] sm:$0xff] (!%p3156_p8), %v450_v2  ;;  %453 = vst [vmem:[#allocation4 + $0x8] sm:$0xff] (!%p3156_p8), %v451_v3 }
  0xac PF: > { %v455_v4 = vld [vmem:[#allocation8 + $0x8] sm:$0xff]  ;;  %v457_v6 = vld [vmem:[#allocation8 + $0x18] sm:$0xff]  ;;  %v454_v9 = vld [vmem:[#allocation8] sm:$0xff]  ;;  %v4609_v11 = vmov 0.0   ;;  %vm492_vm0 = vcmask 130048   ;;  %p3259_p6 = scmp.ne.s32.totalorder %s4590_s30, 1 }
  0xad   : > { %v459_v5 = vld [vmem:[#allocation8 + $0x28] sm:$0xff]  ;;  %v461_v8 = vld [vmem:[#allocation8 + $0x38] sm:$0xff]  ;;  %v458_v10 = vld [vmem:[#allocation8 + $0x20] sm:$0xff]  ;;  %581 = vmatprep.mubr.f32.mxu0 %v4609_v11  ;;  %694 = vmatprep.mubr.f32.mxu1 %v4609_v11 }
  0xae   : > { %v3274_v7 = vpack.c.bf16 %v459_v5, %v455_v4  ;;  %v3278_v12 = vpack.c.bf16 %v461_v8, %v457_v6  ;;  %v3276_v13 = vpack.c.bf16 %v458_v10, %v454_v9  ;;  %v456_v14 = vld [vmem:[#allocation8 + $0x10] sm:$0xff]  ;;  %v463_v17 = vld [vmem:[%s4903_s12] sm:$0xff]  ;;  %v1068_v18 = vld [vmem:[#allocation10 + $0x8] sm:$0xff] }
  0xaf   : > { %v460_v15 = vld [vmem:[#allocation8 + $0x30] sm:$0xff]  ;;  %v1072_v19 = vld [vmem:[#allocation10 + $0x28] sm:$0xff]  ;;  %v1070_v20 = vld [vmem:[#allocation10 + $0x18] sm:$0xff] }
  0xb0   : > { %3275 = vmatprep.subr.bf16.mxu0 %v3274_v7  ;;  %v3280_v16 = vpack.c.bf16 %v460_v15, %v456_v14  ;;  %3279 = vmatprep.subr.bf16.mxu1 %v3278_v12  ;;  %v1074_v21 = vld [vmem:[#allocation10 + $0x38] sm:$0xff]  ;;  %v4930_v22 = vpack.c.bf16 %v1072_v19, %v1068_v18  ;;  %v464_v24 = vld [vmem:[%s4903_s12 + $0x8] sm:$0xff]  ;;  %v465_v25 = vld [vmem:[%s4903_s12 + $0x10] sm:$0xff] }
  0xb1   : > { %3277 = vmatpush1.bf16.msra.mxu0 %v3276_v13  ;;  %v4932_v23 = vpack.c.bf16 %v1074_v21, %v1070_v20  ;;  %v466_v26 = vld [vmem:[%s4903_s12 + $0x18] sm:$0xff]  ;;  %v467_v27 = vld [vmem:[%s4903_s12 + $0x20] sm:$0xff]  ;;  %v468_v28 = vld [vmem:[%s4903_s12 + $0x28] sm:$0xff] }
  0xb2   : > { %3281 = vmatpush1.bf16.msra.mxu1 %v3280_v16  ;;  %3283 = vmatprep.subr.bf16.mxu0 %v3274_v7  ;;  %v469_v29 = vld [vmem:[%s4903_s12 + $0x30] sm:$0xff]  ;;  %v470_v30 = vld [vmem:[%s4903_s12 + $0x38] sm:$0xff]  ;;  %v1067_v31 = vld [vmem:[#allocation10] sm:$0xff] }
  0xb3   : > { %3287 = vmatprep.subr.bf16.mxu1 %v3278_v12  ;;  %v1071_v32 = vld [vmem:[#allocation10 + $0x20] sm:$0xff]  ;;  %v1069_v33 = vld [vmem:[#allocation10 + $0x10] sm:$0xff]  ;;  %v1076_v35 = vld [vmem:[#allocation10 + $0x48] sm:$0xff] }
  0xb4   : > { %3157 = vmatmul.mubr.msk.f32.vlgmr.msra.gmra.mrb[0].mxu0 %vm492_vm0, %v463_v17  ;;  %v1073_v34 = vld [vmem:[#allocation10 + $0x30] sm:$0xff]  ;;  %v1080_v36 = vld [vmem:[#allocation10 + $0x68] sm:$0xff]  ;;  %v3173_v37 = vld [vmem:[%s4903_s12 + $0x40] sm:$0xff]  ;;  %v4974_v38 = vpack.c.bf16 %v1071_v32, %v1067_v31 }
  0xb5   : > { %3165 = vmatmul.mubr.msk.f32.vlgmr.msra.gmra.mrb[0].mxu1 %vm492_vm0, %v463_v17  ;;  %3285 = vmatpush1.bf16.msra.mxu0 %v3276_v13  ;;  %v1078_v39 = vld [vmem:[#allocation10 + $0x58] sm:$0xff]  ;;  %v4977_v41 = vpack.c.bf16 %v1073_v34, %v1069_v33  ;;  %v1075_v42 = vld [vmem:[#allocation10 + $0x40] sm:$0xff]  ;;  %v4979_v44 = vpack.c.bf16 %v1080_v36, %v1076_v35  ;;  %v1077_v45 = vld [vmem:[#allocation10 + $0x50] sm:$0xff] }
  0xb6   : > { %587 = vmatprep.mubr.f32.mxu0 %v4609_v11  ;;  %700 = vmatprep.mubr.f32.mxu1 %v4609_v11  ;;  %v1082_v40 = vld [vmem:[#allocation10 + $0x78] sm:$0xff]  ;;  %v1079_v43 = vld [vmem:[#allocation10 + $0x60] sm:$0xff]  ;;  %v1081_v46 = vld [vmem:[#allocation10 + $0x70] sm:$0xff] }
  0xb7   : > { %3289 = vmatpush1.bf16.msra.mxu1 %v3280_v16  ;;  %3291 = vmatprep.subr.bf16.mxu0 %v4930_v22  ;;  %v4982_v47 = vpack.c.bf16 %v1082_v40, %v1078_v39  ;;  %v1084_v48 = vld [vmem:[#allocation10 + $0x88] sm:$0xff]  ;;  %v4987_v51 = vpack.c.bf16 %v1079_v43, %v1075_v42  ;;  %v1086_v52 = vld [vmem:[#allocation10 + $0x98] sm:$0xff]  ;;  %v4991_v54 = vpack.c.bf16 %v1081_v46, %v1077_v45  ;;  %v1083_v55 = vld [vmem:[#allocation10 + $0x80] sm:$0xff] }
  0xb8   : > { %3158 = vmatmul.mubr.msk.f32.gmra.mrb[2].mxu0 %vm492_vm0, %v464_v24  ;;  %3323 = vmatprep.subr.bf16.mxu1 %v4932_v23  ;;  %v1088_v49 = vld [vmem:[#allocation10 + $0xa8] sm:$0xff]  ;;  %v1090_v53 = vld [vmem:[#allocation10 + $0xb8] sm:$0xff]  ;;  %v1087_v56 = vld [vmem:[#allocation10 + $0xa0] sm:$0xff] }
  0xb9   : > { %3166 = vmatmul.mubr.msk.f32.gmra.mrb[2].mxu1 %vm492_vm0, %v464_v24  ;;  %593 = vmatprep.mubr.f32.mxu0 %v4609_v11  ;;  %v3174_v50 = vld [vmem:[%s4903_s12 + $0x48] sm:$0xff]  ;;  %v4995_v57 = vpack.c.bf16 %v1088_v49, %v1084_v48  ;;  %v1085_v58 = vld [vmem:[#allocation10 + $0x90] sm:$0xff]  ;;  %v4999_v60 = vpack.c.bf16 %v1090_v53, %v1086_v52  ;;  %v5004_v0 = vpack.c.bf16 %v1087_v56, %v1083_v55  ;;  %v1094_v1 = vld [vmem:[#allocation10 + $0xd8] sm:$0xff] }
  0xba   : > { %706 = vmatprep.mubr.f32.mxu1 %v4609_v11  ;;  %v1089_v59 = vld [vmem:[#allocation10 + $0xb0] sm:$0xff]  ;;  %v1092_v61 = vld [vmem:[#allocation10 + $0xc8] sm:$0xff]  ;;  %v1098_v2 = vld [vmem:[#allocation10 + $0xf8] sm:$0xff] }
  0xbb   : > { %v1096_v62 = vld [vmem:[#allocation10 + $0xe8] sm:$0xff]  ;;  %v3175_v63 = vld [vmem:[%s4903_s12 + $0x50] sm:$0xff]  ;;  %v5008_v3 = vpack.c.bf16 %v1089_v59, %v1085_v58  ;;  %v1091_v4 = vld [vmem:[#allocation10 + $0xc0] sm:$0xff]  ;;  %v5016_v9 = vpack.c.bf16 %v1098_v2, %v1094_v1 }
  0xbc   : > { %3159 = vmatmul.mubr.msk.f32.gmra.mrb[4].mxu0 %vm492_vm0, %v465_v25  ;;  %v1095_v5 = vld [vmem:[#allocation10 + $0xe0] sm:$0xff]  ;;  %v5012_v6 = vpack.c.bf16 %v1096_v62, %v1092_v61  ;;  %v1093_v7 = vld [vmem:[#allocation10 + $0xd0] sm:$0xff]  ;;  %v1100_v10 = vld [vmem:[#allocation10 + $0x108] sm:$0xff] }
  0xbd   : > { %3167 = vmatmul.mubr.msk.f32.gmra.mrb[4].mxu1 %vm492_vm0, %v465_v25  ;;  %599 = vmatprep.mubr.f32.mxu0 %v4609_v11  ;;  %v1097_v8 = vld [vmem:[#allocation10 + $0xf0] sm:$0xff]  ;;  %v1104_v12 = vld [vmem:[#allocation10 + $0x128] sm:$0xff]  ;;  %v3176_v13 = vld [vmem:[%s4903_s12 + $0x58] sm:$0xff]  ;;  %v5021_v14 = vpack.c.bf16 %v1095_v5, %v1091_v4 }
  0xbe   : > { %712 = vmatprep.mubr.f32.mxu1 %v4609_v11  ;;  %v1102_v15 = vld [vmem:[#allocation10 + $0x118] sm:$0xff]  ;;  %v5025_v17 = vpack.c.bf16 %v1097_v8, %v1093_v7  ;;  %v1099_v18 = vld [vmem:[#allocation10 + $0x100] sm:$0xff]  ;;  %v5029_v20 = vpack.c.bf16 %v1104_v12, %v1100_v10  ;;  %v1101_v21 = vld [vmem:[#allocation10 + $0x110] sm:$0xff] }
  0xbf   : > { %v1106_v16 = vld [vmem:[#allocation10 + $0x138] sm:$0xff]  ;;  %v1103_v19 = vld [vmem:[#allocation10 + $0x120] sm:$0xff]  ;;  %v1105_v24 = vld [vmem:[#allocation10 + $0x130] sm:$0xff] }
  0xc0   : > { %3160 = vmatmul.mubr.msk.f32.gmra.mrb[6].mxu0 %vm492_vm0, %v466_v26  ;;  %v5033_v25 = vpack.c.bf16 %v1106_v16, %v1102_v15  ;;  %v1114_v31 = vld [vmem:[#allocation10 + $0x178] sm:$0xff]  ;;  %v5042_v32 = vpack.c.bf16 %v1105_v24, %v1101_v21  ;;  %v1107_v33 = vld [vmem:[#allocation10 + $0x140] sm:$0xff]  ;;  %v1109_v36 = vld [vmem:[#allocation10 + $0x150] sm:$0xff]  ;;  %v472_v24 = vlaneseq }
  0xc1   : > { %3168 = vmatmul.mubr.msk.f32.gmra.mrb[6].mxu1 %vm492_vm0, %v466_v26  ;;  %605 = vmatprep.mubr.f32.mxu0 %v4609_v11  ;;  %v1108_v26 = vld [vmem:[#allocation10 + $0x148] sm:$0xff]  ;;  %v1111_v34 = vld [vmem:[#allocation10 + $0x160] sm:$0xff]  ;;  %v1118_v46 = vld [vmem:[#allocation10 + $0x198] sm:$0xff] }
  0xc2   : > { %718 = vmatprep.mubr.f32.mxu1 %v4609_v11  ;;  %v1116_v40 = vld [vmem:[#allocation10 + $0x188] sm:$0xff]  ;;  %v5055_v45 = vpack.c.bf16 %v1111_v34, %v1107_v33  ;;  %v1122_v48 = vld [vmem:[#allocation10 + $0x1b8] sm:$0xff]  ;;  %v1119_v52 = vld [vmem:[#allocation10 + $0x1a0] sm:$0xff] }
  0xc3   : > { %v1120_v42 = vld [vmem:[#allocation10 + $0x1a8] sm:$0xff]  ;;  %v1117_v55 = vld [vmem:[#allocation10 + $0x190] sm:$0xff]  ;;  %v5067_v58 = vpack.c.bf16 %v1122_v48, %v1118_v46  ;;  %v1126_v1 = vld [vmem:[#allocation10 + $0x1d8] sm:$0xff] }
  0xc4   : > { %3161 = vmatmul.mubr.msk.f32.gmra.mrb[8].mxu0 %vm492_vm0, %v467_v27  ;;  %v3178_v43 = vld [vmem:[%s4903_s12 + $0x68] sm:$0xff]  ;;  %v5063_v53 = vpack.c.bf16 %v1120_v42, %v1116_v40  ;;  %v1121_v56 = vld [vmem:[#allocation10 + $0x1b0] sm:$0xff]  ;;  %v1130_v2 = vld [vmem:[#allocation10 + $0x1f8] sm:$0xff] }
  0xc5   : > { %3169 = vmatmul.mubr.msk.f32.gmra.mrb[8].mxu1 %vm492_vm0, %v467_v27  ;;  %611 = vmatprep.mubr.f32.mxu0 %v4609_v11  ;;  %v1112_v27 = vld [vmem:[#allocation10 + $0x168] sm:$0xff]  ;;  %v3179_v62 = vld [vmem:[%s4903_s12 + $0x70] sm:$0xff]  ;;  %v5076_v4 = vpack.c.bf16 %v1121_v56, %v1117_v55  ;;  %v1123_v5 = vld [vmem:[#allocation10 + $0x1c0] sm:$0xff] }
  0xc6   : > { %724 = vmatprep.mubr.f32.mxu1 %v4609_v11  ;;  %v5046_v35 = vpack.c.bf16 %v1112_v27, %v1108_v26  ;;  %v1124_v59 = vld [vmem:[#allocation10 + $0x1c8] sm:$0xff]  ;;  %v1127_v7 = vld [vmem:[#allocation10 + $0x1e0] sm:$0xff]  ;;  %v1125_v10 = vld [vmem:[#allocation10 + $0x1d0] sm:$0xff]  ;;  %v473_v26 = vshrl.u32 %v472_v24, 7 }
  0xc7   : > { %v1128_v61 = vld [vmem:[#allocation10 + $0x1e8] sm:$0xff]  ;;  %v1129_v12 = vld [vmem:[#allocation10 + $0x1f0] sm:$0xff]  ;;  %v3180_v15 = vld [vmem:[%s4903_s12 + $0x78] sm:$0xff]  ;;  %v5089_v16 = vpack.c.bf16 %v1127_v7, %v1123_v5 }
  0xc8   : > { %3162 = vmatmul.mubr.msk.f32.gmra.mrb[10].mxu0 %vm492_vm0, %v468_v28  ;;  %v5080_v8 = vpack.c.bf16 %v1128_v61, %v1124_v59  ;;  %v1132_v21 = vld [vmem:[#allocation3 + $0x8] sm:$0xff]  ;;  %v474_v27 = vsub.s32 0, %v473_v26  ;;  %v482_v56 = vsub.s32 2, %v473_v26 }
  0xc9   : > { %3170 = vmatmul.mubr.msk.f32.gmra.mrb[10].mxu1 %vm492_vm0, %v468_v28  ;;  %617 = vmatprep.mubr.f32.mxu0 %v4609_v11  ;;  %v3177_v28 = vld [vmem:[%s4903_s12 + $0x60] sm:$0xff] }
  0xca   : > { %730 = vmatprep.mubr.f32.mxu1 %v4609_v11 }
  0xcc   : > { %3163 = vmatmul.mubr.msk.f32.gmra.mrb[12].mxu0 %vm492_vm0, %v469_v29 }
  0xcd   : > { %3171 = vmatmul.mubr.msk.f32.gmra.mrb[12].mxu1 %vm492_vm0, %v469_v29  ;;  %623 = vmatprep.mubr.f32.mxu0 %v4609_v11  ;;  %v5038_v29 = vpack.c.bf16 %v1103_v19, %v1099_v18  ;;  %v5093_v18 = vpack.c.bf16 %v1129_v12, %v1125_v10  ;;  %v1131_v19 = vld [vmem:[#allocation3] sm:$0xff] }
  0xce   : > { %736 = vmatprep.mubr.f32.mxu1 %v4609_v11 }
  0xd0   : > { %3164 = vmatmul.mubr.msk.f32.gmra.mrb[14].mxu0 %vm492_vm0, %v470_v30 }
  0xd1   : > { %3172 = vmatmul.mubr.msk.f32.gmra.mrb[14].mxu1 %vm492_vm0, %v470_v30  ;;  %872 = vmatprep.mubr.f32.mxu0 %v4609_v11  ;;  %v1110_v30 = vld [vmem:[#allocation10 + $0x158] sm:$0xff] }
  0xd2   : > { %985 = vmatprep.mubr.f32.mxu1 %v4609_v11  ;;  %v5050_v39 = vpack.c.bf16 %v1114_v31, %v1110_v30  ;;  %v478_v30 = vsub.s32 1, %v473_v26 }
  0xd4   : > { %3181 = vmatmul.mubr.msk.f32.vlgmr.msra.gmra.mrb[16].mxu0 %vm492_vm0, %v3173_v37 }
  0xd5   : > { %3189 = vmatmul.mubr.msk.f32.vlgmr.msra.gmra.mrb[16].mxu1 %vm492_vm0, %v3173_v37  ;;  %3293 = vmatpush1.bf16.msra.mxu0 %v4974_v38  ;;  %v1113_v37 = vld [vmem:[#allocation10 + $0x170] sm:$0xff] }
  0xd6   : > { %3325 = vmatpush1.bf16.msra.mxu1 %v4977_v41  ;;  %878 = vmatprep.mubr.f32.mxu0 %v4609_v11  ;;  %v5059_v49 = vpack.c.bf16 %v1113_v37, %v1109_v36  ;;  %v486_v36 = vsub.s32 3, %v473_v26 }
  0xd7   : > { %991 = vmatprep.mubr.f32.mxu1 %v4609_v11  ;;  %3295 = vmatprep.subr.bf16.mxu0 %v4979_v44 }
  0xd8   : > { %3182 = vmatmul.mubr.msk.f32.gmra.mrb[18].mxu0 %vm492_vm0, %v3174_v50  ;;  %3327 = vmatprep.subr.bf16.mxu1 %v4982_v47 }
  0xd9   : > { %3190 = vmatmul.mubr.msk.f32.gmra.mrb[18].mxu1 %vm492_vm0, %v3174_v50  ;;  %3297 = vmatpush1.bf16.msra.mxu0 %v4987_v51  ;;  %v1115_v50 = vld [vmem:[#allocation10 + $0x180] sm:$0xff] }
  0xda   : > { %3329 = vmatpush1.bf16.msra.mxu1 %v4991_v54  ;;  %884 = vmatprep.mubr.f32.mxu0 %v4609_v11 }
  0xdb   : > { %997 = vmatprep.mubr.f32.mxu1 %v4609_v11  ;;  %3299 = vmatprep.subr.bf16.mxu0 %v4995_v57 }
  0xdc   : > { %3183 = vmatmul.mubr.msk.f32.gmra.mrb[20].mxu0 %vm492_vm0, %v3175_v63  ;;  %3331 = vmatprep.subr.bf16.mxu1 %v4999_v60 }
  0xdd   : > { %3191 = vmatmul.mubr.msk.f32.gmra.mrb[20].mxu1 %vm492_vm0, %v3175_v63  ;;  %3301 = vmatpush1.bf16.msra.mxu0 %v5004_v0  ;;  %v5072_v63 = vpack.c.bf16 %v1119_v52, %v1115_v50 }
  0xde   : > { %3333 = vmatpush1.bf16.msra.mxu1 %v5008_v3  ;;  %890 = vmatprep.mubr.f32.mxu0 %v4609_v11 }
  0xdf   : > { %1003 = vmatprep.mubr.f32.mxu1 %v4609_v11  ;;  %3303 = vmatprep.subr.bf16.mxu0 %v5012_v6 }
  0xe0   : > { %3184 = vmatmul.mubr.msk.f32.gmra.mrb[22].mxu0 %vm492_vm0, %v3176_v13  ;;  %3335 = vmatprep.subr.bf16.mxu1 %v5016_v9 }
  0xe1   : > { %3192 = vmatmul.mubr.msk.f32.gmra.mrb[22].mxu1 %vm492_vm0, %v3176_v13  ;;  %3305 = vmatpush1.bf16.msra.mxu0 %v5021_v14  ;;  %v5084_v13 = vpack.c.bf16 %v1130_v2, %v1126_v1 }
  0xe2   : > { %3337 = vmatpush1.bf16.msra.mxu1 %v5025_v17  ;;  %896 = vmatprep.mubr.f32.mxu0 %v4609_v11 }
  0xe3   : > { %1009 = vmatprep.mubr.f32.mxu1 %v4609_v11  ;;  %3307 = vmatprep.subr.bf16.mxu0 %v5029_v20 }
  0xe4   : > { %3185 = vmatmul.mubr.msk.f32.gmra.mrb[24].mxu0 %vm492_vm0, %v3177_v28  ;;  %3339 = vmatprep.subr.bf16.mxu1 %v5033_v25 }
  0xe5   : > { %3193 = vmatmul.mubr.msk.f32.gmra.mrb[24].mxu1 %vm492_vm0, %v3177_v28  ;;  %3309 = vmatpush1.bf16.msra.mxu0 %v5038_v29  ;;  %v462_v28 = vld [vmem:[#allocation11] sm:$0xf] }
  0xe6   : > { %3341 = vmatpush1.bf16.msra.mxu1 %v5042_v32  ;;  %902 = vmatprep.mubr.f32.mxu0 %v4609_v11  ;;  %v5142_v31 = vrot.slane %v462_v28, %v474_v27  ;;  %v5144_v33 = vrot.slane %v462_v28, %v478_v30  ;;  %v5148_v52 = vrot.slane %v462_v28, %v486_v36 }
  0xe7   : > { %1015 = vmatprep.mubr.f32.mxu1 %v4609_v11  ;;  %3311 = vmatprep.subr.bf16.mxu0 %v5046_v35  ;;  %v5153_v12 = vrot.slane %v462_v28, %v482_v56 }
  0xe8   : > { %3186 = vmatmul.mubr.msk.f32.gmra.mrb[26].mxu0 %vm492_vm0, %v3178_v43  ;;  %3343 = vmatprep.subr.bf16.mxu1 %v5050_v39 }
  0xe9   : > { %3194 = vmatmul.mubr.msk.f32.gmra.mrb[26].mxu1 %vm492_vm0, %v3178_v43  ;;  %3313 = vmatpush1.bf16.msra.mxu0 %v5055_v45 }
  0xea   : > { %3345 = vmatpush1.bf16.msra.mxu1 %v5059_v49  ;;  %908 = vmatprep.mubr.f32.mxu0 %v4609_v11 }
  0xeb   : > { %1021 = vmatprep.mubr.f32.mxu1 %v4609_v11  ;;  %3315 = vmatprep.subr.bf16.mxu0 %v5063_v53 }
  0xec   : > { %3187 = vmatmul.mubr.msk.f32.gmra.mrb[28].mxu0 %vm492_vm0, %v3179_v62  ;;  %3347 = vmatprep.subr.bf16.mxu1 %v5067_v58 }
  0xed   : > { %3195 = vmatmul.mubr.msk.f32.gmra.mrb[28].mxu1 %vm492_vm0, %v3179_v62  ;;  %3317 = vmatpush1.bf16.msra.mxu0 %v5072_v63 }
  0xee   : > { %3349 = vmatpush1.bf16.msra.mxu1 %v5076_v4  ;;  %914 = vmatprep.mubr.f32.mxu0 %v4609_v11 }
  0xef   : > { %1027 = vmatprep.mubr.f32.mxu1 %v4609_v11  ;;  %3319 = vmatprep.subr.bf16.mxu0 %v5080_v8 }
  0xf0   : > { %3188 = vmatmul.mubr.msk.f32.gmra.mrb[30].mxu0 %vm492_vm0, %v3180_v15  ;;  %3351 = vmatprep.subr.bf16.mxu1 %v5084_v13 }
  0xf1   : > { %3196 = vmatmul.mubr.msk.f32.gmra.mrb[30].mxu1 %vm492_vm0, %v3180_v15  ;;  %3321 = vmatpush1.bf16.msra.mxu0 %v5089_v16 }
  0xf2   : > { %3353 = vmatpush1.bf16.msra.mxu1 %v5093_v18  ;;  %1207 = vmatprep.mubr.f32.mxu0 %v4609_v11 }
  0xf3   : > { %1284 = vmatprep.mubr.f32.mxu1 %v4609_v11  ;;  %3355 = vmatprep.subr.bf16.mxu0 %v4930_v22 }
  0xf4   : > { %1208 = vmatmul.mubr.f32.vlgmr.msra.gmra.mrb[0].mxu0 %v1131_v19  ;;  %3387 = vmatprep.subr.bf16.mxu1 %v4932_v23 }
  0xf5   : > { %1285 = vmatmul.mubr.f32.vlgmr.msra.gmra.mrb[0].mxu1 %v1131_v19  ;;  %1213 = vmatprep.mubr.f32.mxu0 %v4609_v11 }
  0xf6   : > { %1290 = vmatprep.mubr.f32.mxu1 %v4609_v11  ;;  %3357 = vmatpush1.bf16.msra.mxu0 %v4974_v38 }
  0xf7   : > { %3389 = vmatpush1.bf16.msra.mxu1 %v4977_v41  ;;  %3359 = vmatprep.subr.bf16.mxu0 %v4979_v44 }
  0xf8   : > { %1214 = vmatmul.mubr.f32.gmra.mrb[2].mxu0 %v1132_v21  ;;  %3391 = vmatprep.subr.bf16.mxu1 %v4982_v47 }
  0xf9   : > { %1291 = vmatmul.mubr.f32.gmra.mrb[2].mxu1 %v1132_v21  ;;  %1428 = vmatprep.mubr.f32.mxu0 %v4609_v11 }
  0xfa   : > { %3361 = vmatpush1.bf16.msra.mxu0 %v4987_v51  ;;  %1505 = vmatprep.mubr.f32.mxu1 %v4609_v11 }
  0xfb   : > { %3393 = vmatpush1.bf16.msra.mxu1 %v4991_v54  ;;  %3363 = vmatprep.subr.bf16.mxu0 %v4995_v57 }
  0xfc   : > { %3395 = vmatprep.subr.bf16.mxu1 %v4999_v60 }
  0xfe   : > { %3365 = vmatpush1.bf16.msra.mxu0 %v5004_v0 }
  0xff   : > { %3397 = vmatpush1.bf16.msra.mxu1 %v5008_v3  ;;  %3367 = vmatprep.subr.bf16.mxu0 %v5012_v6 }
 0x100   : > { %3399 = vmatprep.subr.bf16.mxu1 %v5016_v9 }
 0x102   : > { %3369 = vmatpush1.bf16.msra.mxu0 %v5021_v14 }
 0x103   : > { %3401 = vmatpush1.bf16.msra.mxu1 %v5025_v17  ;;  %3371 = vmatprep.subr.bf16.mxu0 %v5029_v20 }
 0x104   : > { %3403 = vmatprep.subr.bf16.mxu1 %v5033_v25 }
 0x106   : > { %3373 = vmatpush1.bf16.msra.mxu0 %v5038_v29 }
 0x107   : > { %3405 = vmatpush1.bf16.msra.mxu1 %v5042_v32  ;;  %3375 = vmatprep.subr.bf16.mxu0 %v5046_v35 }
 0x108   : > { %3407 = vmatprep.subr.bf16.mxu1 %v5050_v39 }
 0x10a   : > { %3377 = vmatpush1.bf16.msra.mxu0 %v5055_v45 }
 0x10b   : > { %3409 = vmatpush1.bf16.msra.mxu1 %v5059_v49  ;;  %3379 = vmatprep.subr.bf16.mxu0 %v5063_v53 }
 0x10c   : > { %3411 = vmatprep.subr.bf16.mxu1 %v5067_v58 }
 0x10e   : > { %3381 = vmatpush1.bf16.msra.mxu0 %v5072_v63 }
 0x10f   : > { %3413 = vmatpush1.bf16.msra.mxu1 %v5076_v4  ;;  %3383 = vmatprep.subr.bf16.mxu0 %v5080_v8 }
 0x110   : > { %3415 = vmatprep.subr.bf16.mxu1 %v5084_v13 }
 0x112   : > { %3385 = vmatpush1.bf16.msra.mxu0 %v5089_v16 }
 0x113   : > { %3417 = vmatpush1.bf16.msra.mxu1 %v5093_v18  ;;  %3419 = vmatprep.subr.bf16.mxu0 %v4930_v22 }
 0x114   : > { %3451 = vmatprep.subr.bf16.mxu1 %v4932_v23 }
 0x1c7   : > { %v1209_v34 = vpop.f32.mrb[0].mxu0 }
 0x1c8   : > { %v3802_v37 = vadd.f32 %v1209_v34, %v5142_v31  ;;  %v1286_v40 = vpop.f32.mrb[0].mxu1  ;;  %v1211_v42 = vpop.f32.mrb[1].mxu0 }
 0x1c9   : > { %v3803_v43 = vadd.f32 %v1211_v42, %v5144_v33  ;;  %v1288_v46 = vpop.f32.mrb[1].mxu1  ;;  %v3818_v21 = vadd.f32 %v1286_v40, %v5153_v12 }
 0x1ca   : > { %v3197_v48 = vmul.f32 -1.442695, %v3802_v37  ;;  %v3819_v7 = vadd.f32 %v1288_v46, %v5148_v52 }
 0x1cb   : > { %v3199_v50 = vmul.f32 -1.442695, %v3803_v43  ;;  %v1215_v55 = vpop.f32.mrb[2].mxu0 }
 0x1cc   : > { %4054 = vpow2.f32 %v3197_v48  ;;  %v3804_v59 = vadd.f32 %v1215_v55, %v5142_v31  ;;  %v1292_v61 = vpop.f32.mrb[2].mxu1  ;;  %v1217_v62 = vpop.f32.mrb[3].mxu0  ;;  %v3201_v15 = vmul.f32 -1.442695, %v3819_v7  ;;  %v1133_v48 = vld [vmem:[#allocation4] sm:$0xff] }
 0x1cd   : > { %4056 = vpow2.f32 %v3199_v50  ;;  %v3805_v1 = vadd.f32 %v1217_v62, %v5144_v33  ;;  %v1294_v2 = vpop.f32.mrb[3].mxu1  ;;  %v3820_v36 = vadd.f32 %v1292_v61, %v5153_v12 }
 0x1ce   : > { %v3198_v5 = vmul.f32 -1.442695, %v3804_v59  ;;  %v3821_v19 = vadd.f32 %v1294_v2, %v5148_v52  ;;  %v1134_v2 = vld [vmem:[#allocation4 + $0x8] sm:$0xff] }
 0x1cf   : > { %v3200_v10 = vmul.f32 -1.442695, %v3805_v1 }
 0x1d0   : > { %4058 = vpow2.f32 %v3198_v5  ;;  %v3202_v30 = vmul.f32 -1.442695, %v3821_v19 }
 0x1d1   : > { %4060 = vpow2.f32 %v3200_v10 }
 0x1d2   : > { %4062 = vpow2.f32 %v3201_v15 }
 0x1d3   : > { %4064 = vtanh.f32 %v3818_v21 }
 0x1d6   : > { %v4055_v24 = vpop.eup %4054 }
 0x1d7   : > { %v4057_v26 = vpop.eup %4056  ;;  %v1311_v27 = vadd.f32 1.0, %v4055_v24 }
 0x1d8   : > { %v1323_v34 = vadd.f32 1.0, %v4057_v26 }
 0x1d9   : > { %4066 = vrcp.f32 %v1311_v27 }
 0x1da   : > { %v4059_v37 = vpop.eup %4058  ;;  %4068 = vrcp.f32 %v1323_v34 }
 0x1db   : > { %v4061_v28 = vpop.eup %4060  ;;  %v1312_v42 = vadd.f32 1.0, %v4059_v37  ;;  %4070 = vpow2.f32 %v3202_v30 }
 0x1dc   : > { %4072 = vtanh.f32 %v3820_v36  ;;  %v1324_v43 = vadd.f32 1.0, %v4061_v28  ;;  %v4063_v40 = vpop.eup %4062 }
 0x1dd   : > { %4074 = vrcp.f32 %v1312_v42  ;;  %v4065_v46 = vpop.eup %4064  ;;  %v1337_v59 = vadd.f32 1.0, %v4063_v40 }
 0x1de   : > { %4076 = vrcp.f32 %v1324_v43 }
 0x1df   : > { %4078 = vrcp.f32 %v1337_v59 }
 0x1e3   : > { %v4067_v50 = vpop.eup %4066 }
 0x1e4   : > { %v4069_v55 = vpop.eup %4068  ;;  %v1345_v56 = vmul.f32 %v4067_v50, %v4065_v46 }
 0x1e5   : > { %v4071_v62 = vpop.eup %4070  ;;  %v1343_v1 = vmul.f32 %v4069_v55, %v1133_v48 }
 0x1e6   : > { %v4073_v61 = vpop.eup %4072  ;;  %v1338_v19 = vadd.f32 1.0, %v4071_v62 }
 0x1e7   : > { %v4075_v5 = vpop.eup %4074  ;;  %v5158_v7 = vadd.f32 %v1345_v56, %v1343_v1 }
 0x1e8   : > { %v4077_v10 = vpop.eup %4076  ;;  %v1346_v15 = vmul.f32 %v4075_v5, %v4073_v61 }
 0x1e9   : > { %4080 = vtanh.f32 %v5158_v7  ;;  %v1344_v21 = vmul.f32 %v4077_v10, %v1134_v2  ;;  %v4079_v26 = vpop.eup %4078 }
 0x1ea   : > { %4082 = vrcp.f32 %v1338_v19 }
 0x1eb   : > { %v5161_v24 = vadd.f32 %v1346_v15, %v1344_v21 }
 0x1ed   : > { %4084 = vtanh.f32 %v5161_v24 }
 0x1f3   : > { %v4081_v27 = vpop.eup %4080 }
 0x1f4   : > { %v1351_v30 = vmul.f32 %v4081_v27, %v4079_v26  ;;  %v4083_v34 = vpop.eup %4082 }
 0x1f6   : > { %1353 = vst [vmem:[%s4917_s17] sm:$0xff] %v1351_v30  ;;  %1429 = vmatmul.mubr.f32.vlgmr.msra.gmra.mrb[4].mxu0 %v1351_v30  ;;  %1506 = vmatmul.mubr.f32.vlgmr.msra.gmra.mrb[4].mxu1 %v1351_v30 }
 0x1f7   : > { %v4085_v36 = vpop.eup %4084  ;;  %1434 = vmatprep.mubr.f32.mxu0 %v4609_v11  ;;  %1511 = vmatprep.mubr.f32.mxu1 %v4609_v11 }
 0x1f8   : > { %v1352_v37 = vmul.f32 %v4085_v36, %v4083_v34  ;;  %3421 = vmatpush1.bf16.msra.mxu0 %v4974_v38  ;;  %3453 = vmatpush1.bf16.msra.mxu1 %v4977_v41 }
 0x1f9   : > { %3423 = vmatprep.subr.bf16.mxu0 %v4979_v44  ;;  %3455 = vmatprep.subr.bf16.mxu1 %v4982_v47 }
 0x1fa   : > { %1354 = vst [vmem:[%s4917_s17 + $0x8] sm:$0xff] %v1352_v37  ;;  %1435 = vmatmul.mubr.f32.gmra.mrb[6].mxu0 %v1352_v37  ;;  %1512 = vmatmul.mubr.f32.gmra.mrb[6].mxu1 %v1352_v37 }
 0x1fb   : > { %1650 = vmatprep.mubr.f32.mxu0 %v4609_v11  ;;  %1727 = vmatprep.mubr.f32.mxu1 %v4609_v11 }
 0x1fc   : > { %3425 = vmatpush1.bf16.msra.mxu0 %v4987_v51  ;;  %3457 = vmatpush1.bf16.msra.mxu1 %v4991_v54 }
 0x1fd   : > { %3427 = vmatprep.subr.bf16.mxu0 %v4995_v57  ;;  %3459 = vmatprep.subr.bf16.mxu1 %v4999_v60 }
 0x200   : > { %3429 = vmatpush1.bf16.msra.mxu0 %v5004_v0  ;;  %3461 = vmatpush1.bf16.msra.mxu1 %v5008_v3 }
 0x201   : > { %3431 = vmatprep.subr.bf16.mxu0 %v5012_v6  ;;  %3463 = vmatprep.subr.bf16.mxu1 %v5016_v9 }
 0x204   : > { %3433 = vmatpush1.bf16.msra.mxu0 %v5021_v14  ;;  %3465 = vmatpush1.bf16.msra.mxu1 %v5025_v17 }
 0x205   : > { %3435 = vmatprep.subr.bf16.mxu0 %v5029_v20  ;;  %3467 = vmatprep.subr.bf16.mxu1 %v5033_v25 }
 0x208   : > { %3437 = vmatpush1.bf16.msra.mxu0 %v5038_v29  ;;  %3469 = vmatpush1.bf16.msra.mxu1 %v5042_v32 }
 0x209   : > { %3439 = vmatprep.subr.bf16.mxu0 %v5046_v35  ;;  %3471 = vmatprep.subr.bf16.mxu1 %v5050_v39 }
 0x20c   : > { %3441 = vmatpush1.bf16.msra.mxu0 %v5055_v45  ;;  %3473 = vmatpush1.bf16.msra.mxu1 %v5059_v49 }
 0x20d   : > { %3443 = vmatprep.subr.bf16.mxu0 %v5063_v53  ;;  %3475 = vmatprep.subr.bf16.mxu1 %v5067_v58 }
 0x210   : > { %3445 = vmatpush1.bf16.msra.mxu0 %v5072_v63  ;;  %3477 = vmatpush1.bf16.msra.mxu1 %v5076_v4 }
 0x211   : > { %3447 = vmatprep.subr.bf16.mxu0 %v5080_v8  ;;  %3479 = vmatprep.subr.bf16.mxu1 %v5084_v13 }
 0x214   : > { %3449 = vmatpush1.bf16.msra.mxu0 %v5089_v16  ;;  %3481 = vmatpush1.bf16.msra.mxu1 %v5093_v18 }
 0x215   : > { %3483 = vmatprep.subr.bf16.mxu0 %v4930_v22  ;;  %3515 = vmatprep.subr.bf16.mxu1 %v4932_v23 }
 0x2c9   : > { %v1430_v28 = vpop.f32.mrb[4].mxu0  ;;  %v1507_v42 = vpop.f32.mrb[4].mxu1 }
 0x2ca   : > { %v3806_v43 = vadd.f32 %v1430_v28, %v5142_v31  ;;  %v1432_v40 = vpop.f32.mrb[5].mxu0  ;;  %v1509_v46 = vpop.f32.mrb[5].mxu1  ;;  %v3822_v26 = vadd.f32 %v1507_v42, %v5153_v12 }
 0x2cb   : > { %v3807_v48 = vadd.f32 %v1432_v40, %v5144_v33  ;;  %v3823_v10 = vadd.f32 %v1509_v46, %v5148_v52 }
 0x2cc   : > { %v3203_v50 = vmul.f32 -1.442695, %v3806_v43 }
 0x2cd   : > { %v3205_v55 = vmul.f32 -1.442695, %v3807_v48  ;;  %v1436_v56 = vpop.f32.mrb[6].mxu0  ;;  %v1513_v59 = vpop.f32.mrb[6].mxu1  ;;  %v3207_v19 = vmul.f32 -1.442695, %v3823_v10 }
 0x2ce   : > { %4086 = vpow2.f32 %v3203_v50  ;;  %v3808_v62 = vadd.f32 %v1436_v56, %v5142_v31  ;;  %v1438_v1 = vpop.f32.mrb[7].mxu0  ;;  %v1515_v61 = vpop.f32.mrb[7].mxu1  ;;  %v3824_v28 = vadd.f32 %v1513_v59, %v5153_v12 }
 0x2cf   : > { %4088 = vpow2.f32 %v3205_v55  ;;  %v3809_v2 = vadd.f32 %v1438_v1, %v5144_v33  ;;  %v3825_v21 = vadd.f32 %v1515_v61, %v5148_v52 }
 0x2d0   : > { %v3204_v5 = vmul.f32 -1.442695, %v3808_v62 }
 0x2d1   : > { %v3206_v15 = vmul.f32 -1.442695, %v3809_v2  ;;  %v3208_v36 = vmul.f32 -1.442695, %v3825_v21 }
 0x2d2   : > { %4090 = vpow2.f32 %v3204_v5 }
 0x2d3   : > { %4092 = vpow2.f32 %v3206_v15 }
 0x2d4   : > { %4094 = vpow2.f32 %v3207_v19 }
 0x2d5   : > { %4096 = vtanh.f32 %v3822_v26 }
 0x2d8   : > { %v4087_v27 = vpop.eup %4086 }
 0x2d9   : > { %v4089_v30 = vpop.eup %4088  ;;  %v1532_v34 = vadd.f32 1.0, %v4087_v27 }
 0x2da   : > { %v1544_v37 = vadd.f32 1.0, %v4089_v30 }
 0x2db   : > { %4098 = vrcp.f32 %v1532_v34 }
 0x2dc   : > { %v4091_v43 = vpop.eup %4090  ;;  %4100 = vrcp.f32 %v1544_v37 }
 0x2dd   : > { %v4093_v40 = vpop.eup %4092  ;;  %v1533_v46 = vadd.f32 1.0, %v4091_v43  ;;  %4102 = vpow2.f32 %v3208_v36 }
 0x2de   : > { %4104 = vtanh.f32 %v3824_v28  ;;  %v1545_v48 = vadd.f32 1.0, %v4093_v40  ;;  %v4095_v42 = vpop.eup %4094 }
 0x2df   : > { %4106 = vrcp.f32 %v1533_v46  ;;  %v4097_v50 = vpop.eup %4096  ;;  %v1558_v1 = vadd.f32 1.0, %v4095_v42 }
 0x2e0   : > { %4108 = vrcp.f32 %v1545_v48 }
 0x2e1   : > { %4110 = vrcp.f32 %v1558_v1 }
 0x2e5   : > { %v4099_v55 = vpop.eup %4098 }
 0x2e6   : > { %v4101_v56 = vpop.eup %4100  ;;  %v1566_v62 = vmul.f32 %v4099_v55, %v4097_v50 }
 0x2e7   : > { %v4103_v61 = vpop.eup %4102  ;;  %v1564_v2 = vmul.f32 %v4101_v56, %v5158_v7 }
 0x2e8   : > { %v4105_v59 = vpop.eup %4104  ;;  %v1559_v21 = vadd.f32 1.0, %v4103_v61 }
 0x2e9   : > { %v4107_v5 = vpop.eup %4106  ;;  %v5211_v10 = vadd.f32 %v1566_v62, %v1564_v2 }
 0x2ea   : > { %v4109_v15 = vpop.eup %4108  ;;  %v1567_v19 = vmul.f32 %v4107_v5, %v4105_v59 }
 0x2eb   : > { %4112 = vtanh.f32 %v5211_v10  ;;  %v1565_v26 = vmul.f32 %v4109_v15, %v5161_v24  ;;  %v4111_v7 = vpop.eup %4110 }
 0x2ec   : > { %4114 = vrcp.f32 %v1559_v21 }
 0x2ed   : > { %v5215_v27 = vadd.f32 %v1567_v19, %v1565_v26 }
 0x2ef   : > { %4116 = vtanh.f32 %v5215_v27 }
 0x2f5   : > { %v4113_v30 = vpop.eup %4112 }
 0x2f6   : > { %v1572_v34 = vmul.f32 %v4113_v30, %v4111_v7  ;;  %v4115_v36 = vpop.eup %4114 }
 0x2f8   : > { %3209 = vst [vmem:[%s4917_s17 + $0x10] sm:$0xff] %v1572_v34  ;;  %1651 = vmatmul.mubr.f32.vlgmr.msra.gmra.mrb[8].mxu0 %v1572_v34  ;;  %1728 = vmatmul.mubr.f32.vlgmr.msra.gmra.mrb[8].mxu1 %v1572_v34 }
 0x2f9   : > { %v4117_v37 = vpop.eup %4116  ;;  %1656 = vmatprep.mubr.f32.mxu0 %v4609_v11  ;;  %1733 = vmatprep.mubr.f32.mxu1 %v4609_v11 }
 0x2fa   : > { %v1573_v28 = vmul.f32 %v4117_v37, %v4115_v36  ;;  %3485 = vmatpush1.bf16.msra.mxu0 %v4974_v38  ;;  %3517 = vmatpush1.bf16.msra.mxu1 %v4977_v41 }
 0x2fb   : > { %3487 = vmatprep.subr.bf16.mxu0 %v4979_v44  ;;  %3519 = vmatprep.subr.bf16.mxu1 %v4982_v47 }
 0x2fc   : > { %3210 = vst [vmem:[%s4917_s17 + $0x18] sm:$0xff] %v1573_v28  ;;  %1657 = vmatmul.mubr.f32.gmra.mrb[10].mxu0 %v1573_v28  ;;  %1734 = vmatmul.mubr.f32.gmra.mrb[10].mxu1 %v1573_v28 }
 0x2fd   : > { %1872 = vmatprep.mubr.f32.mxu0 %v4609_v11  ;;  %1949 = vmatprep.mubr.f32.mxu1 %v4609_v11 }
 0x2fe   : > { %3489 = vmatpush1.bf16.msra.mxu0 %v4987_v51  ;;  %3521 = vmatpush1.bf16.msra.mxu1 %v4991_v54 }
 0x2ff   : > { %3491 = vmatprep.subr.bf16.mxu0 %v4995_v57  ;;  %3523 = vmatprep.subr.bf16.mxu1 %v4999_v60 }
 0x302   : > { %3493 = vmatpush1.bf16.msra.mxu0 %v5004_v0  ;;  %3525 = vmatpush1.bf16.msra.mxu1 %v5008_v3 }
 0x303   : > { %3495 = vmatprep.subr.bf16.mxu0 %v5012_v6  ;;  %3527 = vmatprep.subr.bf16.mxu1 %v5016_v9 }
 0x306   : > { %3497 = vmatpush1.bf16.msra.mxu0 %v5021_v14  ;;  %3529 = vmatpush1.bf16.msra.mxu1 %v5025_v17 }
 0x307   : > { %3499 = vmatprep.subr.bf16.mxu0 %v5029_v20  ;;  %3531 = vmatprep.subr.bf16.mxu1 %v5033_v25 }
 0x30a   : > { %3501 = vmatpush1.bf16.msra.mxu0 %v5038_v29  ;;  %3533 = vmatpush1.bf16.msra.mxu1 %v5042_v32 }
 0x30b   : > { %3503 = vmatprep.subr.bf16.mxu0 %v5046_v35  ;;  %3535 = vmatprep.subr.bf16.mxu1 %v5050_v39 }
 0x30e   : > { %3505 = vmatpush1.bf16.msra.mxu0 %v5055_v45  ;;  %3537 = vmatpush1.bf16.msra.mxu1 %v5059_v49 }
 0x30f   : > { %3507 = vmatprep.subr.bf16.mxu0 %v5063_v53  ;;  %3539 = vmatprep.subr.bf16.mxu1 %v5067_v58 }
 0x312   : > { %3509 = vmatpush1.bf16.msra.mxu0 %v5072_v63  ;;  %3541 = vmatpush1.bf16.msra.mxu1 %v5076_v4 }
 0x313   : > { %3511 = vmatprep.subr.bf16.mxu0 %v5080_v8  ;;  %3543 = vmatprep.subr.bf16.mxu1 %v5084_v13 }
 0x316   : > { %3513 = vmatpush1.bf16.msra.mxu0 %v5089_v16  ;;  %3545 = vmatpush1.bf16.msra.mxu1 %v5093_v18 }
 0x317   : > { %3547 = vmatprep.subr.bf16.mxu0 %v4930_v22  ;;  %3579 = vmatprep.subr.bf16.mxu1 %v4932_v23 }
 0x3cb   : > { %v1652_v24 = vpop.f32.mrb[8].mxu0  ;;  %v1729_v43 = vpop.f32.mrb[8].mxu1 }
 0x3cc   : > { %v3810_v40 = vadd.f32 %v1652_v24, %v5142_v31  ;;  %v1654_v46 = vpop.f32.mrb[9].mxu0  ;;  %v1731_v48 = vpop.f32.mrb[9].mxu1  ;;  %v3826_v7 = vadd.f32 %v1729_v43, %v5153_v12 }
 0x3cd   : > { %v3811_v42 = vadd.f32 %v1654_v46, %v5144_v33  ;;  %v3827_v15 = vadd.f32 %v1731_v48, %v5148_v52 }
 0x3ce   : > { %v3211_v50 = vmul.f32 -1.442695, %v3810_v40 }
 0x3cf   : > { %v3213_v55 = vmul.f32 -1.442695, %v3811_v42  ;;  %v1658_v56 = vpop.f32.mrb[10].mxu0  ;;  %v1735_v62 = vpop.f32.mrb[10].mxu1  ;;  %v3215_v21 = vmul.f32 -1.442695, %v3827_v15 }
 0x3d0   : > { %4118 = vpow2.f32 %v3211_v50  ;;  %v3812_v1 = vadd.f32 %v1658_v56, %v5142_v31  ;;  %v1660_v61 = vpop.f32.mrb[11].mxu0  ;;  %v1737_v2 = vpop.f32.mrb[11].mxu1  ;;  %v3828_v24 = vadd.f32 %v1735_v62, %v5153_v12 }
 0x3d1   : > { %4120 = vpow2.f32 %v3213_v55  ;;  %v3813_v59 = vadd.f32 %v1660_v61, %v5144_v33  ;;  %v3829_v26 = vadd.f32 %v1737_v2, %v5148_v52 }
 0x3d2   : > { %v3212_v5 = vmul.f32 -1.442695, %v3812_v1 }
 0x3d3   : > { %v3214_v19 = vmul.f32 -1.442695, %v3813_v59  ;;  %v3216_v37 = vmul.f32 -1.442695, %v3829_v26 }
 0x3d4   : > { %4122 = vpow2.f32 %v3212_v5 }
 0x3d5   : > { %4124 = vpow2.f32 %v3214_v19 }
 0x3d6   : > { %4126 = vpow2.f32 %v3215_v21 }
 0x3d7   : > { %4128 = vtanh.f32 %v3826_v7 }
 0x3da   : > { %v4119_v30 = vpop.eup %4118 }
 0x3db   : > { %v4121_v34 = vpop.eup %4120  ;;  %v1754_v36 = vadd.f32 1.0, %v4119_v30 }
 0x3dc   : > { %v1766_v28 = vadd.f32 1.0, %v4121_v34 }
 0x3dd   : > { %4130 = vrcp.f32 %v1754_v36 }
 0x3de   : > { %v4123_v40 = vpop.eup %4122  ;;  %4132 = vrcp.f32 %v1766_v28 }
 0x3df   : > { %v4125_v46 = vpop.eup %4124  ;;  %v1755_v48 = vadd.f32 1.0, %v4123_v40  ;;  %4134 = vpow2.f32 %v3216_v37 }
 0x3e0   : > { %4136 = vtanh.f32 %v3828_v24  ;;  %v1767_v42 = vadd.f32 1.0, %v4125_v46  ;;  %v4127_v43 = vpop.eup %4126 }
 0x3e1   : > { %4138 = vrcp.f32 %v1755_v48  ;;  %v4129_v50 = vpop.eup %4128  ;;  %v1780_v61 = vadd.f32 1.0, %v4127_v43 }
 0x3e2   : > { %4140 = vrcp.f32 %v1767_v42 }
 0x3e3   : > { %4142 = vrcp.f32 %v1780_v61 }
 0x3e7   : > { %v4131_v55 = vpop.eup %4130 }
 0x3e8   : > { %v4133_v56 = vpop.eup %4132  ;;  %v1788_v1 = vmul.f32 %v4131_v55, %v4129_v50 }
 0x3e9   : > { %v4135_v2 = vpop.eup %4134  ;;  %v1786_v59 = vmul.f32 %v4133_v56, %v5211_v10 }
 0x3ea   : > { %v4137_v62 = vpop.eup %4136  ;;  %v1781_v26 = vadd.f32 1.0, %v4135_v2 }
 0x3eb   : > { %v4139_v5 = vpop.eup %4138  ;;  %v5265_v15 = vadd.f32 %v1788_v1, %v1786_v59 }
 0x3ec   : > { %v4141_v19 = vpop.eup %4140  ;;  %v1789_v21 = vmul.f32 %v4139_v5, %v4137_v62 }
 0x3ed   : > { %4144 = vtanh.f32 %v5265_v15  ;;  %v1787_v7 = vmul.f32 %v4141_v19, %v5215_v27  ;;  %v4143_v10 = vpop.eup %4142 }
 0x3ee   : > { %4146 = vrcp.f32 %v1781_v26 }
 0x3ef   : > { %v5269_v30 = vadd.f32 %v1789_v21, %v1787_v7 }
 0x3f1   : > { %4148 = vtanh.f32 %v5269_v30 }
 0x3f7   : > { %v4145_v34 = vpop.eup %4144 }
 0x3f8   : > { %v1794_v36 = vmul.f32 %v4145_v34, %v4143_v10  ;;  %v4147_v37 = vpop.eup %4146 }
 0x3fa   : > { %3217 = vst [vmem:[%s4917_s17 + $0x20] sm:$0xff] %v1794_v36  ;;  %1873 = vmatmul.mubr.f32.vlgmr.msra.gmra.mrb[12].mxu0 %v1794_v36  ;;  %1950 = vmatmul.mubr.f32.vlgmr.msra.gmra.mrb[12].mxu1 %v1794_v36 }
 0x3fb   : > { %v4149_v28 = vpop.eup %4148  ;;  %1878 = vmatprep.mubr.f32.mxu0 %v4609_v11  ;;  %1955 = vmatprep.mubr.f32.mxu1 %v4609_v11 }
 0x3fc   : > { %v1795_v24 = vmul.f32 %v4149_v28, %v4147_v37  ;;  %3549 = vmatpush1.bf16.msra.mxu0 %v4974_v38  ;;  %3581 = vmatpush1.bf16.msra.mxu1 %v4977_v41 }
 0x3fd   : > { %3551 = vmatprep.subr.bf16.mxu0 %v4979_v44  ;;  %3583 = vmatprep.subr.bf16.mxu1 %v4982_v47 }
 0x3fe   : > { %3218 = vst [vmem:[%s4917_s17 + $0x28] sm:$0xff] %v1795_v24  ;;  %1879 = vmatmul.mubr.f32.gmra.mrb[14].mxu0 %v1795_v24  ;;  %1956 = vmatmul.mubr.f32.gmra.mrb[14].mxu1 %v1795_v24 }
 0x3ff   : > { %2093 = vmatprep.mubr.f32.mxu0 %v4609_v11  ;;  %2170 = vmatprep.mubr.f32.mxu1 %v4609_v11 }
 0x400   : > { %3553 = vmatpush1.bf16.msra.mxu0 %v4987_v51  ;;  %3585 = vmatpush1.bf16.msra.mxu1 %v4991_v54 }
 0x401   : > { %3555 = vmatprep.subr.bf16.mxu0 %v4995_v57  ;;  %3587 = vmatprep.subr.bf16.mxu1 %v4999_v60 }
 0x404   : > { %3557 = vmatpush1.bf16.msra.mxu0 %v5004_v0  ;;  %3589 = vmatpush1.bf16.msra.mxu1 %v5008_v3 }
 0x405   : > { %3559 = vmatprep.subr.bf16.mxu0 %v5012_v6  ;;  %3591 = vmatprep.subr.bf16.mxu1 %v5016_v9 }
 0x408   : > { %3561 = vmatpush1.bf16.msra.mxu0 %v5021_v14  ;;  %3593 = vmatpush1.bf16.msra.mxu1 %v5025_v17 }
 0x409   : > { %3563 = vmatprep.subr.bf16.mxu0 %v5029_v20  ;;  %3595 = vmatprep.subr.bf16.mxu1 %v5033_v25 }
 0x40c   : > { %3565 = vmatpush1.bf16.msra.mxu0 %v5038_v29  ;;  %3597 = vmatpush1.bf16.msra.mxu1 %v5042_v32 }
 0x40d   : > { %3567 = vmatprep.subr.bf16.mxu0 %v5046_v35  ;;  %3599 = vmatprep.subr.bf16.mxu1 %v5050_v39 }
 0x410   : > { %3569 = vmatpush1.bf16.msra.mxu0 %v5055_v45  ;;  %3601 = vmatpush1.bf16.msra.mxu1 %v5059_v49 }
 0x411   : > { %3571 = vmatprep.subr.bf16.mxu0 %v5063_v53  ;;  %3603 = vmatprep.subr.bf16.mxu1 %v5067_v58 }
 0x414   : > { %3573 = vmatpush1.bf16.msra.mxu0 %v5072_v63  ;;  %3605 = vmatpush1.bf16.msra.mxu1 %v5076_v4 }
 0x415   : > { %3575 = vmatprep.subr.bf16.mxu0 %v5080_v8  ;;  %3607 = vmatprep.subr.bf16.mxu1 %v5084_v13 }
 0x418   : > { %3577 = vmatpush1.bf16.msra.mxu0 %v5089_v16  ;;  %3609 = vmatpush1.bf16.msra.mxu1 %v5093_v18 }
 0x419   : > { %3611 = vmatprep.subr.bf16.mxu0 %v4930_v22  ;;  %3643 = vmatprep.subr.bf16.mxu1 %v4932_v23 }
 0x4cd   : > { %v1874_v27 = vpop.f32.mrb[12].mxu0  ;;  %v1951_v40 = vpop.f32.mrb[12].mxu1 }
 0x4ce   : > { %v3814_v46 = vadd.f32 %v1874_v27, %v5142_v31  ;;  %v1876_v48 = vpop.f32.mrb[13].mxu0  ;;  %v1953_v42 = vpop.f32.mrb[13].mxu1  ;;  %v3830_v10 = vadd.f32 %v1951_v40, %v5153_v12 }
 0x4cf   : > { %v3815_v43 = vadd.f32 %v1876_v48, %v5144_v33  ;;  %v3831_v19 = vadd.f32 %v1953_v42, %v5148_v52 }
 0x4d0   : > { %v3219_v50 = vmul.f32 -1.442695, %v3814_v46 }
 0x4d1   : > { %v3221_v55 = vmul.f32 -1.442695, %v3815_v43  ;;  %v1880_v56 = vpop.f32.mrb[14].mxu0  ;;  %v1957_v1 = vpop.f32.mrb[14].mxu1  ;;  %v3223_v26 = vmul.f32 -1.442695, %v3831_v19 }
 0x4d2   : > { %4150 = vpow2.f32 %v3219_v50  ;;  %v3816_v61 = vadd.f32 %v1880_v56, %v5142_v31  ;;  %v1882_v2 = vpop.f32.mrb[15].mxu0  ;;  %v1959_v59 = vpop.f32.mrb[15].mxu1  ;;  %v3832_v27 = vadd.f32 %v1957_v1, %v5153_v12 }
 0x4d3   : > { %4152 = vpow2.f32 %v3221_v55  ;;  %v3817_v62 = vadd.f32 %v1882_v2, %v5144_v33  ;;  %v3833_v7 = vadd.f32 %v1959_v59, %v5148_v52 }
 0x4d4   : > { %v3220_v5 = vmul.f32 -1.442695, %v3816_v61 }
 0x4d5   : > { %v3222_v21 = vmul.f32 -1.442695, %v3817_v62  ;;  %v3224_v28 = vmul.f32 -1.442695, %v3833_v7 }
 0x4d6   : > { %4154 = vpow2.f32 %v3220_v5 }
 0x4d7   : > { %4156 = vpow2.f32 %v3222_v21 }
 0x4d8   : > { %4158 = vpow2.f32 %v3223_v26 }
 0x4d9   : > { %4160 = vtanh.f32 %v3830_v10 }
 0x4dc   : > { %v4151_v34 = vpop.eup %4150 }
 0x4dd   : > { %v4153_v36 = vpop.eup %4152  ;;  %v1976_v37 = vadd.f32 1.0, %v4151_v34 }
 0x4de   : > { %v1988_v24 = vadd.f32 1.0, %v4153_v36 }
 0x4df   : > { %4162 = vrcp.f32 %v1976_v37 }
 0x4e0   : > { %v4155_v46 = vpop.eup %4154  ;;  %4164 = vrcp.f32 %v1988_v24 }
 0x4e1   : > { %v4157_v48 = vpop.eup %4156  ;;  %v1977_v42 = vadd.f32 1.0, %v4155_v46  ;;  %4166 = vpow2.f32 %v3224_v28 }
 0x4e2   : > { %4168 = vtanh.f32 %v3832_v27  ;;  %v1989_v43 = vadd.f32 1.0, %v4157_v48  ;;  %v4159_v40 = vpop.eup %4158 }
 0x4e3   : > { %4170 = vrcp.f32 %v1977_v42  ;;  %v4161_v50 = vpop.eup %4160  ;;  %v2002_v2 = vadd.f32 1.0, %v4159_v40 }
 0x4e4   : > { %4172 = vrcp.f32 %v1989_v43 }
 0x4e5   : > { %4174 = vrcp.f32 %v2002_v2 }
 0x4e9   : > { %v4163_v55 = vpop.eup %4162 }
 0x4ea   : > { %v4165_v56 = vpop.eup %4164  ;;  %v2010_v61 = vmul.f32 %v4163_v55, %v4161_v50 }
 0x4eb   : > { %v4167_v59 = vpop.eup %4166  ;;  %v2008_v62 = vmul.f32 %v4165_v56, %v5265_v15 }
 0x4ec   : > { %v4169_v1 = vpop.eup %4168  ;;  %v2003_v7 = vadd.f32 1.0, %v4167_v59 }
 0x4ed   : > { %v4171_v5 = vpop.eup %4170  ;;  %v5319_v19 = vadd.f32 %v2010_v61, %v2008_v62 }
 0x4ee   : > { %v4173_v21 = vpop.eup %4172  ;;  %v2011_v26 = vmul.f32 %v4171_v5, %v4169_v1 }
 0x4ef   : > { %4176 = vtanh.f32 %v5319_v19  ;;  %v2009_v10 = vmul.f32 %v4173_v21, %v5269_v30  ;;  %v4175_v15 = vpop.eup %4174 }
 0x4f0   : > { %4178 = vrcp.f32 %v2003_v7 }
 0x4f1   : > { %v5323_v34 = vadd.f32 %v2011_v26, %v2009_v10 }
 0x4f3   : > { %4180 = vtanh.f32 %v5323_v34 }
 0x4f9   : > { %v4177_v36 = vpop.eup %4176 }
 0x4fa   : > { %v2016_v37 = vmul.f32 %v4177_v36, %v4175_v15  ;;  %v4179_v28 = vpop.eup %4178 }
 0x4fc   : > { %3225 = vst [vmem:[%s4917_s17 + $0x30] sm:$0xff] %v2016_v37  ;;  %2094 = vmatmul.mubr.f32.vlgmr.msra.gmra.mrb[16].mxu0 %v2016_v37  ;;  %2171 = vmatmul.mubr.f32.vlgmr.msra.gmra.mrb[16].mxu1 %v2016_v37 }
 0x4fd   : > { %v4181_v24 = vpop.eup %4180  ;;  %2099 = vmatprep.mubr.f32.mxu0 %v4609_v11  ;;  %2176 = vmatprep.mubr.f32.mxu1 %v4609_v11 }
 0x4fe   : > { %v2017_v27 = vmul.f32 %v4181_v24, %v4179_v28  ;;  %3613 = vmatpush1.bf16.msra.mxu0 %v4974_v38  ;;  %3645 = vmatpush1.bf16.msra.mxu1 %v4977_v41 }
 0x4ff   : > { %3615 = vmatprep.subr.bf16.mxu0 %v4979_v44  ;;  %3647 = vmatprep.subr.bf16.mxu1 %v4982_v47 }
 0x500   : > { %3226 = vst [vmem:[%s4917_s17 + $0x38] sm:$0xff] %v2017_v27  ;;  %2100 = vmatmul.mubr.f32.gmra.mrb[18].mxu0 %v2017_v27  ;;  %2177 = vmatmul.mubr.f32.gmra.mrb[18].mxu1 %v2017_v27 }
 0x501   : > { %2315 = vmatprep.mubr.f32.mxu0 %v4609_v11  ;;  %2392 = vmatprep.mubr.f32.mxu1 %v4609_v11 }
 0x502   : > { %3617 = vmatpush1.bf16.msra.mxu0 %v4987_v51  ;;  %3649 = vmatpush1.bf16.msra.mxu1 %v4991_v54 }
 0x503   : > { %3619 = vmatprep.subr.bf16.mxu0 %v4995_v57  ;;  %3651 = vmatprep.subr.bf16.mxu1 %v4999_v60 }
 0x506   : > { %3621 = vmatpush1.bf16.msra.mxu0 %v5004_v0  ;;  %3653 = vmatpush1.bf16.msra.mxu1 %v5008_v3 }
 0x507   : > { %3623 = vmatprep.subr.bf16.mxu0 %v5012_v6  ;;  %3655 = vmatprep.subr.bf16.mxu1 %v5016_v9 }
 0x50a   : > { %3625 = vmatpush1.bf16.msra.mxu0 %v5021_v14  ;;  %3657 = vmatpush1.bf16.msra.mxu1 %v5025_v17 }
 0x50b   : > { %3627 = vmatprep.subr.bf16.mxu0 %v5029_v20  ;;  %3659 = vmatprep.subr.bf16.mxu1 %v5033_v25 }
 0x50e   : > { %3629 = vmatpush1.bf16.msra.mxu0 %v5038_v29  ;;  %3661 = vmatpush1.bf16.msra.mxu1 %v5042_v32 }
 0x50f   : > { %3631 = vmatprep.subr.bf16.mxu0 %v5046_v35  ;;  %3663 = vmatprep.subr.bf16.mxu1 %v5050_v39 }
 0x512   : > { %3633 = vmatpush1.bf16.msra.mxu0 %v5055_v45  ;;  %3665 = vmatpush1.bf16.msra.mxu1 %v5059_v49 }
 0x513   : > { %3635 = vmatprep.subr.bf16.mxu0 %v5063_v53  ;;  %3667 = vmatprep.subr.bf16.mxu1 %v5067_v58 }
 0x516   : > { %3637 = vmatpush1.bf16.msra.mxu0 %v5072_v63  ;;  %3669 = vmatpush1.bf16.msra.mxu1 %v5076_v4 }
 0x517   : > { %3639 = vmatprep.subr.bf16.mxu0 %v5080_v8  ;;  %3671 = vmatprep.subr.bf16.mxu1 %v5084_v13 }
 0x51a   : > { %3641 = vmatpush1.bf16.msra.mxu0 %v5089_v16  ;;  %3673 = vmatpush1.bf16.msra.mxu1 %v5093_v18 }
 0x51b   : > { %3675 = vmatprep.subr.bf16.mxu0 %v4930_v22  ;;  %3707 = vmatprep.subr.bf16.mxu1 %v4932_v23 }
 0x5cf   : > { %v2095_v30 = vpop.f32.mrb[16].mxu0  ;;  %v2172_v46 = vpop.f32.mrb[16].mxu1 }
 0x5d0   : > { %v3834_v48 = vadd.f32 %v2095_v30, %v5142_v31  ;;  %v2097_v42 = vpop.f32.mrb[17].mxu0  ;;  %v2174_v43 = vpop.f32.mrb[17].mxu1  ;;  %v3850_v15 = vadd.f32 %v2172_v46, %v5153_v12 }
 0x5d1   : > { %v3835_v40 = vadd.f32 %v2097_v42, %v5144_v33  ;;  %v3851_v21 = vadd.f32 %v2174_v43, %v5148_v52 }
 0x5d2   : > { %v3227_v50 = vmul.f32 -1.442695, %v3834_v48 }
 0x5d3   : > { %v3229_v55 = vmul.f32 -1.442695, %v3835_v40  ;;  %v2101_v56 = vpop.f32.mrb[18].mxu0  ;;  %v2178_v61 = vpop.f32.mrb[18].mxu1  ;;  %v3231_v7 = vmul.f32 -1.442695, %v3851_v21 }
 0x5d4   : > { %4182 = vpow2.f32 %v3227_v50  ;;  %v3836_v2 = vadd.f32 %v2101_v56, %v5142_v31  ;;  %v2103_v59 = vpop.f32.mrb[19].mxu0  ;;  %v2180_v62 = vpop.f32.mrb[19].mxu1  ;;  %v3852_v30 = vadd.f32 %v2178_v61, %v5153_v12 }
 0x5d5   : > { %4184 = vpow2.f32 %v3229_v55  ;;  %v3837_v1 = vadd.f32 %v2103_v59, %v5144_v33  ;;  %v3853_v10 = vadd.f32 %v2180_v62, %v5148_v52 }
 0x5d6   : > { %v3228_v5 = vmul.f32 -1.442695, %v3836_v2 }
 0x5d7   : > { %v3230_v26 = vmul.f32 -1.442695, %v3837_v1  ;;  %v3232_v24 = vmul.f32 -1.442695, %v3853_v10 }
 0x5d8   : > { %4186 = vpow2.f32 %v3228_v5 }
 0x5d9   : > { %4188 = vpow2.f32 %v3230_v26 }
 0x5da   : > { %4190 = vpow2.f32 %v3231_v7 }
 0x5db   : > { %4192 = vtanh.f32 %v3850_v15 }
 0x5de   : > { %v4183_v36 = vpop.eup %4182 }
 0x5df   : > { %v4185_v37 = vpop.eup %4184  ;;  %v2197_v28 = vadd.f32 1.0, %v4183_v36 }
 0x5e0   : > { %v2209_v27 = vadd.f32 1.0, %v4185_v37 }
 0x5e1   : > { %4194 = vrcp.f32 %v2197_v28 }
 0x5e2   : > { %v4187_v48 = vpop.eup %4186  ;;  %4196 = vrcp.f32 %v2209_v27 }
 0x5e3   : > { %v4189_v42 = vpop.eup %4188  ;;  %v2198_v43 = vadd.f32 1.0, %v4187_v48  ;;  %4198 = vpow2.f32 %v3232_v24 }
 0x5e4   : > { %4200 = vtanh.f32 %v3852_v30  ;;  %v2210_v40 = vadd.f32 1.0, %v4189_v42  ;;  %v4191_v46 = vpop.eup %4190 }
 0x5e5   : > { %4202 = vrcp.f32 %v2198_v43  ;;  %v4193_v50 = vpop.eup %4192  ;;  %v2223_v59 = vadd.f32 1.0, %v4191_v46 }
 0x5e6   : > { %4204 = vrcp.f32 %v2210_v40 }
 0x5e7   : > { %4206 = vrcp.f32 %v2223_v59 }
 0x5eb   : > { %v4195_v55 = vpop.eup %4194 }
 0x5ec   : > { %v4197_v56 = vpop.eup %4196  ;;  %v2231_v2 = vmul.f32 %v4195_v55, %v4193_v50 }
 0x5ed   : > { %v4199_v62 = vpop.eup %4198  ;;  %v2229_v1 = vmul.f32 %v4197_v56, %v5319_v19 }
 0x5ee   : > { %v4201_v61 = vpop.eup %4200  ;;  %v2224_v10 = vadd.f32 1.0, %v4199_v62 }
 0x5ef   : > { %v4203_v5 = vpop.eup %4202  ;;  %v5373_v21 = vadd.f32 %v2231_v2, %v2229_v1 }
 0x5f0   : > { %v4205_v26 = vpop.eup %4204  ;;  %v2232_v7 = vmul.f32 %v4203_v5, %v4201_v61 }
 0x5f1   : > { %4208 = vtanh.f32 %v5373_v21  ;;  %v2230_v15 = vmul.f32 %v4205_v26, %v5323_v34  ;;  %v4207_v19 = vpop.eup %4206 }
 0x5f2   : > { %4210 = vrcp.f32 %v2224_v10 }
 0x5f3   : > { %v5377_v36 = vadd.f32 %v2232_v7, %v2230_v15 }
 0x5f5   : > { %4212 = vtanh.f32 %v5377_v36 }
 0x5fb   : > { %v4209_v37 = vpop.eup %4208 }
 0x5fc   : > { %v2237_v28 = vmul.f32 %v4209_v37, %v4207_v19  ;;  %v4211_v24 = vpop.eup %4210 }
 0x5fe   : > { %3233 = vst [vmem:[%s4917_s17 + $0x40] sm:$0xff] %v2237_v28  ;;  %2316 = vmatmul.mubr.f32.vlgmr.msra.gmra.mrb[20].mxu0 %v2237_v28  ;;  %2393 = vmatmul.mubr.f32.vlgmr.msra.gmra.mrb[20].mxu1 %v2237_v28 }
 0x5ff   : > { %v4213_v27 = vpop.eup %4212  ;;  %2321 = vmatprep.mubr.f32.mxu0 %v4609_v11  ;;  %2398 = vmatprep.mubr.f32.mxu1 %v4609_v11 }
 0x600   : > { %v2238_v30 = vmul.f32 %v4213_v27, %v4211_v24  ;;  %3677 = vmatpush1.bf16.msra.mxu0 %v4974_v38  ;;  %3709 = vmatpush1.bf16.msra.mxu1 %v4977_v41 }
 0x601   : > { %3679 = vmatprep.subr.bf16.mxu0 %v4979_v44  ;;  %3711 = vmatprep.subr.bf16.mxu1 %v4982_v47 }
 0x602   : > { %3234 = vst [vmem:[%s4917_s17 + $0x48] sm:$0xff] %v2238_v30  ;;  %2322 = vmatmul.mubr.f32.gmra.mrb[22].mxu0 %v2238_v30  ;;  %2399 = vmatmul.mubr.f32.gmra.mrb[22].mxu1 %v2238_v30 }
 0x603   : > { %2537 = vmatprep.mubr.f32.mxu0 %v4609_v11  ;;  %2614 = vmatprep.mubr.f32.mxu1 %v4609_v11 }
 0x604   : > { %3681 = vmatpush1.bf16.msra.mxu0 %v4987_v51  ;;  %3713 = vmatpush1.bf16.msra.mxu1 %v4991_v54 }
 0x605   : > { %3683 = vmatprep.subr.bf16.mxu0 %v4995_v57  ;;  %3715 = vmatprep.subr.bf16.mxu1 %v4999_v60 }
 0x608   : > { %3685 = vmatpush1.bf16.msra.mxu0 %v5004_v0  ;;  %3717 = vmatpush1.bf16.msra.mxu1 %v5008_v3 }
 0x609   : > { %3687 = vmatprep.subr.bf16.mxu0 %v5012_v6  ;;  %3719 = vmatprep.subr.bf16.mxu1 %v5016_v9 }
 0x60c   : > { %3689 = vmatpush1.bf16.msra.mxu0 %v5021_v14  ;;  %3721 = vmatpush1.bf16.msra.mxu1 %v5025_v17 }
 0x60d   : > { %3691 = vmatprep.subr.bf16.mxu0 %v5029_v20  ;;  %3723 = vmatprep.subr.bf16.mxu1 %v5033_v25 }
 0x610   : > { %3693 = vmatpush1.bf16.msra.mxu0 %v5038_v29  ;;  %3725 = vmatpush1.bf16.msra.mxu1 %v5042_v32 }
 0x611   : > { %3695 = vmatprep.subr.bf16.mxu0 %v5046_v35  ;;  %3727 = vmatprep.subr.bf16.mxu1 %v5050_v39 }
 0x614   : > { %3697 = vmatpush1.bf16.msra.mxu0 %v5055_v45  ;;  %3729 = vmatpush1.bf16.msra.mxu1 %v5059_v49 }
 0x615   : > { %3699 = vmatprep.subr.bf16.mxu0 %v5063_v53  ;;  %3731 = vmatprep.subr.bf16.mxu1 %v5067_v58 }
 0x618   : > { %3701 = vmatpush1.bf16.msra.mxu0 %v5072_v63  ;;  %3733 = vmatpush1.bf16.msra.mxu1 %v5076_v4 }
 0x619   : > { %3703 = vmatprep.subr.bf16.mxu0 %v5080_v8  ;;  %3735 = vmatprep.subr.bf16.mxu1 %v5084_v13 }
 0x61c   : > { %3705 = vmatpush1.bf16.msra.mxu0 %v5089_v16  ;;  %3737 = vmatpush1.bf16.msra.mxu1 %v5093_v18 }
 0x61d   : > { %3739 = vmatprep.subr.bf16.mxu0 %v4930_v22  ;;  %3771 = vmatprep.subr.bf16.mxu1 %v4932_v23 }
 0x6d1   : > { %v2317_v34 = vpop.f32.mrb[20].mxu0  ;;  %v2394_v48 = vpop.f32.mrb[20].mxu1 }
 0x6d2   : > { %v3838_v42 = vadd.f32 %v2317_v34, %v5142_v31  ;;  %v2319_v43 = vpop.f32.mrb[21].mxu0  ;;  %v2396_v40 = vpop.f32.mrb[21].mxu1  ;;  %v3854_v10 = vadd.f32 %v2394_v48, %v5153_v12 }
 0x6d3   : > { %v3839_v46 = vadd.f32 %v2319_v43, %v5144_v33  ;;  %v3855_v61 = vadd.f32 %v2396_v40, %v5148_v52 }
 0x6d4   : > { %v3235_v50 = vmul.f32 -1.442695, %v3838_v42 }
 0x6d5   : > { %v3237_v55 = vmul.f32 -1.442695, %v3839_v46  ;;  %v2323_v56 = vpop.f32.mrb[22].mxu0  ;;  %v2400_v2 = vpop.f32.mrb[22].mxu1  ;;  %v3239_v26 = vmul.f32 -1.442695, %v3855_v61 }
 0x6d6   : > { %4214 = vpow2.f32 %v3235_v50  ;;  %v3840_v59 = vadd.f32 %v2323_v56, %v5142_v31  ;;  %v2325_v62 = vpop.f32.mrb[23].mxu0  ;;  %v2402_v1 = vpop.f32.mrb[23].mxu1  ;;  %v3856_v27 = vadd.f32 %v2400_v2, %v5153_v12 }
 0x6d7   : > { %4216 = vpow2.f32 %v3237_v55  ;;  %v3841_v22 = vadd.f32 %v2325_v62, %v5144_v33  ;;  %v3857_v7 = vadd.f32 %v2402_v1, %v5148_v52 }
 0x6d8   : > { %v3236_v23 = vmul.f32 -1.442695, %v3840_v59 }
 0x6d9   : > { %v3238_v5 = vmul.f32 -1.442695, %v3841_v22  ;;  %v3240_v28 = vmul.f32 -1.442695, %v3857_v7 }
 0x6da   : > { %4218 = vpow2.f32 %v3236_v23 }
 0x6db   : > { %4220 = vpow2.f32 %v3238_v5 }
 0x6dc   : > { %4222 = vpow2.f32 %v3239_v26 }
 0x6dd   : > { %4224 = vtanh.f32 %v3854_v10 }
 0x6e0   : > { %v4215_v15 = vpop.eup %4214 }
 0x6e1   : > { %v4217_v19 = vpop.eup %4216  ;;  %v2419_v37 = vadd.f32 1.0, %v4215_v15 }
 0x6e2   : > { %v2431_v24 = vadd.f32 1.0, %v4217_v19 }
 0x6e3   : > { %4226 = vrcp.f32 %v2419_v37 }
 0x6e4   : > { %v4219_v30 = vpop.eup %4218  ;;  %4228 = vrcp.f32 %v2431_v24 }
 0x6e5   : > { %v4221_v34 = vpop.eup %4220  ;;  %v2420_v42 = vadd.f32 1.0, %v4219_v30  ;;  %4230 = vpow2.f32 %v3240_v28 }
 0x6e6   : > { %4232 = vtanh.f32 %v3856_v27  ;;  %v2432_v43 = vadd.f32 1.0, %v4221_v34  ;;  %v4223_v48 = vpop.eup %4222 }
 0x6e7   : > { %4234 = vrcp.f32 %v2420_v42  ;;  %v4225_v40 = vpop.eup %4224  ;;  %v2445_v56 = vadd.f32 1.0, %v4223_v48 }
 0x6e8   : > { %4236 = vrcp.f32 %v2432_v43 }
 0x6e9   : > { %4238 = vrcp.f32 %v2445_v56 }
 0x6ed   : > { %v4227_v46 = vpop.eup %4226 }
 0x6ee   : > { %v4229_v50 = vpop.eup %4228  ;;  %v2453_v55 = vmul.f32 %v4227_v46, %v4225_v40 }
 0x6ef   : > { %v4231_v59 = vpop.eup %4230  ;;  %v2451_v62 = vmul.f32 %v4229_v50, %v5373_v21 }
 0x6f0   : > { %v4233_v2 = vpop.eup %4232  ;;  %v2446_v5 = vadd.f32 1.0, %v4231_v59 }
 0x6f1   : > { %v4235_v1 = vpop.eup %4234  ;;  %v5427_v22 = vadd.f32 %v2453_v55, %v2451_v62 }
 0x6f2   : > { %v4237_v23 = vpop.eup %4236  ;;  %v2454_v61 = vmul.f32 %v4235_v1, %v4233_v2 }
 0x6f3   : > { %4240 = vtanh.f32 %v5427_v22  ;;  %v2452_v26 = vmul.f32 %v4237_v23, %v5377_v36  ;;  %v4239_v21 = vpop.eup %4238 }
 0x6f4   : > { %4242 = vrcp.f32 %v2446_v5 }
 0x6f5   : > { %v5431_v7 = vadd.f32 %v2454_v61, %v2452_v26 }
 0x6f7   : > { %4244 = vtanh.f32 %v5431_v7 }
 0x6fd   : > { %v4241_v10 = vpop.eup %4240 }
 0x6fe   : > { %v2459_v15 = vmul.f32 %v4241_v10, %v4239_v21  ;;  %v4243_v19 = vpop.eup %4242 }
 0x700   : > { %3241 = vst [vmem:[%s4917_s17 + $0x50] sm:$0xff] %v2459_v15  ;;  %2538 = vmatmul.mubr.f32.vlgmr.msra.gmra.mrb[24].mxu0 %v2459_v15  ;;  %2615 = vmatmul.mubr.f32.vlgmr.msra.gmra.mrb[24].mxu1 %v2459_v15 }
 0x701   : > { %v4245_v37 = vpop.eup %4244  ;;  %2543 = vmatprep.mubr.f32.mxu0 %v4609_v11  ;;  %2620 = vmatprep.mubr.f32.mxu1 %v4609_v11 }
 0x702   : > { %v2460_v28 = vmul.f32 %v4245_v37, %v4243_v19  ;;  %3741 = vmatpush1.bf16.msra.mxu0 %v4974_v38  ;;  %3773 = vmatpush1.bf16.msra.mxu1 %v4977_v41 }
 0x703   : > { %3743 = vmatprep.subr.bf16.mxu0 %v4979_v44  ;;  %3775 = vmatprep.subr.bf16.mxu1 %v4982_v47 }
 0x704   : > { %3242 = vst [vmem:[%s4917_s17 + $0x58] sm:$0xff] %v2460_v28  ;;  %2544 = vmatmul.mubr.f32.gmra.mrb[26].mxu0 %v2460_v28  ;;  %2621 = vmatmul.mubr.f32.gmra.mrb[26].mxu1 %v2460_v28 }
 0x705   : > { %2759 = vmatprep.mubr.f32.mxu0 %v4609_v11  ;;  %2836 = vmatprep.mubr.f32.mxu1 %v4609_v11 }
 0x706   : > { %3745 = vmatpush1.bf16.msra.mxu0 %v4987_v51  ;;  %3777 = vmatpush1.bf16.msra.mxu1 %v4991_v54 }
 0x707   : > { %3747 = vmatprep.subr.bf16.mxu0 %v4995_v57  ;;  %3779 = vmatprep.subr.bf16.mxu1 %v4999_v60 }
 0x70a   : > { %3749 = vmatpush1.bf16.msra.mxu0 %v5004_v0  ;;  %3781 = vmatpush1.bf16.msra.mxu1 %v5008_v3 }
 0x70b   : > { %3751 = vmatprep.subr.bf16.mxu0 %v5012_v6  ;;  %3783 = vmatprep.subr.bf16.mxu1 %v5016_v9 }
 0x70e   : > { %3753 = vmatpush1.bf16.msra.mxu0 %v5021_v14  ;;  %3785 = vmatpush1.bf16.msra.mxu1 %v5025_v17 }
 0x70f   : > { %3755 = vmatprep.subr.bf16.mxu0 %v5029_v20  ;;  %3787 = vmatprep.subr.bf16.mxu1 %v5033_v25 }
 0x712   : > { %3757 = vmatpush1.bf16.msra.mxu0 %v5038_v29  ;;  %3789 = vmatpush1.bf16.msra.mxu1 %v5042_v32 }
 0x713   : > { %3759 = vmatprep.subr.bf16.mxu0 %v5046_v35  ;;  %3791 = vmatprep.subr.bf16.mxu1 %v5050_v39 }
 0x716   : > { %3761 = vmatpush1.bf16.msra.mxu0 %v5055_v45  ;;  %3793 = vmatpush1.bf16.msra.mxu1 %v5059_v49 }
 0x717   : > { %3763 = vmatprep.subr.bf16.mxu0 %v5063_v53  ;;  %3795 = vmatprep.subr.bf16.mxu1 %v5067_v58 }
 0x71a   : > { %3765 = vmatpush1.bf16.msra.mxu0 %v5072_v63  ;;  %3797 = vmatpush1.bf16.msra.mxu1 %v5076_v4 }
 0x71b   : > { %3767 = vmatprep.subr.bf16.mxu0 %v5080_v8  ;;  %3799 = vmatprep.subr.bf16.mxu1 %v5084_v13 }
 0x71e   : > { %3769 = vmatpush1.bf16.msra.mxu0 %v5089_v16  ;;  %3801 = vmatpush1.bf16.msra.mxu1 %v5093_v18 }
 0x7d3   : > { %v2539_v38 = vpop.f32.mrb[24].mxu0  ;;  %v2616_v41 = vpop.f32.mrb[24].mxu1 }
 0x7d4   : > { %v3842_v44 = vadd.f32 %v2539_v38, %v5142_v31  ;;  %v2541_v47 = vpop.f32.mrb[25].mxu0  ;;  %v2618_v51 = vpop.f32.mrb[25].mxu1  ;;  %v3858_v39 = vadd.f32 %v2616_v41, %v5153_v12 }
 0x7d5   : > { %v3843_v54 = vadd.f32 %v2541_v47, %v5144_v33  ;;  %v3859_v25 = vadd.f32 %v2618_v51, %v5148_v52 }
 0x7d6   : > { %v3243_v57 = vmul.f32 -1.442695, %v3842_v44 }
 0x7d7   : > { %v3245_v60 = vmul.f32 -1.442695, %v3843_v54  ;;  %v2545_v0 = vpop.f32.mrb[26].mxu0  ;;  %v2622_v3 = vpop.f32.mrb[26].mxu1  ;;  %v3247_v32 = vmul.f32 -1.442695, %v3859_v25 }
 0x7d8   : > { %4246 = vpow2.f32 %v3243_v57  ;;  %v3844_v6 = vadd.f32 %v2545_v0, %v5142_v31  ;;  %v2547_v9 = vpop.f32.mrb[27].mxu0  ;;  %v2624_v14 = vpop.f32.mrb[27].mxu1  ;;  %v3860_v4 = vadd.f32 %v2622_v3, %v5153_v12 }
 0x7d9   : > { %4248 = vpow2.f32 %v3245_v60  ;;  %v3845_v17 = vadd.f32 %v2547_v9, %v5144_v33  ;;  %v3861_v35 = vadd.f32 %v2624_v14, %v5148_v52 }
 0x7da   : > { %v3244_v20 = vmul.f32 -1.442695, %v3844_v6 }
 0x7db   : > { %v3246_v29 = vmul.f32 -1.442695, %v3845_v17  ;;  %v3248_v58 = vmul.f32 -1.442695, %v3861_v35 }
 0x7dc   : > { %4250 = vpow2.f32 %v3244_v20 }
 0x7dd   : > { %4252 = vpow2.f32 %v3246_v29 }
 0x7de   : > { %4254 = vpow2.f32 %v3247_v32 }
 0x7df   : > { %4256 = vtanh.f32 %v3858_v39 }
 0x7e2   : > { %v4247_v45 = vpop.eup %4246 }
 0x7e3   : > { %v4249_v49 = vpop.eup %4248  ;;  %v2641_v53 = vadd.f32 1.0, %v4247_v45 }
 0x7e4   : > { %v2653_v63 = vadd.f32 1.0, %v4249_v49 }
 0x7e5   : > { %4258 = vrcp.f32 %v2641_v53 }
 0x7e6   : > { %v4251_v8 = vpop.eup %4250  ;;  %4260 = vrcp.f32 %v2653_v63 }
 0x7e7   : > { %v4253_v13 = vpop.eup %4252  ;;  %v2642_v16 = vadd.f32 1.0, %v4251_v8  ;;  %4262 = vpow2.f32 %v3248_v58 }
 0x7e8   : > { %4264 = vtanh.f32 %v3860_v4  ;;  %v2654_v18 = vadd.f32 1.0, %v4253_v13  ;;  %v4255_v36 = vpop.eup %4254 }
 0x7e9   : > { %4266 = vrcp.f32 %v2642_v16  ;;  %v4257_v24 = vpop.eup %4256  ;;  %v2667_v42 = vadd.f32 1.0, %v4255_v36 }
 0x7ea   : > { %4268 = vrcp.f32 %v2654_v18 }
 0x7eb   : > { %4270 = vrcp.f32 %v2667_v42 }
 0x7ef   : > { %v4259_v27 = vpop.eup %4258 }
 0x7f0   : > { %v4261_v30 = vpop.eup %4260  ;;  %v2675_v34 = vmul.f32 %v4259_v27, %v4257_v24 }
 0x7f1   : > { %v4263_v43 = vpop.eup %4262  ;;  %v2673_v48 = vmul.f32 %v4261_v30, %v5427_v22 }
 0x7f2   : > { %v4265_v40 = vpop.eup %4264  ;;  %v2668_v59 = vadd.f32 1.0, %v4263_v43 }
 0x7f3   : > { %v4267_v46 = vpop.eup %4266  ;;  %v5479_v50 = vadd.f32 %v2675_v34, %v2673_v48 }
 0x7f4   : > { %v4269_v55 = vpop.eup %4268  ;;  %v2676_v56 = vmul.f32 %v4267_v46, %v4265_v40 }
 0x7f5   : > { %4272 = vtanh.f32 %v5479_v50  ;;  %v2674_v62 = vmul.f32 %v4269_v55, %v5431_v7  ;;  %v4271_v1 = vpop.eup %4270 }
 0x7f6   : > { %4274 = vrcp.f32 %v2668_v59 }
 0x7f7   : > { %v5483_v2 = vadd.f32 %v2676_v56, %v2674_v62 }
 0x7f9   : > { %4276 = vtanh.f32 %v5483_v2 }
 0x7ff   : > { %v4273_v22 = vpop.eup %4272 }
 0x800   : > { %v2681_v23 = vmul.f32 %v4273_v22, %v4271_v1  ;;  %v4275_v61 = vpop.eup %4274 }
 0x802   : > { %3249 = vst [vmem:[%s4917_s17 + $0x60] sm:$0xff] %v2681_v23  ;;  %2760 = vmatmul.mubr.f32.vlgmr.msra.gmra.mrb[28].mxu0 %v2681_v23  ;;  %2837 = vmatmul.mubr.f32.vlgmr.msra.gmra.mrb[28].mxu1 %v2681_v23 }
 0x803   : > { %v4277_v5 = vpop.eup %4276  ;;  %2765 = vmatprep.mubr.f32.mxu0 %v4609_v11  ;;  %2842 = vmatprep.mubr.f32.mxu1 %v4609_v11 }
 0x804   : > { %v2682_v26 = vmul.f32 %v4277_v5, %v4275_v61 }
 0x806   : > { %3250 = vst [vmem:[%s4917_s17 + $0x68] sm:$0xff] %v2682_v26  ;;  %2766 = vmatmul.mubr.f32.gmra.mrb[30].mxu0 %v2682_v26  ;;  %2843 = vmatmul.mubr.f32.gmra.mrb[30].mxu1 %v2682_v26 }
 0x8d5   : > { %v2761_v7 = vpop.f32.mrb[28].mxu0  ;;  %v2838_v21 = vpop.f32.mrb[28].mxu1 }
 0x8d6   : > { %v3846_v10 = vadd.f32 %v2761_v7, %v5142_v31  ;;  %v2763_v15 = vpop.f32.mrb[29].mxu0  ;;  %v2840_v19 = vpop.f32.mrb[29].mxu1  ;;  %v3862_v9 = vadd.f32 %v2838_v21, %v5153_v12 }
 0x8d7   : > { %v3847_v37 = vadd.f32 %v2763_v15, %v5144_v33  ;;  %v3863_v60 = vadd.f32 %v2840_v19, %v5148_v52 }
 0x8d8   : > { %v3251_v28 = vmul.f32 -1.442695, %v3846_v10 }
 0x8d9   : > { %v3253_v38 = vmul.f32 -1.442695, %v3847_v37  ;;  %v2767_v41 = vpop.f32.mrb[30].mxu0  ;;  %v2844_v44 = vpop.f32.mrb[30].mxu1  ;;  %v3255_v3 = vmul.f32 -1.442695, %v3863_v60 }
 0x8da   : > { %4278 = vpow2.f32 %v3251_v28  ;;  %v3848_v47 = vadd.f32 %v2767_v41, %v5142_v31  ;;  %v2769_v11 = vpop.f32.mrb[31].mxu0  ;;  %v2846_v51 = vpop.f32.mrb[31].mxu1 }
 0x8db   : > { %4280 = vpow2.f32 %v3253_v38  ;;  %v3849_v54 = vadd.f32 %v2769_v11, %v5144_v33  ;;  %v3865_v6 = vadd.f32 %v2846_v51, %v5148_v52  ;;  %v3864_v33 = vadd.f32 %v2844_v44, %v5153_v12 }
 0x8dc   : > { %v3252_v57 = vmul.f32 -1.442695, %v3848_v47 }
 0x8dd   : > { %v3254_v0 = vmul.f32 -1.442695, %v3849_v54  ;;  %v3256_v31 = vmul.f32 -1.442695, %v3865_v6 }
 0x8de   : > { %4282 = vpow2.f32 %v3252_v57 }
 0x8df   : > { %4284 = vpow2.f32 %v3254_v0 }
 0x8e0   : > { %4286 = vpow2.f32 %v3255_v3 }
 0x8e1   : > { %4288 = vtanh.f32 %v3862_v9 }
 0x8e4   : > { %v4279_v14 = vpop.eup %4278 }
 0x8e5   : > { %v4281_v17 = vpop.eup %4280  ;;  %v2863_v20 = vadd.f32 1.0, %v4279_v14 }
 0x8e6   : > { %v2875_v25 = vadd.f32 1.0, %v4281_v17 }
 0x8e7   : > { %4290 = vrcp.f32 %v2863_v20 }
 0x8e8   : > { %v4283_v29 = vpop.eup %4282  ;;  %4292 = vrcp.f32 %v2875_v25 }
 0x8e9   : > { %v4285_v32 = vpop.eup %4284  ;;  %v2864_v35 = vadd.f32 1.0, %v4283_v29  ;;  %4294 = vpow2.f32 %v3256_v31 }
 0x8ea   : > { %4296 = vtanh.f32 %v3864_v33  ;;  %v2876_v39 = vadd.f32 1.0, %v4285_v32  ;;  %v4287_v52 = vpop.eup %4286 }
 0x8eb   : > { %4298 = vrcp.f32 %v2864_v35  ;;  %v4289_v45 = vpop.eup %4288  ;;  %v2889_v63 = vadd.f32 1.0, %v4287_v52 }
 0x8ec   : > { %4300 = vrcp.f32 %v2876_v39 }
 0x8ed   : > { %4302 = vrcp.f32 %v2889_v63 }
 0x8f1   : > { %v4291_v49 = vpop.eup %4290 }
 0x8f2   : > { %v4293_v53 = vpop.eup %4292  ;;  %v2897_v58 = vmul.f32 %v4291_v49, %v4289_v45 }
 0x8f3   : > { %v4295_v4 = vpop.eup %4294  ;;  %v2895_v8 = vmul.f32 %v4293_v53, %v5479_v50 }
 0x8f4   : > { %v4297_v12 = vpop.eup %4296  ;;  %v2890_v24 = vadd.f32 1.0, %v4295_v4 }
 0x8f5   : > { %v4299_v13 = vpop.eup %4298  ;;  %v2899_v16 = vadd.f32 %v2897_v58, %v2895_v8 }
 0x8f6   : > { %v4301_v18 = vpop.eup %4300  ;;  %v2898_v36 = vmul.f32 %v4299_v13, %v4297_v12 }
 0x8f7   : > { %4304 = vtanh.f32 %v2899_v16  ;;  %2910 = vst [vmem:[#allocation4] sm:$0xff] %v2899_v16  ;;  %v2896_v27 = vmul.f32 %v4301_v18, %v5483_v2  ;;  %v4303_v34 = vpop.eup %4302  ;;  %2918 = vst [vmem:[#allocation17] sm:$0xff] (!%p3259_p6), %v2899_v16 }
 0x8f8   : > { %4306 = vrcp.f32 %v2890_v24 }
 0x8f9   : > { %v2900_v30 = vadd.f32 %v2898_v36, %v2896_v27 }
 0x8fb   : > { %4308 = vtanh.f32 %v2900_v30  ;;  %2911 = vst [vmem:[#allocation4 + $0x8] sm:$0xff] %v2900_v30  ;;  %2919 = vst [vmem:[#allocation17 + $0x8] sm:$0xff] (!%p3259_p6), %v2900_v30 }
 0x901   : > { %v4305_v42 = vpop.eup %4304 }
 0x902   : > { %v2903_v43 = vmul.f32 %v4305_v42, %v4303_v34  ;;  %v4307_v48 = vpop.eup %4306  ;;  %2915 = sbr.rel (%p3259_p6) target bundleno = 2314 (0x90a), region = 72 }
 0x904   : > { %3257 = vst [vmem:[%s4917_s17 + $0x70] sm:$0xff] %v2903_v43  ;;  %2908 = vst [vmem:[#allocation3] sm:$0xff] %v2903_v43 }
 0x905   : > { %v4309_v40 = vpop.eup %4308  ;;  %2916 = vst [vmem:[#allocation15] sm:$0xff] (!%p3259_p6), %v2903_v43 }
 0x906   : > { %v2904_v46 = vmul.f32 %v4309_v40, %v4307_v48 }
 0x908   : > { %3258 = vst [vmem:[%s4917_s17 + $0x78] sm:$0xff] %v2904_v46  ;;  %2909 = vst [vmem:[#allocation3 + $0x8] sm:$0xff] %v2904_v46 }
 0x909   : > { %2917 = vst [vmem:[#allocation15 + $0x8] sm:$0xff] %v2904_v46 }
 0x90a PF: > { %s4610_s13 = smov [#allocation15]   ;;  %s3273_s22 = sshll.u32 %s4590_s30, 11 }
 0x90b   : > { %s2953_s11 = sshll.u32 %s4610_s13, 4  ;;  %p5645_p3 = scmp.ne.s32.totalorder %s5632_s14, 0  ;;  %s2954_s11 = int_to_ptr.vmem [resolvable:$true] %s2953_s11 }
 0x90c   : > { %s4452_s7 = scalar_lea.vmem %s2954_s11, 256  ;;  %p4459_p0 = scmp.lt.s32.totalorder %s2954_s11, %s2954_s11 }
 0x90d   : > { %p4453_p10 = scmp.ne.s32.totalorder %s2954_s11, %s4452_s7  ;;  %p4460_p4 = scmp.lt.s32.totalorder %s4452_s7, %s4452_s7 }
 0x90f   : > { %p4454_p7 = pnand %p4453_p10, %p5645_p3  ;;  %p4461_p13 = por %p4460_p4, %p4459_p0 }
 0x911   : > { %p4455_p9 = pneg %p4454_p7 }
 0x913   : > { %p4462_p2 = pnand %p4461_p13, %p4455_p9 }
 0x915   : > { %4465 = shalt.err (!%p4462_p2)
}
 0x916   : > { %s5646_s25 = sld [smem:[#allocation26_spill]] }
 0x91c   : > { %s4466_s23 = scalar_lea.hbm %s5646_s25, 256 }
 0x91d   : > { %p4467_p12 = scmp.ne.s32.totalorder %s5646_s25, %s4466_s23  ;;  %p4472_p8 = scmp.lt.u32.totalorder %s4466_s23, %s5646_s25 }
 0x91f   : > { %p4468_p1 = pnand %p4467_p12, %p5645_p3 }
 0x921   : > { %p4469_p11 = pneg %p4468_p1 }
 0x923   : > { %p4474_p6 = pnand %p4472_p8, %p4469_p11 }
 0x925   : > { %4477 = shalt.err (!%p4474_p6)
}
 0x926   : > { %s4611_s26 = smov 128   ;;  %s4612_s16 = smov 8  }
 0x927   : > { %3950 = dma.vmem_to_hbm [thread:$0]  (%p5645_p3), %s2954_s11, 256, %s5646_s25, [#allocation16], %s4611_s26, %s4611_s26, %s4612_s16  }
 0x928   : > { %s5647_s18 = sld [smem:[#allocation25_spill]]  ;;  %s2937_s24 = sshll.u32 %s4917_s17, 4  ;;  %s5531_s24 = int_to_ptr.vmem [resolvable:$true] %s2937_s24 }
 0x929   : > { %s2921_s12 = scalar_lea.sflag [#allocation7], %s4899_s27  ;;  %s4478_s30 = scalar_lea.vmem %s5531_s24, 2048 }
 0x92a   : > { %p4479_p10 = scmp.ne.s32.totalorder %s5531_s24, %s4478_s30  ;;  %s4613_s15 = smov [#allocation14]  }
 0x92b   : > { %s4482_s19 = sshll.u32 %s4613_s15, 4  ;;  %s4483_s19 = int_to_ptr.vmem [resolvable:$false] %s4482_s19 }
 0x92c   : > { %p4480_p7 = pnand %p4479_p10, %p4841_p5  ;;  %s4484_s11 = scalar_lea.vmem %s4483_s19, 4096 }
 0x92d   : > { %p4485_p0 = scmp.lt.s32.totalorder %s5531_s24, %s4483_s19  ;;  %p4486_p4 = scmp.lt.s32.totalorder %s4484_s11, %s4478_s30 }
 0x92e   : > { %s5528_s23 = scalar_lea.hbm %s5647_s18, %s3273_s22  ;;  %p4481_p9 = pneg %p4480_p7 }
 0x92f   : > { %p4487_p13 = por %p4486_p4, %p4485_p0 }
 0x931   : > { %p4488_p2 = pnand %p4487_p13, %p4481_p9 }
 0x933   : > { %4491 = shalt.err (!%p4488_p2)
}
 0x934   : > { %s4492_s17 = scalar_lea.hbm %s5528_s23, 2048  ;;  %s4496_s7 = scalar_lea.hbm %s5647_s18, 4096 }
 0x935   : > { %p4493_p12 = scmp.ne.s32.totalorder %s5528_s23, %s4492_s17  ;;  %p4497_p8 = scmp.lt.u32.totalorder %s5528_s23, %s5647_s18 }
 0x936   : > { %p4498_p6 = scmp.lt.u32.totalorder %s4496_s7, %s4492_s17  ;;  %p4500_p7 = scmp.lt.u32.totalorder %s4492_s17, %s5528_s23 }
 0x937   : > { %p4494_p1 = pnand %p4493_p12, %p4841_p5 }
 0x938   : > { %p4499_p10 = por %p4498_p6, %p4497_p8 }
 0x939   : > { %p4495_p11 = pneg %p4494_p1 }
 0x93a   : > { %p4501_p9 = por %p4500_p7, %p4499_p10 }
 0x93c   : > { %p4502_p0 = pnand %p4501_p9, %p4495_p11 }
 0x93e   : > { %4505 = shalt.err (!%p4502_p0)
}
 0x93f   : > { %3948 = dma.vmem_to_hbm [thread:$0]  (%p4841_p5), %s5531_s24, 2048, %s5528_s23, %s2921_s12, %s4611_s26, %s4611_s26, %s4612_s16  }
 0x940   : > { %s4614_s30 = smov [#allocation17]  }
 0x941   : > { %s2969_s19 = sshll.u32 %s4614_s30, 4  ;;  %s2970_s19 = int_to_ptr.vmem [resolvable:$true] %s2969_s19 }
 0x942   : > { %s4506_s11 = scalar_lea.vmem %s2970_s19, 256  ;;  %p4513_p12 = scmp.lt.s32.totalorder %s2970_s19, %s2970_s19 }
 0x943   : > { %p4507_p4 = scmp.ne.s32.totalorder %s2970_s19, %s4506_s11  ;;  %p4514_p1 = scmp.lt.s32.totalorder %s4506_s11, %s4506_s11 }
 0x945   : > { %p4508_p13 = pnand %p4507_p4, %p5645_p3  ;;  %p4515_p11 = por %p4514_p1, %p4513_p12 }
 0x947   : > { %p4509_p2 = pneg %p4508_p13 }
 0x949   : > { %p4516_p8 = pnand %p4515_p11, %p4509_p2 }
 0x94b   : > { %4519 = shalt.err (!%p4516_p8)
}
 0x94c   : > { %s5648_s27 = sld [smem:[#allocation27_spill]] }
 0x952   : > { %s5649_s22 = smov %s5648_s27  ;;  %s4520_s13 = scalar_lea.hbm %s5648_s27, 256 }
 0x953   : > { %p4521_p5 = scmp.ne.s32.totalorder %s5649_s22, %s4520_s13  ;;  %p4526_p7 = scmp.lt.u32.totalorder %s4520_s13, %s5649_s22 }
 0x955   : > { %p4522_p6 = pnand %p4521_p5, %p5645_p3 }
 0x957   : > { %p4523_p10 = pneg %p4522_p6 }
 0x959   : > { %p4528_p9 = pnand %p4526_p7, %p4523_p10 }
 0x95b   : > { %4531 = shalt.err (!%p4528_p9)
}
 0x95c   : > { %3952 = dma.vmem_to_hbm [thread:$0]  (%p5645_p3), %s2970_s19, 256, %s5649_s22, [#allocation16], %s4611_s26, %s4611_s26, %s4612_s16  }
 0x95d   : > { %4569 = dma.done.wait (%p5645_p3), [#allocation16], 512  }
 0x95e   : > { %4571 = vsyncadd (%p5645_p3), [#allocation16], 4294966784 }
 0x95f PF: > { %s5650_s30 = sld [smem:[#allocation23_spill]]  ;;  %s5651_s11 = sld [smem:[#allocation24_spill]] }
 0x960   : > { %p5653_p4 = scmp.ge.s32.totalorder %s4598_s10, 2 }
 0x965   : > { %s2992_s20 = sand.u32 1, %s5650_s30   ;;  %p5652_p0 = scmp.ne.s32.totalorder %s5651_s11, 0 }
 0x966   : > { %s2993_s17 = scalar_lea.sflag [#allocation7], %s2992_s20 }
 0x967   : > { %p3976_p13 = pnand %p5653_p4, %p5652_p0 }
 0x969   : > { %4573 = dma.done.wait (!%p3976_p13), %s2993_s17, 2048  }
 0x96a   : > { %4575 = vsyncadd (!%p3976_p13), %s2993_s17, 4294965248  ;;  %s28_s10 = sadd.s32 1, %s4598_s10   ;;  %s5654_s27 = smov %s4582_s28 }
 0x96b   : > { %p25_p2 = scmp.ge.s32.totalorder %s28_s10, 4   ;;  %s5655_s28 = smov %s4586_s29 }
 0x96c   : > { %s5656_s29 = smov %s4850_s21  ;;  %s5657_s30 = smov %s4594_s9 }
 0x96d   : > { %s5658_s9 = smov %s5660_s6  ;;  %27 = sbr.rel (!%p25_p2) target bundleno = 13 (0xd), region = 150 }
 0x974   :  { %2998 = vsyncpa [#allocation6], 1 }
 0x975   :  { %3000 = vsyncpa [#allocation6 + $0x1], 1 }
 0x976   :  { %3001 = vsyncpa [#allocation9], 1 }
 0x977   :  { %3002 = vsyncpa [#allocation12], 1 }
 0x978   :  { %3003 = vsyncpa [#allocation7], 1 }
 0x979   :  { %3005 = vsyncpa [#allocation7 + $0x1], 1 }
 0x97a   :  { %3006 = vsyncpa [#allocation16], 1 }

</bundles_post_ra>
